<compile_context>
chip_gen: v7x
topology: tpu7x:2x2x1
jax: 0.10.0
libtpu: 0.0.40
codegen_flags: <defaults>
</compile_context>

<pallas_src>
import functools

import jax
import jax.numpy as jnp
from jax.experimental import pallas as pl
from jax.experimental.pallas import tpu as pltpu


def _round_up(x, m):
    return ((x + m - 1) // m) * m


# ---------------------------------------------------------------------------
# Fused forward kernel: GRU recurrence + window select + FF stack + output
# ---------------------------------------------------------------------------
def fused_forward_kernel(maxlen_ref, lens_ref, x_ref, wi_ref, wh_ref, bi_ref,
                         bh_ref, ff1w_ref, ff1b_ref, *rest,
                         n_extra, Tc, unroll):
    if n_extra > 0:
        (ffw_ref, ffb_ref, ow_ref, ob_ref,
         logits_ref, hn_ref, xp_ref, ring_ref, h_ref) = rest
    else:
        (ow_ref, ob_ref, logits_ref, hn_ref, xp_ref, ring_ref, h_ref) = rest
        ffw_ref = ffb_ref = None

    Bb, Hp = h_ref.shape
    G = 3 * Hp
    Wp1 = ring_ref.shape[0]                 # window_size + 1
    cdt = wh_ref.dtype                      # matmul input dtype (bf16)

    tc = pl.program_id(1)
    base_t = tc * Tc
    maxlen = maxlen_ref[0]                  # max(src_lengths), SMEM scalar

    # (0) per-batch-block init at the first time chunk
    @pl.when(tc == 0)
    def _():
        h_ref[...] = jnp.zeros_like(h_ref)
        ring_ref[...] = jnp.zeros_like(ring_ref)

    # (1)+(2) active time chunk: hoisted input projection + GRU recurrence
    @pl.when(base_t < maxlen)
    def _():
        # one big (Tc*Bb, E) @ (E, 3Hp) matmul, outside the serial chain
        xp_ref[...] = (jnp.dot(x_ref[...], wi_ref[...],
                               preferred_element_type=jnp.float32)
                       + bi_ref[...])

        lens = lens_ref[...]                # (Bb, 1) int32
        wh = wh_ref[...]                    # (Hp, 3Hp) cdt, hoisted
        bh = bh_ref[...]                    # (1, 3Hp)  f32, hoisted

        def step(i, carry):
            t = base_t + i

            @pl.when(t < maxlen)            # skip steps past max length
            def _():
                row = pl.multiple_of(i * Bb, Bb)          # Bb % 8 == 0
                xp_t = xp_ref[pl.ds(row, Bb), :]          # (Bb, 3Hp) f32
                h_prev = h_ref[...]                       # (Bb, Hp)  f32
                gh = jnp.dot(h_prev.astype(cdt), wh,
                             preferred_element_type=jnp.float32) + bh
                # lane-aligned gate slices (Hp is a multiple of 128)
                r = jax.nn.sigmoid(xp_t[:, 0:Hp] + gh[:, 0:Hp])
                z = jax.nn.sigmoid(xp_t[:, Hp:2 * Hp] + gh[:, Hp:2 * Hp])
                n = jnp.tanh(xp_t[:, 2 * Hp:G] + r * gh[:, 2 * Hp:G])
                h_new = (1.0 - z) * n + z * h_prev
                valid = t < lens                          # (Bb, 1) bool
                h_ref[...] = jnp.where(valid, h_new, h_prev)   # freeze past len
                # packed-sequence output: zero past each row's length
                ring_ref[t % Wp1] = jnp.where(valid, h_new, 0.0).astype(cdt)

            return carry

        jax.lax.fori_loop(0, Tc, step, 0, unroll=unroll)

    # (3) last time chunk: window select + FF stack + output + final hidden
    @pl.when(tc == pl.num_programs(1) - 1)
    def _():
        hn_ref[...] = h_ref[...]
        # window = last (W+1) timesteps of the max-length padded sequence;
        # clamp keeps ring reads defined even when max_len < W+1 (the original
        # PyTorch model cannot handle that case at all).
        start = jnp.maximum(maxlen - Wp1, 0)
        win = [ring_ref[(start + j) % Wp1] for j in range(Wp1)]   # (Bb, Hp) cdt
        xw = jnp.concatenate(win, axis=1)                         # (Bb, Wp1*Hp)
        x_ff = jnp.maximum(
            jnp.dot(xw, ff1w_ref[...], preferred_element_type=jnp.float32)
            + ff1b_ref[...], 0.0)
        for i in range(n_extra):            # remaining F -> F layers (+ReLU)
            x_ff = jnp.maximum(
                jnp.dot(x_ff.astype(cdt), ffw_ref[i],
                        preferred_element_type=jnp.float32) + ffb_ref[i], 0.0)
        # lane-dense (Bb, Cp) logits slab; real classes sliced outside
        logits_ref[...] = (jnp.dot(x_ff.astype(cdt), ow_ref[...],
                                   preferred_element_type=jnp.float32)
                           + ob_ref[...])


# ---------------------------------------------------------------------------
# Parameter init: weights generated ONCE in the exact (128-lane padded)
# layouts the kernel uses.  matmul_dtype=bf16 targets the bf16 MXU on
# v6e/v7x; on v5e with tiny batches f32 may be preferable (no bf16 VPU).
# ---------------------------------------------------------------------------
def init_params(key, vocab, pad_index, E, H, W, F, n_ff_layers, C,
                matmul_dtype=jnp.bfloat16):
    Hp = _round_up(H, 128)
    Fp = _round_up(F, 128)
    Cp = _round_up(C, 128)
    Wp1 = W + 1
    n_extra = max(n_ff_layers - 1, 0)

    keys = iter(jax.random.split(key, 32 + 2 * n_extra))

    def u(shape, scale):
        return jax.random.uniform(next(keys), shape, jnp.float32, -scale, scale)

    emb = u((vocab, E), 0.1).at[pad_index].set(0.0)       # padding row = 0

    s = 1.0 / float(H) ** 0.5
    wi = jnp.zeros((E, 3 * Hp), jnp.float32)
    wh = jnp.zeros((Hp, 3 * Hp), jnp.float32)
    bi = jnp.zeros((1, 3 * Hp), jnp.float32)
    bh = jnp.zeros((1, 3 * Hp), jnp.float32)
    for g in range(3):                                    # gate order r|z|n
        wi = wi.at[:, g * Hp:g * Hp + H].set(u((E, H), s))
        wh = wh.at[:H, g * Hp:g * Hp + H].set(u((H, H), s))
        bi = bi.at[:, g * Hp:g * Hp + H].set(u((1, H), s))
        bh = bh.at[:, g * Hp:g * Hp + H].set(u((1, H), s))

    in_dim = H * Wp1
    s1 = 1.0 / float(in_dim) ** 0.5
    # first FF layer pre-flattened to ((W+1)*Hp, Fp); slot j owns rows j*Hp..
    ff1 = jnp.zeros((Wp1 * Hp, Fp), jnp.float32)
    for j in range(Wp1):
        ff1 = ff1.at[j * Hp:j * Hp + H, :F].set(u((H, F), s1))
    ff1_b = jnp.zeros((1, Fp), jnp.float32).at[:, :F].set(u((1, F), s1))

    params = {
        "embedding": emb.astype(matmul_dtype),
        "wi": wi.astype(matmul_dtype), "wh": wh.astype(matmul_dtype),
        "bi": bi, "bh": bh,
        "ff1_w": ff1.astype(matmul_dtype), "ff1_b": ff1_b,
    }

    sF = 1.0 / float(F) ** 0.5
    if n_extra > 0:
        ws, bs = [], []
        for _ in range(n_extra):
            w = jnp.zeros((Fp, Fp), jnp.float32).at[:F, :F].set(u((F, F), sF))
            b = jnp.zeros((1, Fp), jnp.float32).at[:, :F].set(u((1, F), sF))
            ws.append(w)
            bs.append(b)
        params["ff_w"] = jnp.stack(ws).astype(matmul_dtype)   # (n_extra,Fp,Fp)
        params["ff_b"] = jnp.stack(bs)                        # (n_extra,1,Fp)
    # (n_ff_layers == 1: no extra FF params at all — no wasted identity matmul)

    ow = jnp.zeros((Fp, Cp), jnp.float32).at[:F, :C].set(u((F, C), sF))
    ob = jnp.zeros((1, Cp), jnp.float32).at[:, :C].set(u((1, C), sF))
    params["out_w"] = ow.astype(matmul_dtype)
    params["out_b"] = ob
    return params


# ---------------------------------------------------------------------------
# Full forward pass (mirrors SimpleRNNFFTextModel.forward, eval mode) — jittable
# ---------------------------------------------------------------------------
def forward(params, x_tokens, src_lengths, *, window_size, n_classes,
            hidden_size):
    B, T = x_tokens.shape
    E = params["embedding"].shape[1]
    Hp = params["wh"].shape[0]
    G = params["wh"].shape[1]
    Wp1 = window_size + 1
    Fp = params["ff1_w"].shape[1]
    Cp = params["out_w"].shape[1]
    cdt = params["wh"].dtype
    n_extra = params["ff_w"].shape[0] if "ff_w" in params else 0

    # ---- batch padding / chunking (2 chunks -> 2 TensorCores on v7x) ----
    if B > 8:
        Bp = _round_up(B, 16)
        n_b, Bb = 2, Bp // 2
    else:
        Bp = _round_up(B, 8)
        n_b, Bb = 1, Bp

    # ---- time chunking (bounds VMEM; dead chunks are skipped in-kernel) ----
    Tc = min(T, 64)
    n_t = pl.cdiv(T, Tc)
    T_pad = n_t * Tc
    unroll = min(Tc, 8)

    # embedding lookup (padding_idx row zero, stored bf16); dropouts = identity
    x_emb = jnp.take(params["embedding"], x_tokens, axis=0)      # (B, T, E)
    x_tm = jnp.transpose(x_emb, (1, 0, 2))                       # (T, B, E)
    x_tm = jnp.pad(x_tm, ((0, T_pad - T), (0, Bp - B), (0, 0)))  # (T_pad,Bp,E)
    # pre-chunk so each grid step gets a flat, lane/sublane-aligned (Tc*Bb, E)
    x_blk = (x_tm.reshape(n_t, Tc, n_b, Bb, E)
                 .transpose(0, 2, 1, 3, 4)
                 .reshape(n_t, n_b, Tc * Bb, E))

    lens = src_lengths.astype(jnp.int32)
    lens_p = jnp.pad(lens, (0, Bp - B)).reshape(Bp, 1)           # pad rows: 0
    max_len = jnp.minimum(jnp.max(lens), T).astype(jnp.int32).reshape(1)

    # ---- VMEM budget: actual resident footprint + headroom (>= default) ----
    isz = jnp.dtype(cdt).itemsize
    resident = (
        2 * (Tc * Bb * E * isz)                                   # x block x2
        + 2 * (Bb * 128 * 4)                                      # lens block
        + 2 * (E * G * isz + Hp * G * isz + 2 * G * 4)            # GRU weights
        + 2 * (Wp1 * Hp * Fp * isz + Fp * 4)                      # FF layer 1
        + 2 * (n_extra * (Fp * Fp * isz + Fp * 4))                # extra FF
        + 2 * (Fp * Cp * isz + Cp * 4)                            # output layer
        + 2 * (Bb * Cp * 4 + Bb * Hp * 4)                         # outputs
        + Tc * Bb * G * 4 + Wp1 * Bb * Hp * isz + Bb * Hp * 4     # scratch
    )
    vmem_limit = int(min(56 * 2**20, max(32 * 2**20, int(resident * 1.5))))

    kernel = functools.partial(fused_forward_kernel, n_extra=n_extra, Tc=Tc,
                               unroll=unroll)

    in_specs = [
        pl.BlockSpec((Bb, 1), lambda b, t, ml: (b, 0)),            # lens
        pl.BlockSpec((None, None, Tc * Bb, E),
                     lambda b, t, ml: (t, b, 0, 0)),               # x chunk
        pl.BlockSpec((E, G), lambda b, t, ml: (0, 0)),             # wi
        pl.BlockSpec((Hp, G), lambda b, t, ml: (0, 0)),            # wh
        pl.BlockSpec((1, G), lambda b, t, ml: (0, 0)),             # bi
        pl.BlockSpec((1, G), lambda b, t, ml: (0, 0)),             # bh
        pl.BlockSpec((Wp1 * Hp, Fp), lambda b, t, ml: (0, 0)),     # ff1_w
        pl.BlockSpec((1, Fp), lambda b, t, ml: (0, 0)),            # ff1_b
    ]
    args = [lens_p, x_blk, params["wi"], params["wh"], params["bi"],
            params["bh"], params["ff1_w"], params["ff1_b"]]
    if n_extra > 0:
        in_specs += [
            pl.BlockSpec((n_extra, Fp, Fp), lambda b, t, ml: (0, 0, 0)),
            pl.BlockSpec((n_extra, 1, Fp), lambda b, t, ml: (0, 0, 0)),
        ]
        args += [params["ff_w"], params["ff_b"]]
    in_specs += [
        pl.BlockSpec((Fp, Cp), lambda b, t, ml: (0, 0)),           # out_w
        pl.BlockSpec((1, Cp), lambda b, t, ml: (0, 0)),            # out_b
    ]
    args += [params["out_w"], params["out_b"]]

    logits_p, hn_p = pl.pallas_call(
        kernel,
        out_shape=(jax.ShapeDtypeStruct((Bp, Cp), jnp.float32),
                   jax.ShapeDtypeStruct((Bp, Hp), jnp.float32)),
        grid_spec=pltpu.PrefetchScalarGridSpec(
            num_scalar_prefetch=1,                # max_len -> SMEM, no host sync
            grid=(n_b, n_t),
            in_specs=in_specs,
            out_specs=(pl.BlockSpec((Bb, Cp), lambda b, t, ml: (b, 0)),
                       pl.BlockSpec((Bb, Hp), lambda b, t, ml: (b, 0))),
            scratch_shapes=[
                pltpu.VMEM((Tc * Bb, G), jnp.float32),   # per-chunk x projection
                pltpu.VMEM((Wp1, Bb, Hp), cdt),          # (W+1)-slot output ring
                pltpu.VMEM((Bb, Hp), jnp.float32),       # carried hidden state
            ]),
        compiler_params=pltpu.CompilerParams(
            dimension_semantics=("parallel", "arbitrary"),
            vmem_limit_bytes=vmem_limit),
    )(max_len, *args)

    logits = logits_p[:B, :n_classes]                  # drop pad lanes / rows
    hn = hn_p[:B, :hidden_size][None, :, :]            # (num_layers=1, B, H)
    return logits, src_lengths, hn


if __name__ == "__main__":
    # args: vocab=50, embedding_size=16, sample_window_size=4, rnn_layer_size=32,
    #       feedforward_size=64, feedforward_layers=2, n_classes=2, dropout=eval
    V, E, H, W, F, NFF, C = 50, 16, 32, 4, 64, 2, 2
    PAD = 0
    B, T = 2, 8

    key = jax.random.PRNGKey(0)
    kp, kx = jax.random.split(key)
    params = init_params(kp, V, PAD, E, H, W, F, NFF, C)

    x = jax.random.randint(kx, (B, T), 1, V, dtype=jnp.int32)
    src_lengths = jnp.array([T, T - 2], dtype=jnp.int32)
    # pad tokens past each sequence length with the pad index
    t_idx = jnp.arange(T)[None, :]
    x = jnp.where(t_idx < src_lengths[:, None], x, PAD)

    # TODO(synk): train-mode dropout (embedding / post-RNN / FF) has no kernel
    # equivalent here; this implements the eval-mode (identity) forward pass.
    fwd = jax.jit(forward,
                  static_argnames=("window_size", "n_classes", "hidden_size"))
    logits, lengths, hn = fwd(params, x, src_lengths,
                              window_size=W, n_classes=C, hidden_size=H)
    jax.block_until_ready((logits, lengths, hn))
    assert logits.shape == (B, C) and hn.shape == (1, B, H)
    print("KERNEL_OK")
</pallas_src>

<mosaic_0001>
module attributes {stable_mosaic.version = 11 : i64} {
  func.func @fused_forward_kernel(%arg0: i32, %arg1: i32, %arg2: memref<1xi32, #tpu.memory_space<smem>>, %arg3: memref<8x1xi32, #tpu.memory_space<vmem>>, %arg4: memref<1x1x64x16xbf16, #tpu.memory_space<vmem>>, %arg5: memref<16x384xbf16, #tpu.memory_space<vmem>>, %arg6: memref<128x384xbf16, #tpu.memory_space<vmem>>, %arg7: memref<1x384xf32, #tpu.memory_space<vmem>>, %arg8: memref<1x384xf32, #tpu.memory_space<vmem>>, %arg9: memref<640x128xbf16, #tpu.memory_space<vmem>>, %arg10: memref<1x128xf32, #tpu.memory_space<vmem>>, %arg11: memref<1x128x128xbf16, #tpu.memory_space<vmem>>, %arg12: memref<1x1x128xf32, #tpu.memory_space<vmem>>, %arg13: memref<128x128xbf16, #tpu.memory_space<vmem>>, %arg14: memref<1x128xf32, #tpu.memory_space<vmem>>, %arg15: memref<8x128xf32, #tpu.memory_space<vmem>>, %arg16: memref<8x128xf32, #tpu.memory_space<vmem>>, %arg17: memref<64x384xf32, #tpu.memory_space<vmem>>, %arg18: memref<5x8x128xbf16, #tpu.memory_space<vmem>>, %arg19: memref<8x128xf32, #tpu.memory_space<vmem>>) attributes {dimension_semantics = [#tpu.dimension_semantics<parallel>, #tpu.dimension_semantics<arbitrary>], iteration_bounds = array<i64: 1, 1>, scalar_prefetch = 1 : i64, scratch_operands = 3 : i64, tpu.core_type = #tpu.core_type<tc>, window_params = [{transform_indices = @transform_0, window_bounds = array<i64: 8, 1>}, {transform_indices = @transform_1, window_bounds = array<i64: 1, 1, 64, 16>}, {pipeline_mode = #tpu.pipeline_mode<synchronous>, transform_indices = @transform_2, window_bounds = array<i64: 16, 384>}, {pipeline_mode = #tpu.pipeline_mode<synchronous>, transform_indices = @transform_3, window_bounds = array<i64: 128, 384>}, {pipeline_mode = #tpu.pipeline_mode<synchronous>, transform_indices = @transform_4, window_bounds = array<i64: 1, 384>}, {pipeline_mode = #tpu.pipeline_mode<synchronous>, transform_indices = @transform_5, window_bounds = array<i64: 1, 384>}, {pipeline_mode = #tpu.pipeline_mode<synchronous>, transform_indices = @transform_6, window_bounds = array<i64: 640, 128>}, {pipeline_mode = #tpu.pipeline_mode<synchronous>, transform_indices = @transform_7, window_bounds = array<i64: 1, 128>}, {pipeline_mode = #tpu.pipeline_mode<synchronous>, transform_indices = @transform_8, window_bounds = array<i64: 1, 128, 128>}, {pipeline_mode = #tpu.pipeline_mode<synchronous>, transform_indices = @transform_9, window_bounds = array<i64: 1, 1, 128>}, {pipeline_mode = #tpu.pipeline_mode<synchronous>, transform_indices = @transform_10, window_bounds = array<i64: 128, 128>}, {pipeline_mode = #tpu.pipeline_mode<synchronous>, transform_indices = @transform_11, window_bounds = array<i64: 1, 128>}, {transform_indices = @transform_12, window_bounds = array<i64: 8, 128>}, {transform_indices = @transform_13, window_bounds = array<i64: 8, 128>}]} {
    %c8_i32 = arith.constant 8 : i32
    %0 = arith.muli %arg1, %c8_i32 : i32
    %c0 = arith.constant 0 : index
    %1 = memref.load %arg2[%c0] : memref<1xi32, #tpu.memory_space<smem>>
    %c0_i32 = arith.constant 0 : i32
    %2 = arith.cmpi eq, %arg1, %c0_i32 : i32
    %3 = arith.extui %2 : i1 to i32
    %c0_i32_0 = arith.constant 0 : i32
    %4 = arith.cmpi ne, %3, %c0_i32_0 : i32
    scf.if %4 {
      %cst = arith.constant 0.000000e+00 : f32
      %11 = vector.broadcast %cst : f32 to vector<8x128xf32>
      %c0_4 = arith.constant 0 : index
      %c0_5 = arith.constant 0 : index
      %12 = vector.load %arg19[%c0_4, %c0_5] : memref<8x128xf32, #tpu.memory_space<vmem>>, vector<8x128xf32>
      tpu.vector_store %arg19[%c0_4, %c0_5], %11 {strides = array<i32>} : memref<8x128xf32, #tpu.memory_space<vmem>>, vector<8x128xf32>,
      %cst_6 = arith.constant 0.000000e+00 : bf16
      %13 = vector.broadcast %cst_6 : bf16 to vector<5x8x128xbf16>
      %c0_7 = arith.constant 0 : index
      %c0_8 = arith.constant 0 : index
      %c0_9 = arith.constant 0 : index
      %14 = vector.load %arg18[%c0_7, %c0_8, %c0_9] : memref<5x8x128xbf16, #tpu.memory_space<vmem>>, vector<5x8x128xbf16>
      tpu.vector_store %arg18[%c0_7, %c0_8, %c0_9], %13 {strides = array<i32>} : memref<5x8x128xbf16, #tpu.memory_space<vmem>>, vector<5x8x128xbf16>,
    } else {
    }
    %5 = arith.cmpi slt, %0, %1 : i32
    %6 = arith.extui %5 : i1 to i32
    %c0_i32_1 = arith.constant 0 : i32
    %7 = arith.cmpi ne, %6, %c0_i32_1 : i32
    scf.if %7 {
      %c0_4 = arith.constant 0 : index
      %c0_5 = arith.constant 0 : index
      %c0_6 = arith.constant 0 : index
      %c0_7 = arith.constant 0 : index
      %11 = vector.load %arg4[%c0_4, %c0_5, %c0_6, %c0_7] : memref<1x1x64x16xbf16, #tpu.memory_space<vmem>>, vector<1x1x64x16xbf16>
      %12 = vector.shape_cast %11 : vector<1x1x64x16xbf16> to vector<64x16xbf16>
      %c0_8 = arith.constant 0 : index
      %c0_9 = arith.constant 0 : index
      %13 = vector.load %arg5[%c0_8, %c0_9] : memref<16x384xbf16, #tpu.memory_space<vmem>>, vector<16x384xbf16>
      %cst = arith.constant dense<0.000000e+00> : vector<64x384xf32>
      %14 = tpu.matmul %12, %13, %cst {dimension_numbers = #tpu.dot_dimension_numbers<[1], [0], [0], [1], [0, 0, 1, 1], [], []>} : vector<64x16xbf16>, vector<16x384xbf16>, vector<64x384xf32> -> vector<64x384xf32>
      %c0_10 = arith.constant 0 : index
      %c0_11 = arith.constant 0 : index
      %15 = vector.load %arg7[%c0_10, %c0_11] : memref<1x384xf32, #tpu.memory_space<vmem>>, vector<1x384xf32>
      %16 = vector.broadcast %15 : vector<1x384xf32> to vector<64x384xf32>
      %17 = arith.addf %14, %16 : vector<64x384xf32>
      %c0_12 = arith.constant 0 : index
      %c0_13 = arith.constant 0 : index
      %18 = vector.load %arg17[%c0_12, %c0_13] : memref<64x384xf32, #tpu.memory_space<vmem>>, vector<64x384xf32>
      tpu.vector_store %arg17[%c0_12, %c0_13], %17 {strides = array<i32>} : memref<64x384xf32, #tpu.memory_space<vmem>>, vector<64x384xf32>,
      %c0_14 = arith.constant 0 : index
      %c0_15 = arith.constant 0 : index
      %19 = vector.load %arg3[%c0_14, %c0_15] : memref<8x1xi32, #tpu.memory_space<vmem>>, vector<8x1xi32>
      %c0_16 = arith.constant 0 : index
      %c0_17 = arith.constant 0 : index
      %20 = vector.load %arg6[%c0_16, %c0_17] : memref<128x384xbf16, #tpu.memory_space<vmem>>, vector<128x384xbf16>
      %c0_18 = arith.constant 0 : index
      %c0_19 = arith.constant 0 : index
      %21 = vector.load %arg8[%c0_18, %c0_19] : memref<1x384xf32, #tpu.memory_space<vmem>>, vector<1x384xf32>
      %c0_i32_20 = arith.constant 0 : i32
      %22 = arith.addi %0, %c0_i32_20 : i32
      %23 = arith.cmpi slt, %22, %1 : i32
      %24 = arith.extui %23 : i1 to i32
      %c0_i32_21 = arith.constant 0 : i32
      %25 = arith.cmpi ne, %24, %c0_i32_21 : i32
      scf.if %25 {
        %c8_i32_30 = arith.constant 8 : i32
        %54 = arith.muli %c0_i32_20, %c8_i32_30 : i32
        %55 = tpu.assume_multiple %54, 8 : i32
        %56 = arith.index_cast %55 : i32 to index
        %c0_31 = arith.constant 0 : index
        %57 = vector.load %arg17[%56, %c0_31] : memref<64x384xf32, #tpu.memory_space<vmem>>, vector<8x384xf32>
        %c0_32 = arith.constant 0 : index
        %c0_33 = arith.constant 0 : index
        %58 = vector.load %arg19[%c0_32, %c0_33] : memref<8x128xf32, #tpu.memory_space<vmem>>, vector<8x128xf32>
        %59 = arith.truncf %58 : vector<8x128xf32> to vector<8x128xbf16>
        %cst_34 = arith.constant dense<0.000000e+00> : vector<8x384xf32>
        %60 = tpu.matmul %59, %20, %cst_34 {dimension_numbers = #tpu.dot_dimension_numbers<[1], [0], [0], [1], [0, 0, 1, 1], [], []>} : vector<8x128xbf16>, vector<128x384xbf16>, vector<8x384xf32> -> vector<8x384xf32>
        %61 = vector.broadcast %21 : vector<1x384xf32> to vector<8x384xf32>
        %62 = arith.addf %60, %61 : vector<8x384xf32>
        %63 = vector.extract_strided_slice %57 {offsets = [0, 0], sizes = [8, 128], strides = [1, 1]} : vector<8x384xf32> to vector<8x128xf32>
        %64 = vector.extract_strided_slice %62 {offsets = [0, 0], sizes = [8, 128], strides = [1, 1]} : vector<8x384xf32> to vector<8x128xf32>
        %65 = arith.addf %63, %64 : vector<8x128xf32>
        %66 = arith.negf %65 : vector<8x128xf32>
        %67 = math.exp %66 : vector<8x128xf32>
        %cst_35 = arith.constant 1.000000e+00 : f32
        %68 = vector.broadcast %cst_35 : f32 to vector<8x128xf32>
        %69 = arith.addf %68, %67 : vector<8x128xf32>
        %70 = arith.divf %68, %69 : vector<8x128xf32>
        %71 = vector.extract_strided_slice %57 {offsets = [0, 128], sizes = [8, 128], strides = [1, 1]} : vector<8x384xf32> to vector<8x128xf32>
        %72 = vector.extract_strided_slice %62 {offsets = [0, 128], sizes = [8, 128], strides = [1, 1]} : vector<8x384xf32> to vector<8x128xf32>
        %73 = arith.addf %71, %72 : vector<8x128xf32>
        %74 = arith.negf %73 : vector<8x128xf32>
        %75 = math.exp %74 : vector<8x128xf32>
        %cst_36 = arith.constant 1.000000e+00 : f32
        %76 = vector.broadcast %cst_36 : f32 to vector<8x128xf32>
        %77 = arith.addf %76, %75 : vector<8x128xf32>
        %78 = arith.divf %76, %77 : vector<8x128xf32>
        %79 = vector.extract_strided_slice %57 {offsets = [0, 256], sizes = [8, 128], strides = [1, 1]} : vector<8x384xf32> to vector<8x128xf32>
        %80 = vector.extract_strided_slice %62 {offsets = [0, 256], sizes = [8, 128], strides = [1, 1]} : vector<8x384xf32> to vector<8x128xf32>
        %81 = arith.mulf %70, %80 : vector<8x128xf32>
        %82 = arith.addf %79, %81 : vector<8x128xf32>
        %83 = math.tanh %82 : vector<8x128xf32>
        %cst_37 = arith.constant 1.000000e+00 : f32
        %84 = vector.broadcast %cst_37 : f32 to vector<8x128xf32>
        %85 = arith.subf %84, %78 : vector<8x128xf32>
        %86 = arith.mulf %85, %83 : vector<8x128xf32>
        %87 = arith.mulf %78, %58 : vector<8x128xf32>
        %88 = arith.addf %86, %87 : vector<8x128xf32>
        %89 = vector.broadcast %22 : i32 to vector<8x1xi32>
        %90 = arith.cmpi slt, %89, %19 : vector<8x1xi32>
        %91 = vector.shape_cast %90 : vector<8x1xi1> to vector<8x1xi1>
        %92 = vector.broadcast %91 : vector<8x1xi1> to vector<8x128xi1>
        %93 = arith.select %92, %88, %58 : vector<8x128xi1>, vector<8x128xf32>
        %c0_38 = arith.constant 0 : index
        %c0_39 = arith.constant 0 : index
        %94 = vector.load %arg19[%c0_38, %c0_39] : memref<8x128xf32, #tpu.memory_space<vmem>>, vector<8x128xf32>
        tpu.vector_store %arg19[%c0_38, %c0_39], %93 {strides = array<i32>} : memref<8x128xf32, #tpu.memory_space<vmem>>, vector<8x128xf32>,
        %cst_40 = arith.constant 0.000000e+00 : f32
        %95 = vector.shape_cast %90 : vector<8x1xi1> to vector<8x1xi1>
        %96 = vector.broadcast %95 : vector<8x1xi1> to vector<8x128xi1>
        %97 = vector.broadcast %cst_40 : f32 to vector<8x128xf32>
        %98 = arith.select %96, %88, %97 : vector<8x128xi1>, vector<8x128xf32>
        %99 = arith.truncf %98 : vector<8x128xf32> to vector<8x128xbf16>
        %c5_i32_41 = arith.constant 5 : i32
        %c0_i32_42 = arith.constant 0 : i32
        %100 = arith.cmpi eq, %c5_i32_41, %c0_i32_42 : i32
        %c1_i32_43 = arith.constant 1 : i32
        %101 = arith.select %100, %c1_i32_43, %c5_i32_41 : i32
        %102 = arith.remsi %22, %101 : i32
        %c0_i32_44 = arith.constant 0 : i32
        %103 = arith.cmpi ne, %102, %c0_i32_44 : i32
        %c0_i32_45 = arith.constant 0 : i32
        %104 = arith.cmpi slt, %102, %c0_i32_45 : i32
        %c0_i32_46 = arith.constant 0 : i32
        %105 = arith.cmpi slt, %101, %c0_i32_46 : i32
        %106 = arith.xori %104, %105 : i1
        %107 = arith.andi %106, %103 : i1
        %108 = arith.addi %102, %101 : i32
        %109 = arith.select %107, %108, %102 : i32
        %110 = arith.index_cast %109 : i32 to index
        %c0_47 = arith.constant 0 : index
        %c0_48 = arith.constant 0 : index
        %111 = vector.load %arg18[%110, %c0_47, %c0_48] : memref<5x8x128xbf16, #tpu.memory_space<vmem>>, vector<1x8x128xbf16>
        %112 = vector.shape_cast %111 : vector<1x8x128xbf16> to vector<8x128xbf16>
        %113 = vector.shape_cast %99 : vector<8x128xbf16> to vector<1x8x128xbf16>
        tpu.vector_store %arg18[%110, %c0_47, %c0_48], %113 {strides = array<i32>} : memref<5x8x128xbf16, #tpu.memory_space<vmem>>, vector<1x8x128xbf16>,
      } else {
      }
      %c1_i32 = arith.constant 1 : i32
      %26 = arith.addi %0, %c1_i32 : i32
      %27 = arith.cmpi slt, %26, %1 : i32
      %28 = arith.extui %27 : i1 to i32
      %c0_i32_22 = arith.constant 0 : i32
      %29 = arith.cmpi ne, %28, %c0_i32_22 : i32
      scf.if %29 {
        %c8_i32_30 = arith.constant 8 : i32
        %54 = arith.muli %c1_i32, %c8_i32_30 : i32
        %55 = tpu.assume_multiple %54, 8 : i32
        %56 = arith.index_cast %55 : i32 to index
        %c0_31 = arith.constant 0 : index
        %57 = vector.load %arg17[%56, %c0_31] : memref<64x384xf32, #tpu.memory_space<vmem>>, vector<8x384xf32>
        %c0_32 = arith.constant 0 : index
        %c0_33 = arith.constant 0 : index
        %58 = vector.load %arg19[%c0_32, %c0_33] : memref<8x128xf32, #tpu.memory_space<vmem>>, vector<8x128xf32>
        %59 = arith.truncf %58 : vector<8x128xf32> to vector<8x128xbf16>
        %cst_34 = arith.constant dense<0.000000e+00> : vector<8x384xf32>
        %60 = tpu.matmul %59, %20, %cst_34 {dimension_numbers = #tpu.dot_dimension_numbers<[1], [0], [0], [1], [0, 0, 1, 1], [], []>} : vector<8x128xbf16>, vector<128x384xbf16>, vector<8x384xf32> -> vector<8x384xf32>
        %61 = vector.broadcast %21 : vector<1x384xf32> to vector<8x384xf32>
        %62 = arith.addf %60, %61 : vector<8x384xf32>
        %63 = vector.extract_strided_slice %57 {offsets = [0, 0], sizes = [8, 128], strides = [1, 1]} : vector<8x384xf32> to vector<8x128xf32>
        %64 = vector.extract_strided_slice %62 {offsets = [0, 0], sizes = [8, 128], strides = [1, 1]} : vector<8x384xf32> to vector<8x128xf32>
        %65 = arith.addf %63, %64 : vector<8x128xf32>
        %66 = arith.negf %65 : vector<8x128xf32>
        %67 = math.exp %66 : vector<8x128xf32>
        %cst_35 = arith.constant 1.000000e+00 : f32
        %68 = vector.broadcast %cst_35 : f32 to vector<8x128xf32>
        %69 = arith.addf %68, %67 : vector<8x128xf32>
        %70 = arith.divf %68, %69 : vector<8x128xf32>
        %71 = vector.extract_strided_slice %57 {offsets = [0, 128], sizes = [8, 128], strides = [1, 1]} : vector<8x384xf32> to vector<8x128xf32>
        %72 = vector.extract_strided_slice %62 {offsets = [0, 128], sizes = [8, 128], strides = [1, 1]} : vector<8x384xf32> to vector<8x128xf32>
        %73 = arith.addf %71, %72 : vector<8x128xf32>
        %74 = arith.negf %73 : vector<8x128xf32>
        %75 = math.exp %74 : vector<8x128xf32>
        %cst_36 = arith.constant 1.000000e+00 : f32
        %76 = vector.broadcast %cst_36 : f32 to vector<8x128xf32>
        %77 = arith.addf %76, %75 : vector<8x128xf32>
        %78 = arith.divf %76, %77 : vector<8x128xf32>
        %79 = vector.extract_strided_slice %57 {offsets = [0, 256], sizes = [8, 128], strides = [1, 1]} : vector<8x384xf32> to vector<8x128xf32>
        %80 = vector.extract_strided_slice %62 {offsets = [0, 256], sizes = [8, 128], strides = [1, 1]} : vector<8x384xf32> to vector<8x128xf32>
        %81 = arith.mulf %70, %80 : vector<8x128xf32>
        %82 = arith.addf %79, %81 : vector<8x128xf32>
        %83 = math.tanh %82 : vector<8x128xf32>
        %cst_37 = arith.constant 1.000000e+00 : f32
        %84 = vector.broadcast %cst_37 : f32 to vector<8x128xf32>
        %85 = arith.subf %84, %78 : vector<8x128xf32>
        %86 = arith.mulf %85, %83 : vector<8x128xf32>
        %87 = arith.mulf %78, %58 : vector<8x128xf32>
        %88 = arith.addf %86, %87 : vector<8x128xf32>
        %89 = vector.broadcast %26 : i32 to vector<8x1xi32>
        %90 = arith.cmpi slt, %89, %19 : vector<8x1xi32>
        %91 = vector.shape_cast %90 : vector<8x1xi1> to vector<8x1xi1>
        %92 = vector.broadcast %91 : vector<8x1xi1> to vector<8x128xi1>
        %93 = arith.select %92, %88, %58 : vector<8x128xi1>, vector<8x128xf32>
        %c0_38 = arith.constant 0 : index
        %c0_39 = arith.constant 0 : index
        %94 = vector.load %arg19[%c0_38, %c0_39] : memref<8x128xf32, #tpu.memory_space<vmem>>, vector<8x128xf32>
        tpu.vector_store %arg19[%c0_38, %c0_39], %93 {strides = array<i32>} : memref<8x128xf32, #tpu.memory_space<vmem>>, vector<8x128xf32>,
        %cst_40 = arith.constant 0.000000e+00 : f32
        %95 = vector.shape_cast %90 : vector<8x1xi1> to vector<8x1xi1>
        %96 = vector.broadcast %95 : vector<8x1xi1> to vector<8x128xi1>
        %97 = vector.broadcast %cst_40 : f32 to vector<8x128xf32>
        %98 = arith.select %96, %88, %97 : vector<8x128xi1>, vector<8x128xf32>
        %99 = arith.truncf %98 : vector<8x128xf32> to vector<8x128xbf16>
        %c5_i32_41 = arith.constant 5 : i32
        %c0_i32_42 = arith.constant 0 : i32
        %100 = arith.cmpi eq, %c5_i32_41, %c0_i32_42 : i32
        %c1_i32_43 = arith.constant 1 : i32
        %101 = arith.select %100, %c1_i32_43, %c5_i32_41 : i32
        %102 = arith.remsi %26, %101 : i32
        %c0_i32_44 = arith.constant 0 : i32
        %103 = arith.cmpi ne, %102, %c0_i32_44 : i32
        %c0_i32_45 = arith.constant 0 : i32
        %104 = arith.cmpi slt, %102, %c0_i32_45 : i32
        %c0_i32_46 = arith.constant 0 : i32
        %105 = arith.cmpi slt, %101, %c0_i32_46 : i32
        %106 = arith.xori %104, %105 : i1
        %107 = arith.andi %106, %103 : i1
        %108 = arith.addi %102, %101 : i32
        %109 = arith.select %107, %108, %102 : i32
        %110 = arith.index_cast %109 : i32 to index
        %c0_47 = arith.constant 0 : index
        %c0_48 = arith.constant 0 : index
        %111 = vector.load %arg18[%110, %c0_47, %c0_48] : memref<5x8x128xbf16, #tpu.memory_space<vmem>>, vector<1x8x128xbf16>
        %112 = vector.shape_cast %111 : vector<1x8x128xbf16> to vector<8x128xbf16>
        %113 = vector.shape_cast %99 : vector<8x128xbf16> to vector<1x8x128xbf16>
        tpu.vector_store %arg18[%110, %c0_47, %c0_48], %113 {strides = array<i32>} : memref<5x8x128xbf16, #tpu.memory_space<vmem>>, vector<1x8x128xbf16>,
      } else {
      }
      %c2_i32 = arith.constant 2 : i32
      %30 = arith.addi %0, %c2_i32 : i32
      %31 = arith.cmpi slt, %30, %1 : i32
      %32 = arith.extui %31 : i1 to i32
      %c0_i32_23 = arith.constant 0 : i32
      %33 = arith.cmpi ne, %32, %c0_i32_23 : i32
      scf.if %33 {
        %c8_i32_30 = arith.constant 8 : i32
        %54 = arith.muli %c2_i32, %c8_i32_30 : i32
        %55 = tpu.assume_multiple %54, 8 : i32
        %56 = arith.index_cast %55 : i32 to index
        %c0_31 = arith.constant 0 : index
        %57 = vector.load %arg17[%56, %c0_31] : memref<64x384xf32, #tpu.memory_space<vmem>>, vector<8x384xf32>
        %c0_32 = arith.constant 0 : index
        %c0_33 = arith.constant 0 : index
        %58 = vector.load %arg19[%c0_32, %c0_33] : memref<8x128xf32, #tpu.memory_space<vmem>>, vector<8x128xf32>
        %59 = arith.truncf %58 : vector<8x128xf32> to vector<8x128xbf16>
        %cst_34 = arith.constant dense<0.000000e+00> : vector<8x384xf32>
        %60 = tpu.matmul %59, %20, %cst_34 {dimension_numbers = #tpu.dot_dimension_numbers<[1], [0], [0], [1], [0, 0, 1, 1], [], []>} : vector<8x128xbf16>, vector<128x384xbf16>, vector<8x384xf32> -> vector<8x384xf32>
        %61 = vector.broadcast %21 : vector<1x384xf32> to vector<8x384xf32>
        %62 = arith.addf %60, %61 : vector<8x384xf32>
        %63 = vector.extract_strided_slice %57 {offsets = [0, 0], sizes = [8, 128], strides = [1, 1]} : vector<8x384xf32> to vector<8x128xf32>
        %64 = vector.extract_strided_slice %62 {offsets = [0, 0], sizes = [8, 128], strides = [1, 1]} : vector<8x384xf32> to vector<8x128xf32>
        %65 = arith.addf %63, %64 : vector<8x128xf32>
        %66 = arith.negf %65 : vector<8x128xf32>
        %67 = math.exp %66 : vector<8x128xf32>
        %cst_35 = arith.constant 1.000000e+00 : f32
        %68 = vector.broadcast %cst_35 : f32 to vector<8x128xf32>
        %69 = arith.addf %68, %67 : vector<8x128xf32>
        %70 = arith.divf %68, %69 : vector<8x128xf32>
        %71 = vector.extract_strided_slice %57 {offsets = [0, 128], sizes = [8, 128], strides = [1, 1]} : vector<8x384xf32> to vector<8x128xf32>
        %72 = vector.extract_strided_slice %62 {offsets = [0, 128], sizes = [8, 128], strides = [1, 1]} : vector<8x384xf32> to vector<8x128xf32>
        %73 = arith.addf %71, %72 : vector<8x128xf32>
        %74 = arith.negf %73 : vector<8x128xf32>
        %75 = math.exp %74 : vector<8x128xf32>
        %cst_36 = arith.constant 1.000000e+00 : f32
        %76 = vector.broadcast %cst_36 : f32 to vector<8x128xf32>
        %77 = arith.addf %76, %75 : vector<8x128xf32>
        %78 = arith.divf %76, %77 : vector<8x128xf32>
        %79 = vector.extract_strided_slice %57 {offsets = [0, 256], sizes = [8, 128], strides = [1, 1]} : vector<8x384xf32> to vector<8x128xf32>
        %80 = vector.extract_strided_slice %62 {offsets = [0, 256], sizes = [8, 128], strides = [1, 1]} : vector<8x384xf32> to vector<8x128xf32>
        %81 = arith.mulf %70, %80 : vector<8x128xf32>
        %82 = arith.addf %79, %81 : vector<8x128xf32>
        %83 = math.tanh %82 : vector<8x128xf32>
        %cst_37 = arith.constant 1.000000e+00 : f32
        %84 = vector.broadcast %cst_37 : f32 to vector<8x128xf32>
        %85 = arith.subf %84, %78 : vector<8x128xf32>
        %86 = arith.mulf %85, %83 : vector<8x128xf32>
        %87 = arith.mulf %78, %58 : vector<8x128xf32>
        %88 = arith.addf %86, %87 : vector<8x128xf32>
        %89 = vector.broadcast %30 : i32 to vector<8x1xi32>
        %90 = arith.cmpi slt, %89, %19 : vector<8x1xi32>
        %91 = vector.shape_cast %90 : vector<8x1xi1> to vector<8x1xi1>
        %92 = vector.broadcast %91 : vector<8x1xi1> to vector<8x128xi1>
        %93 = arith.select %92, %88, %58 : vector<8x128xi1>, vector<8x128xf32>
        %c0_38 = arith.constant 0 : index
        %c0_39 = arith.constant 0 : index
        %94 = vector.load %arg19[%c0_38, %c0_39] : memref<8x128xf32, #tpu.memory_space<vmem>>, vector<8x128xf32>
        tpu.vector_store %arg19[%c0_38, %c0_39], %93 {strides = array<i32>} : memref<8x128xf32, #tpu.memory_space<vmem>>, vector<8x128xf32>,
        %cst_40 = arith.constant 0.000000e+00 : f32
        %95 = vector.shape_cast %90 : vector<8x1xi1> to vector<8x1xi1>
        %96 = vector.broadcast %95 : vector<8x1xi1> to vector<8x128xi1>
        %97 = vector.broadcast %cst_40 : f32 to vector<8x128xf32>
        %98 = arith.select %96, %88, %97 : vector<8x128xi1>, vector<8x128xf32>
        %99 = arith.truncf %98 : vector<8x128xf32> to vector<8x128xbf16>
        %c5_i32_41 = arith.constant 5 : i32
        %c0_i32_42 = arith.constant 0 : i32
        %100 = arith.cmpi eq, %c5_i32_41, %c0_i32_42 : i32
        %c1_i32_43 = arith.constant 1 : i32
        %101 = arith.select %100, %c1_i32_43, %c5_i32_41 : i32
        %102 = arith.remsi %30, %101 : i32
        %c0_i32_44 = arith.constant 0 : i32
        %103 = arith.cmpi ne, %102, %c0_i32_44 : i32
        %c0_i32_45 = arith.constant 0 : i32
        %104 = arith.cmpi slt, %102, %c0_i32_45 : i32
        %c0_i32_46 = arith.constant 0 : i32
        %105 = arith.cmpi slt, %101, %c0_i32_46 : i32
        %106 = arith.xori %104, %105 : i1
        %107 = arith.andi %106, %103 : i1
        %108 = arith.addi %102, %101 : i32
        %109 = arith.select %107, %108, %102 : i32
        %110 = arith.index_cast %109 : i32 to index
        %c0_47 = arith.constant 0 : index
        %c0_48 = arith.constant 0 : index
        %111 = vector.load %arg18[%110, %c0_47, %c0_48] : memref<5x8x128xbf16, #tpu.memory_space<vmem>>, vector<1x8x128xbf16>
        %112 = vector.shape_cast %111 : vector<1x8x128xbf16> to vector<8x128xbf16>
        %113 = vector.shape_cast %99 : vector<8x128xbf16> to vector<1x8x128xbf16>
        tpu.vector_store %arg18[%110, %c0_47, %c0_48], %113 {strides = array<i32>} : memref<5x8x128xbf16, #tpu.memory_space<vmem>>, vector<1x8x128xbf16>,
      } else {
      }
      %c3_i32 = arith.constant 3 : i32
      %34 = arith.addi %0, %c3_i32 : i32
      %35 = arith.cmpi slt, %34, %1 : i32
      %36 = arith.extui %35 : i1 to i32
      %c0_i32_24 = arith.constant 0 : i32
      %37 = arith.cmpi ne, %36, %c0_i32_24 : i32
      scf.if %37 {
        %c8_i32_30 = arith.constant 8 : i32
        %54 = arith.muli %c3_i32, %c8_i32_30 : i32
        %55 = tpu.assume_multiple %54, 8 : i32
        %56 = arith.index_cast %55 : i32 to index
        %c0_31 = arith.constant 0 : index
        %57 = vector.load %arg17[%56, %c0_31] : memref<64x384xf32, #tpu.memory_space<vmem>>, vector<8x384xf32>
        %c0_32 = arith.constant 0 : index
        %c0_33 = arith.constant 0 : index
        %58 = vector.load %arg19[%c0_32, %c0_33] : memref<8x128xf32, #tpu.memory_space<vmem>>, vector<8x128xf32>
        %59 = arith.truncf %58 : vector<8x128xf32> to vector<8x128xbf16>
        %cst_34 = arith.constant dense<0.000000e+00> : vector<8x384xf32>
        %60 = tpu.matmul %59, %20, %cst_34 {dimension_numbers = #tpu.dot_dimension_numbers<[1], [0], [0], [1], [0, 0, 1, 1], [], []>} : vector<8x128xbf16>, vector<128x384xbf16>, vector<8x384xf32> -> vector<8x384xf32>
        %61 = vector.broadcast %21 : vector<1x384xf32> to vector<8x384xf32>
        %62 = arith.addf %60, %61 : vector<8x384xf32>
        %63 = vector.extract_strided_slice %57 {offsets = [0, 0], sizes = [8, 128], strides = [1, 1]} : vector<8x384xf32> to vector<8x128xf32>
        %64 = vector.extract_strided_slice %62 {offsets = [0, 0], sizes = [8, 128], strides = [1, 1]} : vector<8x384xf32> to vector<8x128xf32>
        %65 = arith.addf %63, %64 : vector<8x128xf32>
        %66 = arith.negf %65 : vector<8x128xf32>
        %67 = math.exp %66 : vector<8x128xf32>
        %cst_35 = arith.constant 1.000000e+00 : f32
        %68 = vector.broadcast %cst_35 : f32 to vector<8x128xf32>
        %69 = arith.addf %68, %67 : vector<8x128xf32>
        %70 = arith.divf %68, %69 : vector<8x128xf32>
        %71 = vector.extract_strided_slice %57 {offsets = [0, 128], sizes = [8, 128], strides = [1, 1]} : vector<8x384xf32> to vector<8x128xf32>
        %72 = vector.extract_strided_slice %62 {offsets = [0, 128], sizes = [8, 128], strides = [1, 1]} : vector<8x384xf32> to vector<8x128xf32>
        %73 = arith.addf %71, %72 : vector<8x128xf32>
        %74 = arith.negf %73 : vector<8x128xf32>
        %75 = math.exp %74 : vector<8x128xf32>
        %cst_36 = arith.constant 1.000000e+00 : f32
        %76 = vector.broadcast %cst_36 : f32 to vector<8x128xf32>
        %77 = arith.addf %76, %75 : vector<8x128xf32>
        %78 = arith.divf %76, %77 : vector<8x128xf32>
        %79 = vector.extract_strided_slice %57 {offsets = [0, 256], sizes = [8, 128], strides = [1, 1]} : vector<8x384xf32> to vector<8x128xf32>
        %80 = vector.extract_strided_slice %62 {offsets = [0, 256], sizes = [8, 128], strides = [1, 1]} : vector<8x384xf32> to vector<8x128xf32>
        %81 = arith.mulf %70, %80 : vector<8x128xf32>
        %82 = arith.addf %79, %81 : vector<8x128xf32>
        %83 = math.tanh %82 : vector<8x128xf32>
        %cst_37 = arith.constant 1.000000e+00 : f32
        %84 = vector.broadcast %cst_37 : f32 to vector<8x128xf32>
        %85 = arith.subf %84, %78 : vector<8x128xf32>
        %86 = arith.mulf %85, %83 : vector<8x128xf32>
        %87 = arith.mulf %78, %58 : vector<8x128xf32>
        %88 = arith.addf %86, %87 : vector<8x128xf32>
        %89 = vector.broadcast %34 : i32 to vector<8x1xi32>
        %90 = arith.cmpi slt, %89, %19 : vector<8x1xi32>
        %91 = vector.shape_cast %90 : vector<8x1xi1> to vector<8x1xi1>
        %92 = vector.broadcast %91 : vector<8x1xi1> to vector<8x128xi1>
        %93 = arith.select %92, %88, %58 : vector<8x128xi1>, vector<8x128xf32>
        %c0_38 = arith.constant 0 : index
        %c0_39 = arith.constant 0 : index
        %94 = vector.load %arg19[%c0_38, %c0_39] : memref<8x128xf32, #tpu.memory_space<vmem>>, vector<8x128xf32>
        tpu.vector_store %arg19[%c0_38, %c0_39], %93 {strides = array<i32>} : memref<8x128xf32, #tpu.memory_space<vmem>>, vector<8x128xf32>,
        %cst_40 = arith.constant 0.000000e+00 : f32
        %95 = vector.shape_cast %90 : vector<8x1xi1> to vector<8x1xi1>
        %96 = vector.broadcast %95 : vector<8x1xi1> to vector<8x128xi1>
        %97 = vector.broadcast %cst_40 : f32 to vector<8x128xf32>
        %98 = arith.select %96, %88, %97 : vector<8x128xi1>, vector<8x128xf32>
        %99 = arith.truncf %98 : vector<8x128xf32> to vector<8x128xbf16>
        %c5_i32_41 = arith.constant 5 : i32
        %c0_i32_42 = arith.constant 0 : i32
        %100 = arith.cmpi eq, %c5_i32_41, %c0_i32_42 : i32
        %c1_i32_43 = arith.constant 1 : i32
        %101 = arith.select %100, %c1_i32_43, %c5_i32_41 : i32
        %102 = arith.remsi %34, %101 : i32
        %c0_i32_44 = arith.constant 0 : i32
        %103 = arith.cmpi ne, %102, %c0_i32_44 : i32
        %c0_i32_45 = arith.constant 0 : i32
        %104 = arith.cmpi slt, %102, %c0_i32_45 : i32
        %c0_i32_46 = arith.constant 0 : i32
        %105 = arith.cmpi slt, %101, %c0_i32_46 : i32
        %106 = arith.xori %104, %105 : i1
        %107 = arith.andi %106, %103 : i1
        %108 = arith.addi %102, %101 : i32
        %109 = arith.select %107, %108, %102 : i32
        %110 = arith.index_cast %109 : i32 to index
        %c0_47 = arith.constant 0 : index
        %c0_48 = arith.constant 0 : index
        %111 = vector.load %arg18[%110, %c0_47, %c0_48] : memref<5x8x128xbf16, #tpu.memory_space<vmem>>, vector<1x8x128xbf16>
        %112 = vector.shape_cast %111 : vector<1x8x128xbf16> to vector<8x128xbf16>
        %113 = vector.shape_cast %99 : vector<8x128xbf16> to vector<1x8x128xbf16>
        tpu.vector_store %arg18[%110, %c0_47, %c0_48], %113 {strides = array<i32>} : memref<5x8x128xbf16, #tpu.memory_space<vmem>>, vector<1x8x128xbf16>,
      } else {
      }
      %c4_i32 = arith.constant 4 : i32
      %38 = arith.addi %0, %c4_i32 : i32
      %39 = arith.cmpi slt, %38, %1 : i32
      %40 = arith.extui %39 : i1 to i32
      %c0_i32_25 = arith.constant 0 : i32
      %41 = arith.cmpi ne, %40, %c0_i32_25 : i32
      scf.if %41 {
        %c8_i32_30 = arith.constant 8 : i32
        %54 = arith.muli %c4_i32, %c8_i32_30 : i32
        %55 = tpu.assume_multiple %54, 8 : i32
        %56 = arith.index_cast %55 : i32 to index
        %c0_31 = arith.constant 0 : index
        %57 = vector.load %arg17[%56, %c0_31] : memref<64x384xf32, #tpu.memory_space<vmem>>, vector<8x384xf32>
        %c0_32 = arith.constant 0 : index
        %c0_33 = arith.constant 0 : index
        %58 = vector.load %arg19[%c0_32, %c0_33] : memref<8x128xf32, #tpu.memory_space<vmem>>, vector<8x128xf32>
        %59 = arith.truncf %58 : vector<8x128xf32> to vector<8x128xbf16>
        %cst_34 = arith.constant dense<0.000000e+00> : vector<8x384xf32>
        %60 = tpu.matmul %59, %20, %cst_34 {dimension_numbers = #tpu.dot_dimension_numbers<[1], [0], [0], [1], [0, 0, 1, 1], [], []>} : vector<8x128xbf16>, vector<128x384xbf16>, vector<8x384xf32> -> vector<8x384xf32>
        %61 = vector.broadcast %21 : vector<1x384xf32> to vector<8x384xf32>
        %62 = arith.addf %60, %61 : vector<8x384xf32>
        %63 = vector.extract_strided_slice %57 {offsets = [0, 0], sizes = [8, 128], strides = [1, 1]} : vector<8x384xf32> to vector<8x128xf32>
        %64 = vector.extract_strided_slice %62 {offsets = [0, 0], sizes = [8, 128], strides = [1, 1]} : vector<8x384xf32> to vector<8x128xf32>
        %65 = arith.addf %63, %64 : vector<8x128xf32>
        %66 = arith.negf %65 : vector<8x128xf32>
        %67 = math.exp %66 : vector<8x128xf32>
        %cst_35 = arith.constant 1.000000e+00 : f32
        %68 = vector.broadcast %cst_35 : f32 to vector<8x128xf32>
        %69 = arith.addf %68, %67 : vector<8x128xf32>
        %70 = arith.divf %68, %69 : vector<8x128xf32>
        %71 = vector.extract_strided_slice %57 {offsets = [0, 128], sizes = [8, 128], strides = [1, 1]} : vector<8x384xf32> to vector<8x128xf32>
        %72 = vector.extract_strided_slice %62 {offsets = [0, 128], sizes = [8, 128], strides = [1, 1]} : vector<8x384xf32> to vector<8x128xf32>
        %73 = arith.addf %71, %72 : vector<8x128xf32>
        %74 = arith.negf %73 : vector<8x128xf32>
        %75 = math.exp %74 : vector<8x128xf32>
        %cst_36 = arith.constant 1.000000e+00 : f32
        %76 = vector.broadcast %cst_36 : f32 to vector<8x128xf32>
        %77 = arith.addf %76, %75 : vector<8x128xf32>
        %78 = arith.divf %76, %77 : vector<8x128xf32>
        %79 = vector.extract_strided_slice %57 {offsets = [0, 256], sizes = [8, 128], strides = [1, 1]} : vector<8x384xf32> to vector<8x128xf32>
        %80 = vector.extract_strided_slice %62 {offsets = [0, 256], sizes = [8, 128], strides = [1, 1]} : vector<8x384xf32> to vector<8x128xf32>
        %81 = arith.mulf %70, %80 : vector<8x128xf32>
        %82 = arith.addf %79, %81 : vector<8x128xf32>
        %83 = math.tanh %82 : vector<8x128xf32>
        %cst_37 = arith.constant 1.000000e+00 : f32
        %84 = vector.broadcast %cst_37 : f32 to vector<8x128xf32>
        %85 = arith.subf %84, %78 : vector<8x128xf32>
        %86 = arith.mulf %85, %83 : vector<8x128xf32>
        %87 = arith.mulf %78, %58 : vector<8x128xf32>
        %88 = arith.addf %86, %87 : vector<8x128xf32>
        %89 = vector.broadcast %38 : i32 to vector<8x1xi32>
        %90 = arith.cmpi slt, %89, %19 : vector<8x1xi32>
        %91 = vector.shape_cast %90 : vector<8x1xi1> to vector<8x1xi1>
        %92 = vector.broadcast %91 : vector<8x1xi1> to vector<8x128xi1>
        %93 = arith.select %92, %88, %58 : vector<8x128xi1>, vector<8x128xf32>
        %c0_38 = arith.constant 0 : index
        %c0_39 = arith.constant 0 : index
        %94 = vector.load %arg19[%c0_38, %c0_39] : memref<8x128xf32, #tpu.memory_space<vmem>>, vector<8x128xf32>
        tpu.vector_store %arg19[%c0_38, %c0_39], %93 {strides = array<i32>} : memref<8x128xf32, #tpu.memory_space<vmem>>, vector<8x128xf32>,
        %cst_40 = arith.constant 0.000000e+00 : f32
        %95 = vector.shape_cast %90 : vector<8x1xi1> to vector<8x1xi1>
        %96 = vector.broadcast %95 : vector<8x1xi1> to vector<8x128xi1>
        %97 = vector.broadcast %cst_40 : f32 to vector<8x128xf32>
        %98 = arith.select %96, %88, %97 : vector<8x128xi1>, vector<8x128xf32>
        %99 = arith.truncf %98 : vector<8x128xf32> to vector<8x128xbf16>
        %c5_i32_41 = arith.constant 5 : i32
        %c0_i32_42 = arith.constant 0 : i32
        %100 = arith.cmpi eq, %c5_i32_41, %c0_i32_42 : i32
        %c1_i32_43 = arith.constant 1 : i32
        %101 = arith.select %100, %c1_i32_43, %c5_i32_41 : i32
        %102 = arith.remsi %38, %101 : i32
        %c0_i32_44 = arith.constant 0 : i32
        %103 = arith.cmpi ne, %102, %c0_i32_44 : i32
        %c0_i32_45 = arith.constant 0 : i32
        %104 = arith.cmpi slt, %102, %c0_i32_45 : i32
        %c0_i32_46 = arith.constant 0 : i32
        %105 = arith.cmpi slt, %101, %c0_i32_46 : i32
        %106 = arith.xori %104, %105 : i1
        %107 = arith.andi %106, %103 : i1
        %108 = arith.addi %102, %101 : i32
        %109 = arith.select %107, %108, %102 : i32
        %110 = arith.index_cast %109 : i32 to index
        %c0_47 = arith.constant 0 : index
        %c0_48 = arith.constant 0 : index
        %111 = vector.load %arg18[%110, %c0_47, %c0_48] : memref<5x8x128xbf16, #tpu.memory_space<vmem>>, vector<1x8x128xbf16>
        %112 = vector.shape_cast %111 : vector<1x8x128xbf16> to vector<8x128xbf16>
        %113 = vector.shape_cast %99 : vector<8x128xbf16> to vector<1x8x128xbf16>
        tpu.vector_store %arg18[%110, %c0_47, %c0_48], %113 {strides = array<i32>} : memref<5x8x128xbf16, #tpu.memory_space<vmem>>, vector<1x8x128xbf16>,
      } else {
      }
      %c5_i32 = arith.constant 5 : i32
      %42 = arith.addi %0, %c5_i32 : i32
      %43 = arith.cmpi slt, %42, %1 : i32
      %44 = arith.extui %43 : i1 to i32
      %c0_i32_26 = arith.constant 0 : i32
      %45 = arith.cmpi ne, %44, %c0_i32_26 : i32
      scf.if %45 {
        %c8_i32_30 = arith.constant 8 : i32
        %54 = arith.muli %c5_i32, %c8_i32_30 : i32
        %55 = tpu.assume_multiple %54, 8 : i32
        %56 = arith.index_cast %55 : i32 to index
        %c0_31 = arith.constant 0 : index
        %57 = vector.load %arg17[%56, %c0_31] : memref<64x384xf32, #tpu.memory_space<vmem>>, vector<8x384xf32>
        %c0_32 = arith.constant 0 : index
        %c0_33 = arith.constant 0 : index
        %58 = vector.load %arg19[%c0_32, %c0_33] : memref<8x128xf32, #tpu.memory_space<vmem>>, vector<8x128xf32>
        %59 = arith.truncf %58 : vector<8x128xf32> to vector<8x128xbf16>
        %cst_34 = arith.constant dense<0.000000e+00> : vector<8x384xf32>
        %60 = tpu.matmul %59, %20, %cst_34 {dimension_numbers = #tpu.dot_dimension_numbers<[1], [0], [0], [1], [0, 0, 1, 1], [], []>} : vector<8x128xbf16>, vector<128x384xbf16>, vector<8x384xf32> -> vector<8x384xf32>
        %61 = vector.broadcast %21 : vector<1x384xf32> to vector<8x384xf32>
        %62 = arith.addf %60, %61 : vector<8x384xf32>
        %63 = vector.extract_strided_slice %57 {offsets = [0, 0], sizes = [8, 128], strides = [1, 1]} : vector<8x384xf32> to vector<8x128xf32>
        %64 = vector.extract_strided_slice %62 {offsets = [0, 0], sizes = [8, 128], strides = [1, 1]} : vector<8x384xf32> to vector<8x128xf32>
        %65 = arith.addf %63, %64 : vector<8x128xf32>
        %66 = arith.negf %65 : vector<8x128xf32>
        %67 = math.exp %66 : vector<8x128xf32>
        %cst_35 = arith.constant 1.000000e+00 : f32
        %68 = vector.broadcast %cst_35 : f32 to vector<8x128xf32>
        %69 = arith.addf %68, %67 : vector<8x128xf32>
        %70 = arith.divf %68, %69 : vector<8x128xf32>
        %71 = vector.extract_strided_slice %57 {offsets = [0, 128], sizes = [8, 128], strides = [1, 1]} : vector<8x384xf32> to vector<8x128xf32>
        %72 = vector.extract_strided_slice %62 {offsets = [0, 128], sizes = [8, 128], strides = [1, 1]} : vector<8x384xf32> to vector<8x128xf32>
        %73 = arith.addf %71, %72 : vector<8x128xf32>
        %74 = arith.negf %73 : vector<8x128xf32>
        %75 = math.exp %74 : vector<8x128xf32>
        %cst_36 = arith.constant 1.000000e+00 : f32
        %76 = vector.broadcast %cst_36 : f32 to vector<8x128xf32>
        %77 = arith.addf %76, %75 : vector<8x128xf32>
        %78 = arith.divf %76, %77 : vector<8x128xf32>
        %79 = vector.extract_strided_slice %57 {offsets = [0, 256], sizes = [8, 128], strides = [1, 1]} : vector<8x384xf32> to vector<8x128xf32>
        %80 = vector.extract_strided_slice %62 {offsets = [0, 256], sizes = [8, 128], strides = [1, 1]} : vector<8x384xf32> to vector<8x128xf32>
        %81 = arith.mulf %70, %80 : vector<8x128xf32>
        %82 = arith.addf %79, %81 : vector<8x128xf32>
        %83 = math.tanh %82 : vector<8x128xf32>
        %cst_37 = arith.constant 1.000000e+00 : f32
        %84 = vector.broadcast %cst_37 : f32 to vector<8x128xf32>
        %85 = arith.subf %84, %78 : vector<8x128xf32>
        %86 = arith.mulf %85, %83 : vector<8x128xf32>
        %87 = arith.mulf %78, %58 : vector<8x128xf32>
        %88 = arith.addf %86, %87 : vector<8x128xf32>
        %89 = vector.broadcast %42 : i32 to vector<8x1xi32>
        %90 = arith.cmpi slt, %89, %19 : vector<8x1xi32>
        %91 = vector.shape_cast %90 : vector<8x1xi1> to vector<8x1xi1>
        %92 = vector.broadcast %91 : vector<8x1xi1> to vector<8x128xi1>
        %93 = arith.select %92, %88, %58 : vector<8x128xi1>, vector<8x128xf32>
        %c0_38 = arith.constant 0 : index
        %c0_39 = arith.constant 0 : index
        %94 = vector.load %arg19[%c0_38, %c0_39] : memref<8x128xf32, #tpu.memory_space<vmem>>, vector<8x128xf32>
        tpu.vector_store %arg19[%c0_38, %c0_39], %93 {strides = array<i32>} : memref<8x128xf32, #tpu.memory_space<vmem>>, vector<8x128xf32>,
        %cst_40 = arith.constant 0.000000e+00 : f32
        %95 = vector.shape_cast %90 : vector<8x1xi1> to vector<8x1xi1>
        %96 = vector.broadcast %95 : vector<8x1xi1> to vector<8x128xi1>
        %97 = vector.broadcast %cst_40 : f32 to vector<8x128xf32>
        %98 = arith.select %96, %88, %97 : vector<8x128xi1>, vector<8x128xf32>
        %99 = arith.truncf %98 : vector<8x128xf32> to vector<8x128xbf16>
        %c5_i32_41 = arith.constant 5 : i32
        %c0_i32_42 = arith.constant 0 : i32
        %100 = arith.cmpi eq, %c5_i32_41, %c0_i32_42 : i32
        %c1_i32_43 = arith.constant 1 : i32
        %101 = arith.select %100, %c1_i32_43, %c5_i32_41 : i32
        %102 = arith.remsi %42, %101 : i32
        %c0_i32_44 = arith.constant 0 : i32
        %103 = arith.cmpi ne, %102, %c0_i32_44 : i32
        %c0_i32_45 = arith.constant 0 : i32
        %104 = arith.cmpi slt, %102, %c0_i32_45 : i32
        %c0_i32_46 = arith.constant 0 : i32
        %105 = arith.cmpi slt, %101, %c0_i32_46 : i32
        %106 = arith.xori %104, %105 : i1
        %107 = arith.andi %106, %103 : i1
        %108 = arith.addi %102, %101 : i32
        %109 = arith.select %107, %108, %102 : i32
        %110 = arith.index_cast %109 : i32 to index
        %c0_47 = arith.constant 0 : index
        %c0_48 = arith.constant 0 : index
        %111 = vector.load %arg18[%110, %c0_47, %c0_48] : memref<5x8x128xbf16, #tpu.memory_space<vmem>>, vector<1x8x128xbf16>
        %112 = vector.shape_cast %111 : vector<1x8x128xbf16> to vector<8x128xbf16>
        %113 = vector.shape_cast %99 : vector<8x128xbf16> to vector<1x8x128xbf16>
        tpu.vector_store %arg18[%110, %c0_47, %c0_48], %113 {strides = array<i32>} : memref<5x8x128xbf16, #tpu.memory_space<vmem>>, vector<1x8x128xbf16>,
      } else {
      }
      %c6_i32 = arith.constant 6 : i32
      %46 = arith.addi %0, %c6_i32 : i32
      %47 = arith.cmpi slt, %46, %1 : i32
      %48 = arith.extui %47 : i1 to i32
      %c0_i32_27 = arith.constant 0 : i32
      %49 = arith.cmpi ne, %48, %c0_i32_27 : i32
      scf.if %49 {
        %c8_i32_30 = arith.constant 8 : i32
        %54 = arith.muli %c6_i32, %c8_i32_30 : i32
        %55 = tpu.assume_multiple %54, 8 : i32
        %56 = arith.index_cast %55 : i32 to index
        %c0_31 = arith.constant 0 : index
        %57 = vector.load %arg17[%56, %c0_31] : memref<64x384xf32, #tpu.memory_space<vmem>>, vector<8x384xf32>
        %c0_32 = arith.constant 0 : index
        %c0_33 = arith.constant 0 : index
        %58 = vector.load %arg19[%c0_32, %c0_33] : memref<8x128xf32, #tpu.memory_space<vmem>>, vector<8x128xf32>
        %59 = arith.truncf %58 : vector<8x128xf32> to vector<8x128xbf16>
        %cst_34 = arith.constant dense<0.000000e+00> : vector<8x384xf32>
        %60 = tpu.matmul %59, %20, %cst_34 {dimension_numbers = #tpu.dot_dimension_numbers<[1], [0], [0], [1], [0, 0, 1, 1], [], []>} : vector<8x128xbf16>, vector<128x384xbf16>, vector<8x384xf32> -> vector<8x384xf32>
        %61 = vector.broadcast %21 : vector<1x384xf32> to vector<8x384xf32>
        %62 = arith.addf %60, %61 : vector<8x384xf32>
        %63 = vector.extract_strided_slice %57 {offsets = [0, 0], sizes = [8, 128], strides = [1, 1]} : vector<8x384xf32> to vector<8x128xf32>
        %64 = vector.extract_strided_slice %62 {offsets = [0, 0], sizes = [8, 128], strides = [1, 1]} : vector<8x384xf32> to vector<8x128xf32>
        %65 = arith.addf %63, %64 : vector<8x128xf32>
        %66 = arith.negf %65 : vector<8x128xf32>
        %67 = math.exp %66 : vector<8x128xf32>
        %cst_35 = arith.constant 1.000000e+00 : f32
        %68 = vector.broadcast %cst_35 : f32 to vector<8x128xf32>
        %69 = arith.addf %68, %67 : vector<8x128xf32>
        %70 = arith.divf %68, %69 : vector<8x128xf32>
        %71 = vector.extract_strided_slice %57 {offsets = [0, 128], sizes = [8, 128], strides = [1, 1]} : vector<8x384xf32> to vector<8x128xf32>
        %72 = vector.extract_strided_slice %62 {offsets = [0, 128], sizes = [8, 128], strides = [1, 1]} : vector<8x384xf32> to vector<8x128xf32>
        %73 = arith.addf %71, %72 : vector<8x128xf32>
        %74 = arith.negf %73 : vector<8x128xf32>
        %75 = math.exp %74 : vector<8x128xf32>
        %cst_36 = arith.constant 1.000000e+00 : f32
        %76 = vector.broadcast %cst_36 : f32 to vector<8x128xf32>
        %77 = arith.addf %76, %75 : vector<8x128xf32>
        %78 = arith.divf %76, %77 : vector<8x128xf32>
        %79 = vector.extract_strided_slice %57 {offsets = [0, 256], sizes = [8, 128], strides = [1, 1]} : vector<8x384xf32> to vector<8x128xf32>
        %80 = vector.extract_strided_slice %62 {offsets = [0, 256], sizes = [8, 128], strides = [1, 1]} : vector<8x384xf32> to vector<8x128xf32>
        %81 = arith.mulf %70, %80 : vector<8x128xf32>
        %82 = arith.addf %79, %81 : vector<8x128xf32>
        %83 = math.tanh %82 : vector<8x128xf32>
        %cst_37 = arith.constant 1.000000e+00 : f32
        %84 = vector.broadcast %cst_37 : f32 to vector<8x128xf32>
        %85 = arith.subf %84, %78 : vector<8x128xf32>
        %86 = arith.mulf %85, %83 : vector<8x128xf32>
        %87 = arith.mulf %78, %58 : vector<8x128xf32>
        %88 = arith.addf %86, %87 : vector<8x128xf32>
        %89 = vector.broadcast %46 : i32 to vector<8x1xi32>
        %90 = arith.cmpi slt, %89, %19 : vector<8x1xi32>
        %91 = vector.shape_cast %90 : vector<8x1xi1> to vector<8x1xi1>
        %92 = vector.broadcast %91 : vector<8x1xi1> to vector<8x128xi1>
        %93 = arith.select %92, %88, %58 : vector<8x128xi1>, vector<8x128xf32>
        %c0_38 = arith.constant 0 : index
        %c0_39 = arith.constant 0 : index
        %94 = vector.load %arg19[%c0_38, %c0_39] : memref<8x128xf32, #tpu.memory_space<vmem>>, vector<8x128xf32>
        tpu.vector_store %arg19[%c0_38, %c0_39], %93 {strides = array<i32>} : memref<8x128xf32, #tpu.memory_space<vmem>>, vector<8x128xf32>,
        %cst_40 = arith.constant 0.000000e+00 : f32
        %95 = vector.shape_cast %90 : vector<8x1xi1> to vector<8x1xi1>
        %96 = vector.broadcast %95 : vector<8x1xi1> to vector<8x128xi1>
        %97 = vector.broadcast %cst_40 : f32 to vector<8x128xf32>
        %98 = arith.select %96, %88, %97 : vector<8x128xi1>, vector<8x128xf32>
        %99 = arith.truncf %98 : vector<8x128xf32> to vector<8x128xbf16>
        %c5_i32_41 = arith.constant 5 : i32
        %c0_i32_42 = arith.constant 0 : i32
        %100 = arith.cmpi eq, %c5_i32_41, %c0_i32_42 : i32
        %c1_i32_43 = arith.constant 1 : i32
        %101 = arith.select %100, %c1_i32_43, %c5_i32_41 : i32
        %102 = arith.remsi %46, %101 : i32
        %c0_i32_44 = arith.constant 0 : i32
        %103 = arith.cmpi ne, %102, %c0_i32_44 : i32
        %c0_i32_45 = arith.constant 0 : i32
        %104 = arith.cmpi slt, %102, %c0_i32_45 : i32
        %c0_i32_46 = arith.constant 0 : i32
        %105 = arith.cmpi slt, %101, %c0_i32_46 : i32
        %106 = arith.xori %104, %105 : i1
        %107 = arith.andi %106, %103 : i1
        %108 = arith.addi %102, %101 : i32
        %109 = arith.select %107, %108, %102 : i32
        %110 = arith.index_cast %109 : i32 to index
        %c0_47 = arith.constant 0 : index
        %c0_48 = arith.constant 0 : index
        %111 = vector.load %arg18[%110, %c0_47, %c0_48] : memref<5x8x128xbf16, #tpu.memory_space<vmem>>, vector<1x8x128xbf16>
        %112 = vector.shape_cast %111 : vector<1x8x128xbf16> to vector<8x128xbf16>
        %113 = vector.shape_cast %99 : vector<8x128xbf16> to vector<1x8x128xbf16>
        tpu.vector_store %arg18[%110, %c0_47, %c0_48], %113 {strides = array<i32>} : memref<5x8x128xbf16, #tpu.memory_space<vmem>>, vector<1x8x128xbf16>,
      } else {
      }
      %c7_i32 = arith.constant 7 : i32
      %50 = arith.addi %0, %c7_i32 : i32
      %51 = arith.cmpi slt, %50, %1 : i32
      %52 = arith.extui %51 : i1 to i32
      %c0_i32_28 = arith.constant 0 : i32
      %53 = arith.cmpi ne, %52, %c0_i32_28 : i32
      scf.if %53 {
        %c8_i32_30 = arith.constant 8 : i32
        %54 = arith.muli %c7_i32, %c8_i32_30 : i32
        %55 = tpu.assume_multiple %54, 8 : i32
        %56 = arith.index_cast %55 : i32 to index
        %c0_31 = arith.constant 0 : index
        %57 = vector.load %arg17[%56, %c0_31] : memref<64x384xf32, #tpu.memory_space<vmem>>, vector<8x384xf32>
        %c0_32 = arith.constant 0 : index
        %c0_33 = arith.constant 0 : index
        %58 = vector.load %arg19[%c0_32, %c0_33] : memref<8x128xf32, #tpu.memory_space<vmem>>, vector<8x128xf32>
        %59 = arith.truncf %58 : vector<8x128xf32> to vector<8x128xbf16>
        %cst_34 = arith.constant dense<0.000000e+00> : vector<8x384xf32>
        %60 = tpu.matmul %59, %20, %cst_34 {dimension_numbers = #tpu.dot_dimension_numbers<[1], [0], [0], [1], [0, 0, 1, 1], [], []>} : vector<8x128xbf16>, vector<128x384xbf16>, vector<8x384xf32> -> vector<8x384xf32>
        %61 = vector.broadcast %21 : vector<1x384xf32> to vector<8x384xf32>
        %62 = arith.addf %60, %61 : vector<8x384xf32>
        %63 = vector.extract_strided_slice %57 {offsets = [0, 0], sizes = [8, 128], strides = [1, 1]} : vector<8x384xf32> to vector<8x128xf32>
        %64 = vector.extract_strided_slice %62 {offsets = [0, 0], sizes = [8, 128], strides = [1, 1]} : vector<8x384xf32> to vector<8x128xf32>
        %65 = arith.addf %63, %64 : vector<8x128xf32>
        %66 = arith.negf %65 : vector<8x128xf32>
        %67 = math.exp %66 : vector<8x128xf32>
        %cst_35 = arith.constant 1.000000e+00 : f32
        %68 = vector.broadcast %cst_35 : f32 to vector<8x128xf32>
        %69 = arith.addf %68, %67 : vector<8x128xf32>
        %70 = arith.divf %68, %69 : vector<8x128xf32>
        %71 = vector.extract_strided_slice %57 {offsets = [0, 128], sizes = [8, 128], strides = [1, 1]} : vector<8x384xf32> to vector<8x128xf32>
        %72 = vector.extract_strided_slice %62 {offsets = [0, 128], sizes = [8, 128], strides = [1, 1]} : vector<8x384xf32> to vector<8x128xf32>
        %73 = arith.addf %71, %72 : vector<8x128xf32>
        %74 = arith.negf %73 : vector<8x128xf32>
        %75 = math.exp %74 : vector<8x128xf32>
        %cst_36 = arith.constant 1.000000e+00 : f32
        %76 = vector.broadcast %cst_36 : f32 to vector<8x128xf32>
        %77 = arith.addf %76, %75 : vector<8x128xf32>
        %78 = arith.divf %76, %77 : vector<8x128xf32>
        %79 = vector.extract_strided_slice %57 {offsets = [0, 256], sizes = [8, 128], strides = [1, 1]} : vector<8x384xf32> to vector<8x128xf32>
        %80 = vector.extract_strided_slice %62 {offsets = [0, 256], sizes = [8, 128], strides = [1, 1]} : vector<8x384xf32> to vector<8x128xf32>
        %81 = arith.mulf %70, %80 : vector<8x128xf32>
        %82 = arith.addf %79, %81 : vector<8x128xf32>
        %83 = math.tanh %82 : vector<8x128xf32>
        %cst_37 = arith.constant 1.000000e+00 : f32
        %84 = vector.broadcast %cst_37 : f32 to vector<8x128xf32>
        %85 = arith.subf %84, %78 : vector<8x128xf32>
        %86 = arith.mulf %85, %83 : vector<8x128xf32>
        %87 = arith.mulf %78, %58 : vector<8x128xf32>
        %88 = arith.addf %86, %87 : vector<8x128xf32>
        %89 = vector.broadcast %50 : i32 to vector<8x1xi32>
        %90 = arith.cmpi slt, %89, %19 : vector<8x1xi32>
        %91 = vector.shape_cast %90 : vector<8x1xi1> to vector<8x1xi1>
        %92 = vector.broadcast %91 : vector<8x1xi1> to vector<8x128xi1>
        %93 = arith.select %92, %88, %58 : vector<8x128xi1>, vector<8x128xf32>
        %c0_38 = arith.constant 0 : index
        %c0_39 = arith.constant 0 : index
        %94 = vector.load %arg19[%c0_38, %c0_39] : memref<8x128xf32, #tpu.memory_space<vmem>>, vector<8x128xf32>
        tpu.vector_store %arg19[%c0_38, %c0_39], %93 {strides = array<i32>} : memref<8x128xf32, #tpu.memory_space<vmem>>, vector<8x128xf32>,
        %cst_40 = arith.constant 0.000000e+00 : f32
        %95 = vector.shape_cast %90 : vector<8x1xi1> to vector<8x1xi1>
        %96 = vector.broadcast %95 : vector<8x1xi1> to vector<8x128xi1>
        %97 = vector.broadcast %cst_40 : f32 to vector<8x128xf32>
        %98 = arith.select %96, %88, %97 : vector<8x128xi1>, vector<8x128xf32>
        %99 = arith.truncf %98 : vector<8x128xf32> to vector<8x128xbf16>
        %c5_i32_41 = arith.constant 5 : i32
        %c0_i32_42 = arith.constant 0 : i32
        %100 = arith.cmpi eq, %c5_i32_41, %c0_i32_42 : i32
        %c1_i32_43 = arith.constant 1 : i32
        %101 = arith.select %100, %c1_i32_43, %c5_i32_41 : i32
        %102 = arith.remsi %50, %101 : i32
        %c0_i32_44 = arith.constant 0 : i32
        %103 = arith.cmpi ne, %102, %c0_i32_44 : i32
        %c0_i32_45 = arith.constant 0 : i32
        %104 = arith.cmpi slt, %102, %c0_i32_45 : i32
        %c0_i32_46 = arith.constant 0 : i32
        %105 = arith.cmpi slt, %101, %c0_i32_46 : i32
        %106 = arith.xori %104, %105 : i1
        %107 = arith.andi %106, %103 : i1
        %108 = arith.addi %102, %101 : i32
        %109 = arith.select %107, %108, %102 : i32
        %110 = arith.index_cast %109 : i32 to index
        %c0_47 = arith.constant 0 : index
        %c0_48 = arith.constant 0 : index
        %111 = vector.load %arg18[%110, %c0_47, %c0_48] : memref<5x8x128xbf16, #tpu.memory_space<vmem>>, vector<1x8x128xbf16>
        %112 = vector.shape_cast %111 : vector<1x8x128xbf16> to vector<8x128xbf16>
        %113 = vector.shape_cast %99 : vector<8x128xbf16> to vector<1x8x128xbf16>
        tpu.vector_store %arg18[%110, %c0_47, %c0_48], %113 {strides = array<i32>} : memref<5x8x128xbf16, #tpu.memory_space<vmem>>, vector<1x8x128xbf16>,
      } else {
      }
      %c8_i32_29 = arith.constant 8 : i32
    } else {
    }
    %c0_i32_2 = arith.constant 0 : i32
    %8 = arith.cmpi eq, %arg1, %c0_i32_2 : i32
    %9 = arith.extui %8 : i1 to i32
    %c0_i32_3 = arith.constant 0 : i32
    %10 = arith.cmpi ne, %9, %c0_i32_3 : i32
    scf.if %10 {
      %c0_4 = arith.constant 0 : index
      %c0_5 = arith.constant 0 : index
      %11 = vector.load %arg19[%c0_4, %c0_5] : memref<8x128xf32, #tpu.memory_space<vmem>>, vector<8x128xf32>
      %c0_6 = arith.constant 0 : index
      %c0_7 = arith.constant 0 : index
      %12 = vector.load %arg16[%c0_6, %c0_7] : memref<8x128xf32, #tpu.memory_space<vmem>>, vector<8x128xf32>
      tpu.vector_store %arg16[%c0_6, %c0_7], %11 {strides = array<i32>} : memref<8x128xf32, #tpu.memory_space<vmem>>, vector<8x128xf32>,
      %c5_i32 = arith.constant 5 : i32
      %13 = arith.subi %1, %c5_i32 : i32
      %c0_i32_8 = arith.constant 0 : i32
      %14 = arith.maxsi %13, %c0_i32_8 : i32
      %c0_i32_9 = arith.constant 0 : i32
      %15 = arith.addi %14, %c0_i32_9 : i32
      %c5_i32_10 = arith.constant 5 : i32
      %c0_i32_11 = arith.constant 0 : i32
      %16 = arith.cmpi eq, %c5_i32_10, %c0_i32_11 : i32
      %c1_i32 = arith.constant 1 : i32
      %17 = arith.select %16, %c1_i32, %c5_i32_10 : i32
      %18 = arith.remsi %15, %17 : i32
      %c0_i32_12 = arith.constant 0 : i32
      %19 = arith.cmpi ne, %18, %c0_i32_12 : i32
      %c0_i32_13 = arith.constant 0 : i32
      %20 = arith.cmpi slt, %18, %c0_i32_13 : i32
      %c0_i32_14 = arith.constant 0 : i32
      %21 = arith.cmpi slt, %17, %c0_i32_14 : i32
      %22 = arith.xori %20, %21 : i1
      %23 = arith.andi %22, %19 : i1
      %24 = arith.addi %18, %17 : i32
      %25 = arith.select %23, %24, %18 : i32
      %26 = arith.index_cast %25 : i32 to index
      %c0_15 = arith.constant 0 : index
      %c0_16 = arith.constant 0 : index
      %27 = vector.load %arg18[%26, %c0_15, %c0_16] : memref<5x8x128xbf16, #tpu.memory_space<vmem>>, vector<1x8x128xbf16>
      %28 = vector.shape_cast %27 : vector<1x8x128xbf16> to vector<8x128xbf16>
      %c1_i32_17 = arith.constant 1 : i32
      %29 = arith.addi %14, %c1_i32_17 : i32
      %c5_i32_18 = arith.constant 5 : i32
      %c0_i32_19 = arith.constant 0 : i32
      %30 = arith.cmpi eq, %c5_i32_18, %c0_i32_19 : i32
      %c1_i32_20 = arith.constant 1 : i32
      %31 = arith.select %30, %c1_i32_20, %c5_i32_18 : i32
      %32 = arith.remsi %29, %31 : i32
      %c0_i32_21 = arith.constant 0 : i32
      %33 = arith.cmpi ne, %32, %c0_i32_21 : i32
      %c0_i32_22 = arith.constant 0 : i32
      %34 = arith.cmpi slt, %32, %c0_i32_22 : i32
      %c0_i32_23 = arith.constant 0 : i32
      %35 = arith.cmpi slt, %31, %c0_i32_23 : i32
      %36 = arith.xori %34, %35 : i1
      %37 = arith.andi %36, %33 : i1
      %38 = arith.addi %32, %31 : i32
      %39 = arith.select %37, %38, %32 : i32
      %40 = arith.index_cast %39 : i32 to index
      %c0_24 = arith.constant 0 : index
      %c0_25 = arith.constant 0 : index
      %41 = vector.load %arg18[%40, %c0_24, %c0_25] : memref<5x8x128xbf16, #tpu.memory_space<vmem>>, vector<1x8x128xbf16>
      %42 = vector.shape_cast %41 : vector<1x8x128xbf16> to vector<8x128xbf16>
      %c2_i32 = arith.constant 2 : i32
      %43 = arith.addi %14, %c2_i32 : i32
      %c5_i32_26 = arith.constant 5 : i32
      %c0_i32_27 = arith.constant 0 : i32
      %44 = arith.cmpi eq, %c5_i32_26, %c0_i32_27 : i32
      %c1_i32_28 = arith.constant 1 : i32
      %45 = arith.select %44, %c1_i32_28, %c5_i32_26 : i32
      %46 = arith.remsi %43, %45 : i32
      %c0_i32_29 = arith.constant 0 : i32
      %47 = arith.cmpi ne, %46, %c0_i32_29 : i32
      %c0_i32_30 = arith.constant 0 : i32
      %48 = arith.cmpi slt, %46, %c0_i32_30 : i32
      %c0_i32_31 = arith.constant 0 : i32
      %49 = arith.cmpi slt, %45, %c0_i32_31 : i32
      %50 = arith.xori %48, %49 : i1
      %51 = arith.andi %50, %47 : i1
      %52 = arith.addi %46, %45 : i32
      %53 = arith.select %51, %52, %46 : i32
      %54 = arith.index_cast %53 : i32 to index
      %c0_32 = arith.constant 0 : index
      %c0_33 = arith.constant 0 : index
      %55 = vector.load %arg18[%54, %c0_32, %c0_33] : memref<5x8x128xbf16, #tpu.memory_space<vmem>>, vector<1x8x128xbf16>
      %56 = vector.shape_cast %55 : vector<1x8x128xbf16> to vector<8x128xbf16>
      %c3_i32 = arith.constant 3 : i32
      %57 = arith.addi %14, %c3_i32 : i32
      %c5_i32_34 = arith.constant 5 : i32
      %c0_i32_35 = arith.constant 0 : i32
      %58 = arith.cmpi eq, %c5_i32_34, %c0_i32_35 : i32
      %c1_i32_36 = arith.constant 1 : i32
      %59 = arith.select %58, %c1_i32_36, %c5_i32_34 : i32
      %60 = arith.remsi %57, %59 : i32
      %c0_i32_37 = arith.constant 0 : i32
      %61 = arith.cmpi ne, %60, %c0_i32_37 : i32
      %c0_i32_38 = arith.constant 0 : i32
      %62 = arith.cmpi slt, %60, %c0_i32_38 : i32
      %c0_i32_39 = arith.constant 0 : i32
      %63 = arith.cmpi slt, %59, %c0_i32_39 : i32
      %64 = arith.xori %62, %63 : i1
      %65 = arith.andi %64, %61 : i1
      %66 = arith.addi %60, %59 : i32
      %67 = arith.select %65, %66, %60 : i32
      %68 = arith.index_cast %67 : i32 to index
      %c0_40 = arith.constant 0 : index
      %c0_41 = arith.constant 0 : index
      %69 = vector.load %arg18[%68, %c0_40, %c0_41] : memref<5x8x128xbf16, #tpu.memory_space<vmem>>, vector<1x8x128xbf16>
      %70 = vector.shape_cast %69 : vector<1x8x128xbf16> to vector<8x128xbf16>
      %c4_i32 = arith.constant 4 : i32
      %71 = arith.addi %14, %c4_i32 : i32
      %c5_i32_42 = arith.constant 5 : i32
      %c0_i32_43 = arith.constant 0 : i32
      %72 = arith.cmpi eq, %c5_i32_42, %c0_i32_43 : i32
      %c1_i32_44 = arith.constant 1 : i32
      %73 = arith.select %72, %c1_i32_44, %c5_i32_42 : i32
      %74 = arith.remsi %71, %73 : i32
      %c0_i32_45 = arith.constant 0 : i32
      %75 = arith.cmpi ne, %74, %c0_i32_45 : i32
      %c0_i32_46 = arith.constant 0 : i32
      %76 = arith.cmpi slt, %74, %c0_i32_46 : i32
      %c0_i32_47 = arith.constant 0 : i32
      %77 = arith.cmpi slt, %73, %c0_i32_47 : i32
      %78 = arith.xori %76, %77 : i1
      %79 = arith.andi %78, %75 : i1
      %80 = arith.addi %74, %73 : i32
      %81 = arith.select %79, %80, %74 : i32
      %82 = arith.index_cast %81 : i32 to index
      %c0_48 = arith.constant 0 : index
      %c0_49 = arith.constant 0 : index
      %83 = vector.load %arg18[%82, %c0_48, %c0_49] : memref<5x8x128xbf16, #tpu.memory_space<vmem>>, vector<1x8x128xbf16>
      %84 = vector.shape_cast %83 : vector<1x8x128xbf16> to vector<8x128xbf16>
      %85 = tpu.concatenate %28, %42, %56, %70, %84 in 1 : vector<8x128xbf16>, vector<8x128xbf16>, vector<8x128xbf16>, vector<8x128xbf16>, vector<8x128xbf16> -> vector<8x640xbf16>
      %c0_50 = arith.constant 0 : index
      %c0_51 = arith.constant 0 : index
      %86 = vector.load %arg9[%c0_50, %c0_51] : memref<640x128xbf16, #tpu.memory_space<vmem>>, vector<640x128xbf16>
      %cst = arith.constant dense<0.000000e+00> : vector<8x128xf32>
      %87 = tpu.matmul %85, %86, %cst {dimension_numbers = #tpu.dot_dimension_numbers<[1], [0], [0], [1], [0, 0, 1, 1], [], []>} : vector<8x640xbf16>, vector<640x128xbf16>, vector<8x128xf32> -> vector<8x128xf32>
      %c0_52 = arith.constant 0 : index
      %c0_53 = arith.constant 0 : index
      %88 = vector.load %arg10[%c0_52, %c0_53] : memref<1x128xf32, #tpu.memory_space<vmem>>, vector<1x128xf32>
      %89 = vector.broadcast %88 : vector<1x128xf32> to vector<8x128xf32>
      %90 = arith.addf %87, %89 : vector<8x128xf32>
      %cst_54 = arith.constant 0.000000e+00 : f32
      %91 = vector.broadcast %cst_54 : f32 to vector<8x128xf32>
      %92 = arith.maximumf %90, %91 : vector<8x128xf32>
      %93 = arith.truncf %92 : vector<8x128xf32> to vector<8x128xbf16>
      %c0_55 = arith.constant 0 : index
      %c0_56 = arith.constant 0 : index
      %c0_57 = arith.constant 0 : index
      %94 = vector.load %arg11[%c0_55, %c0_56, %c0_57] : memref<1x128x128xbf16, #tpu.memory_space<vmem>>, vector<1x128x128xbf16>
      %95 = vector.shape_cast %94 : vector<1x128x128xbf16> to vector<128x128xbf16>
      %cst_58 = arith.constant dense<0.000000e+00> : vector<8x128xf32>
      %96 = tpu.matmul %93, %95, %cst_58 {dimension_numbers = #tpu.dot_dimension_numbers<[1], [0], [0], [1], [0, 0, 1, 1], [], []>} : vector<8x128xbf16>, vector<128x128xbf16>, vector<8x128xf32> -> vector<8x128xf32>
      %c0_59 = arith.constant 0 : index
      %c0_60 = arith.constant 0 : index
      %c0_61 = arith.constant 0 : index
      %97 = vector.load %arg12[%c0_59, %c0_60, %c0_61] : memref<1x1x128xf32, #tpu.memory_space<vmem>>, vector<1x1x128xf32>
      %98 = vector.shape_cast %97 : vector<1x1x128xf32> to vector<1x128xf32>
      %99 = vector.broadcast %98 : vector<1x128xf32> to vector<8x128xf32>
      %100 = arith.addf %96, %99 : vector<8x128xf32>
      %cst_62 = arith.constant 0.000000e+00 : f32
      %101 = vector.broadcast %cst_62 : f32 to vector<8x128xf32>
      %102 = arith.maximumf %100, %101 : vector<8x128xf32>
      %103 = arith.truncf %102 : vector<8x128xf32> to vector<8x128xbf16>
      %c0_63 = arith.constant 0 : index
      %c0_64 = arith.constant 0 : index
      %104 = vector.load %arg13[%c0_63, %c0_64] : memref<128x128xbf16, #tpu.memory_space<vmem>>, vector<128x128xbf16>
      %cst_65 = arith.constant dense<0.000000e+00> : vector<8x128xf32>
      %105 = tpu.matmul %103, %104, %cst_65 {dimension_numbers = #tpu.dot_dimension_numbers<[1], [0], [0], [1], [0, 0, 1, 1], [], []>} : vector<8x128xbf16>, vector<128x128xbf16>, vector<8x128xf32> -> vector<8x128xf32>
      %c0_66 = arith.constant 0 : index
      %c0_67 = arith.constant 0 : index
      %106 = vector.load %arg14[%c0_66, %c0_67] : memref<1x128xf32, #tpu.memory_space<vmem>>, vector<1x128xf32>
      %107 = vector.broadcast %106 : vector<1x128xf32> to vector<8x128xf32>
      %108 = arith.addf %105, %107 : vector<8x128xf32>
      %c0_68 = arith.constant 0 : index
      %c0_69 = arith.constant 0 : index
      %109 = vector.load %arg15[%c0_68, %c0_69] : memref<8x128xf32, #tpu.memory_space<vmem>>, vector<8x128xf32>
      tpu.vector_store %arg15[%c0_68, %c0_69], %108 {strides = array<i32>} : memref<8x128xf32, #tpu.memory_space<vmem>>, vector<8x128xf32>,
    } else {
    }
    return
  }
  func.func @transform_0(%arg0: i32, %arg1: i32, %arg2: memref<1xi32, #tpu.memory_space<smem>>) -> (i32, i32) {
    %c0_i32 = arith.constant 0 : i32
    %c0_i32_0 = arith.constant 0 : i32
    return %arg0, %c0_i32 : i32, i32
  }
  func.func @transform_1(%arg0: i32, %arg1: i32, %arg2: memref<1xi32, #tpu.memory_space<smem>>) -> (i32, i32, i32, i32) {
    %c0_i32 = arith.constant 0 : i32
    %c0_i32_0 = arith.constant 0 : i32
    %c0_i32_1 = arith.constant 0 : i32
    return %arg1, %arg0, %c0_i32, %c0_i32_0 : i32, i32, i32, i32
  }
  func.func @transform_2(%arg0: i32, %arg1: i32, %arg2: memref<1xi32, #tpu.memory_space<smem>>) -> (i32, i32) {
    %c0_i32 = arith.constant 0 : i32
    %c0_i32_0 = arith.constant 0 : i32
    %c0_i32_1 = arith.constant 0 : i32
    return %c0_i32, %c0_i32_0 : i32, i32
  }
  func.func @transform_3(%arg0: i32, %arg1: i32, %arg2: memref<1xi32, #tpu.memory_space<smem>>) -> (i32, i32) {
    %c0_i32 = arith.constant 0 : i32
    %c0_i32_0 = arith.constant 0 : i32
    %c0_i32_1 = arith.constant 0 : i32
    return %c0_i32, %c0_i32_0 : i32, i32
  }
  func.func @transform_4(%arg0: i32, %arg1: i32, %arg2: memref<1xi32, #tpu.memory_space<smem>>) -> (i32, i32) {
    %c0_i32 = arith.constant 0 : i32
    %c0_i32_0 = arith.constant 0 : i32
    %c0_i32_1 = arith.constant 0 : i32
    return %c0_i32, %c0_i32_0 : i32, i32
  }
  func.func @transform_5(%arg0: i32, %arg1: i32, %arg2: memref<1xi32, #tpu.memory_space<smem>>) -> (i32, i32) {
    %c0_i32 = arith.constant 0 : i32
    %c0_i32_0 = arith.constant 0 : i32
    %c0_i32_1 = arith.constant 0 : i32
    return %c0_i32, %c0_i32_0 : i32, i32
  }
  func.func @transform_6(%arg0: i32, %arg1: i32, %arg2: memref<1xi32, #tpu.memory_space<smem>>) -> (i32, i32) {
    %c0_i32 = arith.constant 0 : i32
    %c0_i32_0 = arith.constant 0 : i32
    %c0_i32_1 = arith.constant 0 : i32
    return %c0_i32, %c0_i32_0 : i32, i32
  }
  func.func @transform_7(%arg0: i32, %arg1: i32, %arg2: memref<1xi32, #tpu.memory_space<smem>>) -> (i32, i32) {
    %c0_i32 = arith.constant 0 : i32
    %c0_i32_0 = arith.constant 0 : i32
    %c0_i32_1 = arith.constant 0 : i32
    return %c0_i32, %c0_i32_0 : i32, i32
  }
  func.func @transform_8(%arg0: i32, %arg1: i32, %arg2: memref<1xi32, #tpu.memory_space<smem>>) -> (i32, i32, i32) {
    %c0_i32 = arith.constant 0 : i32
    %c0_i32_0 = arith.constant 0 : i32
    %c0_i32_1 = arith.constant 0 : i32
    %c0_i32_2 = arith.constant 0 : i32
    return %c0_i32, %c0_i32_0, %c0_i32_1 : i32, i32, i32
  }
  func.func @transform_9(%arg0: i32, %arg1: i32, %arg2: memref<1xi32, #tpu.memory_space<smem>>) -> (i32, i32, i32) {
    %c0_i32 = arith.constant 0 : i32
    %c0_i32_0 = arith.constant 0 : i32
    %c0_i32_1 = arith.constant 0 : i32
    %c0_i32_2 = arith.constant 0 : i32
    return %c0_i32, %c0_i32_0, %c0_i32_1 : i32, i32, i32
  }
  func.func @transform_10(%arg0: i32, %arg1: i32, %arg2: memref<1xi32, #tpu.memory_space<smem>>) -> (i32, i32) {
    %c0_i32 = arith.constant 0 : i32
    %c0_i32_0 = arith.constant 0 : i32
    %c0_i32_1 = arith.constant 0 : i32
    return %c0_i32, %c0_i32_0 : i32, i32
  }
  func.func @transform_11(%arg0: i32, %arg1: i32, %arg2: memref<1xi32, #tpu.memory_space<smem>>) -> (i32, i32) {
    %c0_i32 = arith.constant 0 : i32
    %c0_i32_0 = arith.constant 0 : i32
    %c0_i32_1 = arith.constant 0 : i32
    return %c0_i32, %c0_i32_0 : i32, i32
  }
  func.func @transform_12(%arg0: i32, %arg1: i32, %arg2: memref<1xi32, #tpu.memory_space<smem>>) -> (i32, i32) {
    %c0_i32 = arith.constant 0 : i32
    %c0_i32_0 = arith.constant 0 : i32
    return %arg0, %c0_i32 : i32, i32
  }
  func.func @transform_13(%arg0: i32, %arg1: i32, %arg2: memref<1xi32, #tpu.memory_space<smem>>) -> (i32, i32) {
    %c0_i32 = arith.constant 0 : i32
    %c0_i32_0 = arith.constant 0 : i32
    return %arg0, %c0_i32 : i32, i32
  }
}

</mosaic_0001>

<bundles_post_ra>
// kernel: forward.1
= control target key start
LH: loop header
LB: loop body
LE: loop exit
PB: predicated region body
PF: predicated region fallthrough
CT: control target
= control target key end

     0   :  { %21 = vsyncpa [#allocation8], 0  ;;  %s4023_s0 = inlined_call_operand.<no memory space> [shape: s32[1], index: 0, kind: input, shape index: {}]   ;;  %s4024_s1 = inlined_call_operand.vmem [shape: s32[8,1], index: 1, kind: input, shape index: {}]   ;;  %s4025_s2 = inlined_call_operand.vmem [shape: bf16[1,1,64,16], index: 2, kind: input, shape index: {}]   ;;  %s4026_s3 = inlined_call_operand.vmem [shape: bf16[16,384], index: 3, kind: input, shape index: {}]   ;;  %s4027_s4 = inlined_call_operand.vmem [shape: bf16[128,384], index: 4, kind: input, shape index: {}]   ;;  %s4028_s5 = inlined_call_operand.vmem [shape: f32[1,384], index: 5, kind: input, shape index: {}]   ;;  %s4029_s6 = inlined_call_operand.vmem [shape: f32[1,384], index: 6, kind: input, shape index: {}]   ;;  %s4030_s7 = inlined_call_operand.hbm [shape: bf16[640,128], index: 7, kind: input, shape index: {}]   ;;  %s4031_s8 = inlined_call_operand.vmem [shape: f32[1,128], index: 8, kind: input, shape index: {}]   ;;  %s4032_s9 = inlined_call_operand.hbm [shape: bf16[1,128,128], index: 9, kind: input, shape index: {}]   ;;  %s4033_s10 = inlined_call_operand.vmem [shape: f32[1,1,128], index: 10, kind: input, shape index: {}]   ;;  %s4034_s11 = inlined_call_operand.hbm [shape: bf16[128,128], index: 11, kind: input, shape index: {}]   ;;  %s4035_s12 = inlined_call_operand.vmem [shape: f32[1,128], index: 12, kind: input, shape index: {}]   ;;  %s4036_s13 = inlined_call_operand.vmem [shape: f32[8,128], index: 13, kind: output, shape index: {0}]   ;;  %s4037_s14 = inlined_call_operand.vmem [shape: f32[8,128], index: 14, kind: output, shape index: {1}]  }
   0x1   :  { %22 = vsyncpa [#allocation10], 0  ;;  %s3306_s29 = smov [#allocation9]   ;;  %s3307_s15 = smov [#allocation7]  }
   0x2   :  { %s54_s30 = sshll.u32 %s3306_s29, 4  ;;  %s40_s16 = sshll.u32 %s3307_s15, 4  ;;  %s55_s30 = int_to_ptr.vmem [resolvable:$true] %s54_s30  ;;  %s3413_s16 = int_to_ptr.vmem [resolvable:$true] %s40_s16 }
   0x3   :  { %s3236_s19 = scalar_lea.hbm %s4032_s9, 1024 }
   0x4   :  { %p3237_p0 = scmp.ne.s32.totalorder %s4032_s9, %s3236_s19  ;;  %p3240_p1 = scmp.lt.u32.totalorder %s3236_s19, %s4032_s9 }
   0x6   :  { %p3242_p2 = pnand %p3240_p1, %p3237_p0 }
   0x8   :  { %3245 = shalt.err (!%p3242_p2)
}
   0x9   :  { %s3246_s24 = scalar_lea.vmem %s55_s30, 1024  ;;  %p3251_p4 = scmp.lt.s32.totalorder %s55_s30, %s55_s30 }
   0xa   :  { %p3247_p3 = scmp.ne.s32.totalorder %s55_s30, %s3246_s24  ;;  %p3252_p5 = scmp.lt.s32.totalorder %s3246_s24, %s3246_s24 }
   0xc   :  { %p3253_p6 = por %p3252_p5, %p3251_p4 }
   0xe   :  { %p3254_p7 = pnand %p3253_p6, %p3247_p3 }
  0x10   :  { %3257 = shalt.err (!%p3254_p7)
}
  0x11   :  { %s3308_s25 = smov 64   ;;  %s3309_s26 = smov 4  }
  0x12   :  { %60 = dma.hbm_to_vmem [thread:$0]  %s4032_s9, 1024, %s55_s30, [#allocation10], %s3308_s25, %s3308_s25, %s3309_s26  }
  0x13   :  { %s3258_s17 = scalar_lea.hbm %s4030_s7, 5120 }
  0x14   :  { %p3259_p8 = scmp.ne.s32.totalorder %s4030_s7, %s3258_s17  ;;  %p3262_p9 = scmp.lt.u32.totalorder %s3258_s17, %s4030_s7 }
  0x16   :  { %p3264_p10 = pnand %p3262_p9, %p3259_p8 }
  0x18   :  { %3267 = shalt.err (!%p3264_p10)
}
  0x19   :  { %s3268_s22 = scalar_lea.vmem %s3413_s16, 5120  ;;  %p3273_p12 = scmp.lt.s32.totalorder %s3413_s16, %s3413_s16 }
  0x1a   :  { %p3269_p11 = scmp.ne.s32.totalorder %s3413_s16, %s3268_s22  ;;  %p3274_p13 = scmp.lt.s32.totalorder %s3268_s22, %s3268_s22 }
  0x1c   :  { %p3275_p0 = por %p3274_p13, %p3273_p12 }
  0x1e   :  { %p3276_p1 = pnand %p3275_p0, %p3269_p11 }
  0x20   :  { %3279 = shalt.err (!%p3276_p1)
}
  0x21   :  { %46 = dma.hbm_to_vmem [thread:$0]  %s4030_s7, 5120, %s3413_s16, [#allocation8], %s3308_s25, %s3308_s25, %s3309_s26  }
  0x22   :  { %s3310_s23 = smov [#allocation11]   ;;  %s3280_s29 = scalar_lea.hbm %s4034_s11, 1024 }
  0x23   :  { %s68_s24 = sshll.u32 %s3310_s23, 4  ;;  %p3281_p2 = scmp.ne.s32.totalorder %s4034_s11, %s3280_s29  ;;  %s69_s24 = int_to_ptr.vmem [resolvable:$true] %s68_s24 }
  0x24   :  { %p3284_p3 = scmp.lt.u32.totalorder %s3280_s29, %s4034_s11 }
  0x26   :  { %p3286_p4 = pnand %p3284_p3, %p3281_p2 }
  0x28   :  { %3289 = shalt.err (!%p3286_p4)
}
  0x29   :  { %s3290_s20 = scalar_lea.vmem %s69_s24, 1024  ;;  %p3295_p6 = scmp.lt.s32.totalorder %s69_s24, %s69_s24 }
  0x2a   :  { %p3291_p5 = scmp.ne.s32.totalorder %s69_s24, %s3290_s20  ;;  %p3296_p7 = scmp.lt.s32.totalorder %s3290_s20, %s3290_s20 }
  0x2c   :  { %p3297_p8 = por %p3296_p7, %p3295_p6 }
  0x2e   :  { %p3298_p9 = pnand %p3297_p8, %p3291_p5 }
  0x30   :  { %3301 = shalt.err (!%p3298_p9)
}
  0x31   :  { %74 = dma.hbm_to_vmem [thread:$0]  %s4034_s11, 1024, %s69_s24, [#allocation10], %s3308_s25, %s3308_s25, %s3309_s26  }
  0x32   :  { %3302 = dma.done.wait [#allocation8], 5120  }
  0x33   :  { %3303 = vsyncadd [#allocation8], 4294962176 }
  0x34   :  { %3304 = dma.done.wait [#allocation10], 2048  }
  0x35   :  { %3305 = vsyncadd [#allocation10], 4294965248  ;;  %v3311_v0 = vmov 0.0   ;;  %v3312_v1 = vmov 0   ;;  %p2462_p10 = scmp.le.s32.totalorder %s4023_s0, 0 }
  0x36   :  { %93 = vst [vmem:[#allocation4] sm:$0xff] %v3311_v0  ;;  %94 = vst [vmem:[#allocation3] sm:$0xf] %v3312_v1  ;;  %v3043_v2 = vld [vmem:[%s4026_s3 + $0x4] ss:$12 sps:$4 sm:$0xff] (!%p2462_p10)   ;;  %v3313_v4 = vmov (!%p2462_p10), 0   ;;  %v117_v39 = vlaneseq (!%p2462_p10) }
  0x37   :  { %95 = vst [vmem:[#allocation3 + $0x4] sm:$0xf] %v3312_v1  ;;  %96 = vst [vmem:[#allocation3 + $0x8] sm:$0xf] %v3312_v1  ;;  %102 = sbr.rel (%p2462_p10) target bundleno = 2417 (0x971), region = 69  ;;  %213 = vmatprep.mubr.bf16.mxu0 (!%p2462_p10), %v3313_v4  ;;  %3042 = vset.pattern.permute.xlu0 (!%p2462_p10), %v3313_v4  ;;  %v3046_v5 = vld [vmem:[%s4025_s2] sm:$0xff] (!%p2462_p10)  }
  0x38   :  { %97 = vst [vmem:[#allocation3 + $0xc] sm:$0xf] %v3312_v1  ;;  %98 = vst [vmem:[#allocation3 + $0x10] sm:$0xf] %v3312_v1  ;;  %v3045_v3 = vld [vmem:[%s4026_s3] ss:$12 sps:$4 sm:$0xff] (!%p2462_p10)   ;;  %181 = vmatprep.subr.bf16.mxu0 (!%p2462_p10), %v3043_v2 }
  0x39   :  { %182 = vmatpush1.bf16.msra.mxu0 (!%p2462_p10), %v3045_v3  ;;  %vm168_vm0 = vcmask (!%p2462_p10), 130048   ;;  %v3483_v6 = vld [vmem:[%s4027_s4] ss:$12 sps:$4 sm:$0xff] (!%p2462_p10)   ;;  %v3488_v7 = vld [vmem:[%s4027_s4 + $0x4] ss:$12 sps:$4 sm:$0xff] (!%p2462_p10)   ;;  %v3314_v19 = vmov (!%p2462_p10), 0.0  }
  0x3a   :  { %v3493_v8 = vld [vmem:[%s4027_s4 + $0x1c] ss:$12 sps:$4 sm:$0xff] (!%p2462_p10)   ;;  %2781 = vmatprep.mubr.msk.bf16.mxu1 (!%p2462_p10), %vm168_vm0, %v3046_v5  ;;  %529 = vmatprep.subr.bf16.mxu0 (!%p2462_p10), %v3488_v7  ;;  %v3502_v9 = vld [vmem:[%s4027_s4 + $0x18] ss:$12 sps:$4 sm:$0xff] (!%p2462_p10)   ;;  %v3509_v10 = vld [vmem:[%s4027_s4 + $0x34] ss:$12 sps:$4 sm:$0xff] (!%p2462_p10)  }
  0x3b   :  { %v3053_v11 = vld [vmem:[%s4025_s2 + $0x8] sm:$0xff] (!%p2462_p10)   ;;  %v3518_v12 = vld [vmem:[%s4027_s4 + $0x30] ss:$12 sps:$4 sm:$0xff] (!%p2462_p10)   ;;  %v3576_v23 = vld [vmem:[%s4027_s4 + $0x78] ss:$12 sps:$4 sm:$0xff] (!%p2462_p10)   ;;  %vm3315_vm2 = vmmov (!%p2462_p10), 0  }
  0x3c   :  { %2470 = vmatmul.mubr.msk.bf16.vlgmr.msra.gmra.mrb[0].mxu0 (!%p2462_p10), %vm168_vm0, %v3046_v5  ;;  %v3524_v13 = vld [vmem:[%s4027_s4 + $0x4c] ss:$12 sps:$4 sm:$0xff] (!%p2462_p10)   ;;  %v3067_v14 = vld [vmem:[%s4026_s3 + $0x8] ss:$12 sps:$4 sm:$0xff] (!%p2462_p10)   ;;  %v3541_v16 = vld [vmem:[%s4027_s4 + $0x64] ss:$12 sps:$4 sm:$0xff] (!%p2462_p10)  }
  0x3d   :  { %530 = vmatpush1.bf16.msra.mxu0 (!%p2462_p10), %v3483_v6  ;;  %223 = vmatprep.mubr.bf16.mxu0 (!%p2462_p10), %v3313_v4  ;;  %v3534_v15 = vld [vmem:[%s4027_s4 + $0x48] ss:$12 sps:$4 sm:$0xff] (!%p2462_p10)   ;;  %v3555_v20 = vld [vmem:[%s4027_s4 + $0x60] ss:$12 sps:$4 sm:$0xff] (!%p2462_p10)   ;;  %v3589_v25 = vld [vmem:[%s4027_s4 + $0x38] ss:$12 sps:$4 sm:$0xff] (!%p2462_p10)  }
  0x3e   :  { %531 = vmatprep.subr.bf16.mxu0 %v3493_v8  ;;  %2779 = vmatprep.subr.bf16.mxu1 %v3067_v14  ;;  %v3546_v17 = vld [vmem:[%s4027_s4 + $0x8] ss:$12 sps:$4 sm:$0xff]   ;;  %v3568_v22 = vld [vmem:[%s4027_s4 + $0x20] ss:$12 sps:$4 sm:$0xff]   ;;  %v3068_v27 = vld [vmem:[%s4025_s2 + $0x18] sm:$0xff]   ;;  %v3659_v40 = vshrl.u32 %v117_v39, 7 }
  0x3f   :  { %2780 = vmatpush3.bf16.msra.mxu1 %v3067_v14  ;;  %v3060_v18 = vld [vmem:[%s4025_s2 + $0x10] sm:$0xff]   ;;  %v3561_v21 = vld [vmem:[%s4027_s4 + $0x7c] ss:$12 sps:$4 sm:$0xff]   ;;  %v3594_v26 = vld [vmem:[%s4024_s1] sm:$0xff]  ;;  %p2506_p11 = scmp.le.s32.totalorder %s4023_s0, 1 }
  0x40   :  { %2789 = vmatprep.subr.bf16.mxu1 %v3314_v19  ;;  %v3583_v24 = vld [vmem:[%s4027_s4 + $0x94] ss:$12 sps:$4 sm:$0xff]   ;;  %vm2504_vm1 = vcmp.gt.s32.totalorder %v3594_v26, 0  ;;  %v3604_v28 = vld [vmem:[%s4027_s4 + $0x90] ss:$12 sps:$4 sm:$0xff]   ;;  %v119_v41 = vsub.s32 0, %v3659_v40 }
  0x41   :  { %532 = vmatpush1.bf16.msra.mxu0 %v3502_v9  ;;  %v3610_v29 = vld [vmem:[%s4027_s4 + $0xac] ss:$12 sps:$4 sm:$0xff]   ;;  %v3617_v30 = vld [vmem:[%s4027_s4 + $0x50] ss:$12 sps:$4 sm:$0xff]   ;;  %v633_v31 = vsel %vm2504_vm1, 1, %v3313_v4  ;;  %v123_v43 = vsub.s32 1, %v3659_v40 }
  0x42   :  { %533 = vmatprep.subr.bf16.mxu0 %v3509_v10  ;;  %2782 = vmatmul.mubr.msk.bf16.vlgmr.msra.gmra.mrb[0].mxu1 %vm168_vm0, %v3053_v11  ;;  %v3625_v32 = vld [vmem:[%s4027_s4 + $0xa8] ss:$12 sps:$4 sm:$0xff]   ;;  %v3644_v36 = vld [vmem:[%s4027_s4 + $0x80] ss:$12 sps:$4 sm:$0xff]   ;;  %v3650_v37 = vld [vmem:[%s4027_s4 + $0x98] ss:$12 sps:$4 sm:$0xff]  }
  0x43   :  { %2790 = vmatpush3.bf16.msra.mxu1 %v3546_v17  ;;  %2785 = vmatprep.mubr.msk.bf16.mxu1 %vm168_vm0, %v3060_v18  ;;  %v3628_v33 = vld [vmem:[#allocation4] sm:$0xff]  ;;  %v3656_v38 = vld [vmem:[%s4027_s4 + $0xb0] ss:$12 sps:$4 sm:$0xff]   ;;  %v115_v42 = vld [vmem:[%s4028_s5] sm:$0x7]  ;;  %v127_v54 = vsub.s32 2, %v3659_v40 }
  0x44   :  { %2471 = vmatmul.mubr.msk.bf16.gmra.mrb[4].mxu0 %vm168_vm0, %v3053_v11  ;;  %2791 = vmatprep.subr.bf16.mxu1 %v3314_v19  ;;  %v3635_v34 = vld [vmem:[%s4027_s4 + $0x68] ss:$12 sps:$4 sm:$0xff]   ;;  %v384_v35 = vpack.c.bf16 %v3628_v33, %v3628_v33  ;;  %v3668_v44 = vrot.slane %v115_v42, %v119_v41  ;;  %v3672_v45 = vrot.slane %v115_v42, %v123_v43  ;;  %vm2509_vm4 = vcmp.gt.s32.totalorder (!%p2506_p11), %v3594_v26, 1 }
  0x45   :  { %534 = vmatpush1.bf16.msra.mxu0 %v3518_v12  ;;  %233 = vmatprep.mubr.bf16.mxu0 %v3313_v4  ;;  %v128_v62 = vrot.slane %v115_v42, %v127_v54  ;;  %vm3318_vm5 = vmmov (!%p2506_p11), 0  }
  0x46   :  { %535 = vmatprep.subr.bf16.mxu0 %v3524_v13  ;;  %635 = vperm.xlu0 %3042, %v633_v31  }
  0x47   :  { %2792 = vmatpush3.bf16.msra.mxu1 %v3568_v22 }
  0x48   :  { %2793 = vmatprep.subr.bf16.mxu1 %v3314_v19 }
  0x49   :  { %536 = vmatpush1.bf16.msra.mxu0 %v3534_v15 }
  0x4a   :  { %537 = vmatprep.subr.bf16.mxu0 %v3541_v16  ;;  %2786 = vmatmul.mubr.msk.bf16.gmra.mrb[4].mxu1 %vm168_vm0, %v3068_v27 }
  0x4b   :  { %2794 = vmatpush3.bf16.msra.mxu1 %v3589_v25  ;;  %2805 = vmatprep.mubr.msk.bf16.mxu1 %vm3315_vm2, %v3314_v19 }
  0x4c   :  { %2472 = vmatmul.mubr.msk.bf16.gmra.mrb[8].mxu0 %vm168_vm0, %v3060_v18  ;;  %2795 = vmatprep.subr.bf16.mxu1 %v3314_v19 }
  0x4d   :  { %538 = vmatpush1.bf16.msra.mxu0 %v3555_v20  ;;  %243 = vmatprep.mubr.bf16.mxu0 %v3313_v4 }
  0x4e   :  { %539 = vmatprep.subr.bf16.mxu0 %v3561_v21 }
  0x4f   :  { %2796 = vmatpush3.bf16.msra.mxu1 %v3617_v30 }
  0x50   :  { %2797 = vmatprep.subr.bf16.mxu1 %v3314_v19 }
  0x51   :  { %540 = vmatpush1.bf16.msra.mxu0 %v3576_v23 }
  0x52   :  { %541 = vmatprep.subr.bf16.mxu0 %v3583_v24 }
  0x53   :  { %2798 = vmatpush3.bf16.msra.mxu1 %v3635_v34 }
  0x54   :  { %2473 = vmatmul.mubr.msk.bf16.gmra.mrb[12].mxu0 %vm168_vm0, %v3068_v27  ;;  %2799 = vmatprep.subr.bf16.mxu1 %v3314_v19 }
  0x55   :  { %542 = vmatpush1.bf16.msra.mxu0 %v3604_v28  ;;  %561 = vmatprep.mubr.bf16.mxu0 %v3313_v4 }
  0x56   :  { %543 = vmatprep.subr.bf16.mxu0 %v3610_v29 }
  0x57   :  { %2800 = vmatpush3.bf16.msra.mxu1 %v3644_v36 }
  0x58   :  { %2801 = vmatprep.subr.bf16.mxu1 %v3314_v19 }
  0x59   :  { %544 = vmatpush1.bf16.msra.mxu0 %v3625_v32 }
  0x5a   :  { %671 = vmatprep.subr.bf16.mxu0 (!%p2506_p11), %v3488_v7 }
  0x5b   :  { %2802 = vmatpush3.bf16.msra.mxu1 %v3650_v37 }
  0x5c   :  { %562 = vmatmul.mubr.bf16.vlgmr.msra.gmra.mrb[16].mxu0 %v384_v35  ;;  %2803 = vmatprep.subr.bf16.mxu1 %v3314_v19 }
  0x5d   :  { %672 = vmatpush1.bf16.msra.mxu0 (!%p2506_p11), %v3483_v6 }
  0x5e   :  { %673 = vmatprep.subr.bf16.mxu0 (!%p2506_p11), %v3493_v8 }
  0x5f   :  { %2804 = vmatpush3.bf16.msra.mxu1 %v3656_v38 }
  0x61   :  { %674 = vmatpush1.bf16.msra.mxu0 (!%p2506_p11), %v3502_v9 }
  0x62   :  { %2806 = vmatmul.mubr.bf16.vlgmr.msra.gmra.mrb[8].mxu1 %v384_v35  ;;  %675 = vmatprep.subr.bf16.mxu0 (!%p2506_p11), %v3509_v10 }
  0x65   :  { %676 = vmatpush1.bf16.msra.mxu0 (!%p2506_p11), %v3518_v12 }
  0x66   :  { %677 = vmatprep.subr.bf16.mxu0 (!%p2506_p11), %v3524_v13 }
  0x69   :  { %678 = vmatpush1.bf16.msra.mxu0 (!%p2506_p11), %v3534_v15 }
  0x6a   :  { %679 = vmatprep.subr.bf16.mxu0 (!%p2506_p11), %v3541_v16 }
  0x6d   :  { %680 = vmatpush1.bf16.msra.mxu0 (!%p2506_p11), %v3555_v20 }
  0x6e   :  { %681 = vmatprep.subr.bf16.mxu0 (!%p2506_p11), %v3561_v21 }
  0x71   :  { %682 = vmatpush1.bf16.msra.mxu0 (!%p2506_p11), %v3576_v23 }
  0x72   :  { %683 = vmatprep.subr.bf16.mxu0 (!%p2506_p11), %v3583_v24 }
  0x75   :  { %684 = vmatpush1.bf16.msra.mxu0 (!%p2506_p11), %v3604_v28 }
  0x76   :  { %685 = vmatprep.subr.bf16.mxu0 (!%p2506_p11), %v3610_v29 }
  0x79   :  { %686 = vmatpush1.bf16.msra.mxu0 (!%p2506_p11), %v3625_v32 }
 0x10f   :  { %v215_v46 = vpop.f32.mrb[0].mxu0 }
 0x110   :  { %v3675_v47 = vadd.f32 %v215_v46, %v3668_v44  ;;  %v217_v48 = vpop.f32.mrb[1].mxu0 }
 0x111   :  { %v3678_v49 = vadd.f32 %v217_v48, %v3672_v45  ;;  %v219_v50 = vpop.f32.mrb[2].mxu0 }
 0x112   :  { %v220_v51 = vadd.f32 %v219_v50, %v3668_v44  ;;  %v221_v52 = vpop.f32.mrb[3].mxu0 }
 0x113   :  { %v222_v53 = vadd.f32 %v221_v52, %v3672_v45 }
 0x114   :  { %322 = vst [vmem:[#allocation2 + $0x18] sm:$0xff] %v220_v51 }
 0x115   :  { %323 = vst [vmem:[#allocation2 + $0x20] sm:$0xff] %v222_v53  ;;  %v2783_v1 = vpop.f32.mrb[0].mxu1 }
 0x116   :  { %v297_v2 = vadd.f32 %v2783_v1, %v128_v62  ;;  %v288_v3 = vpop.f32.mrb[1].mxu1  ;;  %v376_v1 = vld [vmem:[%s4029_s6] sm:$0x7] }
 0x117   :  { %v225_v55 = vpop.f32.mrb[4].mxu0  ;;  %v3689_v5 = vadd.f32 %v288_v3, %v128_v62  ;;  %v2784_v11 = vpop.f32.mrb[2].mxu1 }
 0x118   :  { %v226_v56 = vadd.f32 %v225_v55, %v3668_v44  ;;  %v227_v57 = vpop.f32.mrb[5].mxu0  ;;  %327 = vst [vmem:[#allocation2 + $0x40] sm:$0xff] %v297_v2  ;;  %v300_v19 = vadd.f32 %v2784_v11, %v128_v62  ;;  %v291_v27 = vpop.f32.mrb[3].mxu1 }
 0x119   :  { %v228_v58 = vadd.f32 %v227_v57, %v3672_v45  ;;  %v229_v59 = vpop.f32.mrb[6].mxu0  ;;  %v292_v39 = vadd.f32 %v291_v27, %v128_v62 }
 0x11a   :  { %325 = vst [vmem:[#allocation2 + $0x30] sm:$0xff] %v226_v56  ;;  %v230_v60 = vadd.f32 %v229_v59, %v3668_v44  ;;  %v231_v61 = vpop.f32.mrb[7].mxu0  ;;  %330 = vst [vmem:[#allocation2 + $0x58] sm:$0xff] %v300_v19 }
 0x11b   :  { %326 = vst [vmem:[#allocation2 + $0x38] sm:$0xff] %v228_v58  ;;  %v232_v63 = vadd.f32 %v231_v61, %v3672_v45  ;;  %324 = vst [vmem:[#allocation2 + $0x28] sm:$0xff] %v292_v39 }
 0x11c   :  { %328 = vst [vmem:[#allocation2 + $0x48] sm:$0xff] %v230_v60 }
 0x11d   :  { %329 = vst [vmem:[#allocation2 + $0x50] sm:$0xff] %v232_v63  ;;  %v2787_v50 = vpop.f32.mrb[4].mxu1 }
 0x11e   :  { %v313_v51 = vadd.f32 %v2787_v50, %v128_v62  ;;  %v304_v52 = vpop.f32.mrb[5].mxu1 }
 0x11f   :  { %v235_v4 = vpop.f32.mrb[8].mxu0  ;;  %v305_v55 = vadd.f32 %v304_v52, %v128_v62  ;;  %v2788_v56 = vpop.f32.mrb[6].mxu1 }
 0x120   :  { %v236_v14 = vadd.f32 %v235_v4, %v3668_v44  ;;  %v237_v18 = vpop.f32.mrb[9].mxu0  ;;  %339 = vst [vmem:[#allocation2 + $0xa0] sm:$0xff] %v313_v51  ;;  %v316_v59 = vadd.f32 %v2788_v56, %v128_v62  ;;  %v307_v60 = vpop.f32.mrb[7].mxu1 }
 0x121   :  { %v238_v31 = vadd.f32 %v237_v18, %v3672_v45  ;;  %v239_v35 = vpop.f32.mrb[10].mxu0  ;;  %333 = vst [vmem:[#allocation2 + $0x70] sm:$0xff] %v305_v55  ;;  %v308_v2 = vadd.f32 %v307_v60, %v128_v62  ;;  %v3708_v18 = vrot.slane %v376_v1, %v123_v43  ;;  %v636_v60 = vpop.permute.xlu0 %635 }
 0x122   :  { %331 = vst [vmem:[#allocation2 + $0x60] sm:$0xff] %v236_v14  ;;  %v240_v42 = vadd.f32 %v239_v35, %v3668_v44  ;;  %v241_v46 = vpop.f32.mrb[11].mxu0  ;;  %342 = vst [vmem:[#allocation2 + $0xb8] sm:$0xff] %v316_v59  ;;  %v3704_v14 = vrot.slane %v376_v1, %v119_v41  ;;  %vm637_vm3 = vcmp.eq.s32.totalorder %v636_v60, 1 }
 0x123   :  { %332 = vst [vmem:[#allocation2 + $0x68] sm:$0xff] %v238_v31  ;;  %v242_v48 = vadd.f32 %v241_v46, %v3672_v45  ;;  %336 = vst [vmem:[#allocation2 + $0x88] sm:$0xff] %v308_v2 }
 0x124   :  { %334 = vst [vmem:[#allocation2 + $0x78] sm:$0xff] %v240_v42 }
 0x125   :  { %335 = vst [vmem:[#allocation2 + $0x80] sm:$0xff] %v242_v48 }
 0x127   :  { %v245_v53 = vpop.f32.mrb[12].mxu0 }
 0x128   :  { %v246_v57 = vadd.f32 %v245_v53, %v3668_v44  ;;  %v247_v58 = vpop.f32.mrb[13].mxu0  ;;  %v3716_v53 = vrot.slane %v376_v1, %v127_v54 }
 0x129   :  { %v248_v61 = vadd.f32 %v247_v58, %v3672_v45  ;;  %v249_v63 = vpop.f32.mrb[14].mxu0 }
 0x12a   :  { %337 = vst [vmem:[#allocation2 + $0x90] sm:$0xff] %v246_v57  ;;  %v250_v3 = vadd.f32 %v249_v63, %v3668_v44  ;;  %v251_v4 = vpop.f32.mrb[15].mxu0 }
 0x12b   :  { %338 = vst [vmem:[#allocation2 + $0x98] sm:$0xff] %v248_v61  ;;  %v252_v11 = vadd.f32 %v251_v4, %v3672_v45 }
 0x12c   :  { %340 = vst [vmem:[#allocation2 + $0xa8] sm:$0xff] %v250_v3 }
 0x12d   :  { %341 = vst [vmem:[#allocation2 + $0xb0] sm:$0xff] %v252_v11 }
 0x12f   :  { %v563_v62 = vpop.f32.mrb[16].mxu0 }
 0x130   :  { %v564_v19 = vadd.f32 %v563_v62, %v3704_v14  ;;  %v565_v44 = vpop.f32.mrb[17].mxu0 }
 0x131   :  { %v566_v27 = vadd.f32 %v565_v44, %v3708_v18  ;;  %v567_v31 = vpop.f32.mrb[18].mxu0  ;;  %v666_v44 = vld [vmem:[#allocation2 + $0x18] sm:$0xff] (!%p2506_p11) }
 0x132   :  { %v610_v45 = vadd.f32 %v564_v19, %v3675_v47  ;;  %v568_v35 = vpop.f32.mrb[19].mxu0 }
 0x133   :  { %v617_v39 = vadd.f32 %v566_v27, %v3678_v49 }
 0x134   :  { %v2502_v42 = vmul.f32 -1.442695, %v610_v45 }
 0x135   :  { %v2503_v41 = vmul.f32 -1.442695, %v617_v39  ;;  %v604_v46 = vpop.f32.mrb[8].mxu1 }
 0x136   :  { %3083 = vpow2.f32 %v2502_v42  ;;  %v2807_v48 = vpop.f32.mrb[9].mxu1  ;;  %v605_v56 = vadd.f32 %v604_v46, %v3716_v53 }
 0x137   :  { %3085 = vpow2.f32 %v2503_v41  ;;  %v607_v43 = vpop.f32.mrb[10].mxu1  ;;  %v667_v48 = vld [vmem:[#allocation2 + $0x20] sm:$0xff] (!%p2506_p11) }
 0x138   :  { %v2808_v51 = vpop.f32.mrb[11].mxu1 }
 0x140   :  { %v3084_v50 = vpop.eup %3083 }
 0x141   :  { %v614_v52 = vadd.f32 1.0, %v3084_v50  ;;  %v3086_v55 = vpop.eup %3085 }
 0x142   :  { %v621_v47 = vadd.f32 1.0, %v3086_v55 }
 0x143   :  { %3087 = vrcp.f32 %v614_v52 }
 0x144   :  { %3089 = vrcp.f32 %v621_v47 }
 0x14d   :  { %v3088_v49 = vpop.eup %3087 }
 0x14e   :  { %v624_v57 = vmul.f32 %v3088_v49, %v605_v56  ;;  %v3090_v59 = vpop.eup %3089 }
 0x14f   :  { %v627_v61 = vsub.f32 1.0, %v3090_v59  ;;  %v629_v3 = vmul.f32 %v3090_v59, %v3628_v33 }
 0x150   :  { %v625_v58 = vadd.f32 %v624_v57, %v3689_v5  ;;  %v3316_v5 = vmov (!%p2506_p11), 0.0  }
 0x151   :  { %2809 = vmatprep.subr.bf16.mxu1 (!%p2506_p11), %v3316_v5  ;;  %2825 = vmatprep.mubr.msk.bf16.mxu1 (!%p2506_p11), %vm3318_vm5, %v3316_v5 }
 0x152   :  { %3091 = vtanh.f32 %v625_v58  ;;  %2810 = vmatpush3.bf16.msra.mxu1 (!%p2506_p11), %v3546_v17 }
 0x153   :  { %2811 = vmatprep.subr.bf16.mxu1 (!%p2506_p11), %v3316_v5 }
 0x156   :  { %2812 = vmatpush3.bf16.msra.mxu1 (!%p2506_p11), %v3568_v22 }
 0x157   :  { %2813 = vmatprep.subr.bf16.mxu1 (!%p2506_p11), %v3316_v5 }
 0x15a   :  { %2814 = vmatpush3.bf16.msra.mxu1 (!%p2506_p11), %v3589_v25 }
 0x15b   :  { %2815 = vmatprep.subr.bf16.mxu1 (!%p2506_p11), %v3316_v5 }
 0x15c   :  { %v3092_v63 = vpop.eup %3091 }
 0x15d   :  { %v628_v2 = vmul.f32 %v3092_v63, %v627_v61  ;;  %v668_v61 = vld [vmem:[#allocation2 + $0x28] sm:$0xff] (!%p2506_p11) }
 0x15e   :  { %662 = sbr.rel (%p2506_p11) target bundleno = 629 (0x275), region = 73  ;;  %2816 = vmatpush3.bf16.msra.mxu1 (!%p2506_p11), %v3617_v30 }
 0x15f   :  { %v630_v40 = vadd.f32 %v629_v3, %v628_v2  ;;  %2817 = vmatprep.subr.bf16.mxu1 (!%p2506_p11), %v3316_v5 }
 0x161   :  { %v638_v54 = vsel %vm637_vm3, %v630_v40, %v3628_v33  ;;  %v640_v1 = vsel %vm637_vm3, %v630_v40, 0.0  ;;  %v3317_v33 = vmov (!%p2506_p11), 0  }
 0x162   :  { %639 = vst [vmem:[#allocation4] sm:$0xff] %v638_v54  ;;  %v641_v4 = vpack.c.bf16 %v640_v1, %v640_v1  ;;  %v775_v11 = vsel (!%p2506_p11), %vm2509_vm4, 1, %v3317_v33  ;;  %703 = vmatprep.mubr.bf16.mxu0 (!%p2506_p11), %v3317_v33  ;;  %3093 = vset.pattern.permute.xlu0 (!%p2506_p11), %v3317_v33 }
 0x163   :  { %777 = vperm.xlu0 (!%p2506_p11), %3093, %v775_v11   ;;  %2818 = vmatpush3.bf16.msra.mxu1 (!%p2506_p11), %v3635_v34 }
 0x164   :  { %657 = vst [vmem:[#allocation3] sm:$0xf] %v641_v4  ;;  %2819 = vmatprep.subr.bf16.mxu1 (!%p2506_p11), %v3316_v5 }
 0x167   :  { %2820 = vmatpush3.bf16.msra.mxu1 %v3644_v36 }
 0x168   :  { %2821 = vmatprep.subr.bf16.mxu1 %v3316_v5 }
 0x169   :  { %v669_v62 = vld [vmem:[#allocation4] sm:$0xff] }
 0x16a   :  { %v670_v19 = vpack.c.bf16 %v669_v62, %v669_v62 }
 0x16b   :  { %2822 = vmatpush3.bf16.msra.mxu1 %v3650_v37 }
 0x16c   :  { %2823 = vmatprep.subr.bf16.mxu1 %v3316_v5  ;;  %704 = vmatmul.mubr.bf16.vlgmr.msra.gmra.mrb[0].mxu0 %v670_v19 }
 0x16f   :  { %2824 = vmatpush3.bf16.msra.mxu1 %v3656_v38 }
 0x172   :  { %2826 = vmatmul.mubr.bf16.vlgmr.msra.gmra.mrb[0].mxu1 %v670_v19 }
 0x1e2   :  { %v778_v40 = vpop.permute.xlu0 %777 }
 0x1e3   :  { %vm779_vm6 = vcmp.eq.s32.totalorder %v778_v40, 1 }
 0x23f   :  { %v705_v27 = vpop.f32.mrb[0].mxu0 }
 0x240   :  { %v706_v31 = vadd.f32 %v705_v27, %v3704_v14  ;;  %v707_v45 = vpop.f32.mrb[1].mxu0 }
 0x241   :  { %v708_v39 = vadd.f32 %v707_v45, %v3708_v18  ;;  %v709_v42 = vpop.f32.mrb[2].mxu0 }
 0x242   :  { %v752_v46 = vadd.f32 %v706_v31, %v666_v44  ;;  %v710_v43 = vpop.f32.mrb[3].mxu0 }
 0x243   :  { %v759_v55 = vadd.f32 %v708_v39, %v667_v48 }
 0x244   :  { %v2507_v52 = vmul.f32 -1.442695, %v752_v46 }
 0x245   :  { %v746_v35 = vpop.f32.mrb[0].mxu1  ;;  %v2508_v47 = vmul.f32 -1.442695, %v759_v55 }
 0x246   :  { %v2827_v41 = vpop.f32.mrb[1].mxu1  ;;  %3094 = vpow2.f32 %v2507_v52  ;;  %v747_v59 = vadd.f32 %v746_v35, %v3716_v53 }
 0x247   :  { %v749_v50 = vpop.f32.mrb[2].mxu1  ;;  %3096 = vpow2.f32 %v2508_v47 }
 0x248   :  { %v2828_v51 = vpop.f32.mrb[3].mxu1 }
 0x250   :  { %v3095_v56 = vpop.eup %3094 }
 0x251   :  { %v756_v49 = vadd.f32 1.0, %v3095_v56  ;;  %v3097_v57 = vpop.eup %3096 }
 0x252   :  { %v763_v58 = vadd.f32 1.0, %v3097_v57 }
 0x253   :  { %3098 = vrcp.f32 %v756_v49 }
 0x254   :  { %3100 = vrcp.f32 %v763_v58 }
 0x25d   :  { %v3099_v60 = vpop.eup %3098 }
 0x25e   :  { %v766_v63 = vmul.f32 %v3099_v60, %v747_v59  ;;  %v3101_v3 = vpop.eup %3100 }
 0x25f   :  { %v769_v54 = vsub.f32 1.0, %v3101_v3  ;;  %v771_v5 = vmul.f32 %v3101_v3, %v669_v62 }
 0x260   :  { %v767_v2 = vadd.f32 %v766_v63, %v668_v61 }
 0x262   :  { %3102 = vtanh.f32 %v767_v2 }
 0x26c   :  { %v3103_v1 = vpop.eup %3102 }
 0x26d   :  { %v770_v4 = vmul.f32 %v3103_v1, %v769_v54 }
 0x26f   :  { %v772_v33 = vadd.f32 %v771_v5, %v770_v4 }
 0x271   :  { %v780_v11 = vsel %vm779_vm6, %v772_v33, %v669_v62  ;;  %v782_v19 = vsel %vm779_vm6, %v772_v33, 0.0 }
 0x272   :  { %781 = vst [vmem:[#allocation4] sm:$0xff] %v780_v11  ;;  %v783_v44 = vpack.c.bf16 %v782_v19, %v782_v19 }
 0x274   :  { %2510 = vst [vmem:[#allocation3 + $0x4] sm:$0xf] %v783_v44 }
 0x275 PF:  { %p2512_p12 = scmp.le.s32.totalorder %s4023_s0, 2 }
 0x276   :  { %813 = vmatprep.subr.bf16.mxu0 (!%p2512_p12), %v3488_v7  ;;  %vm2515_vm7 = vcmp.gt.s32.totalorder (!%p2512_p12), %v3594_v26, 2  ;;  %v3319_v27 = vmov (!%p2512_p12), 0.0   ;;  %v3320_v62 = vmov (!%p2512_p12), 0   ;;  %vm3321_vm8 = vmmov (!%p2512_p12), 0   ;;  %v808_v39 = vld [vmem:[#allocation2 + $0x30] sm:$0xff] (!%p2512_p12)  ;;  %v809_v55 = vld [vmem:[#allocation2 + $0x38] sm:$0xff] (!%p2512_p12) }
 0x277   :  { %804 = sbr.rel (%p2512_p12) target bundleno = 927 (0x39f), region = 77  ;;  %814 = vmatpush1.bf16.msra.mxu0 (!%p2512_p12), %v3483_v6  ;;  %2829 = vmatprep.subr.bf16.mxu1 (!%p2512_p12), %v3319_v27  ;;  %v917_v31 = vsel (!%p2512_p12), %vm2515_vm7, 1, %v3320_v62  ;;  %v810_v54 = vld [vmem:[#allocation2 + $0x40] sm:$0xff] (!%p2512_p12) }
 0x278   :  { %815 = vmatprep.subr.bf16.mxu0 (!%p2512_p12), %v3493_v8  ;;  %2830 = vmatpush3.bf16.msra.mxu1 (!%p2512_p12), %v3546_v17 }
 0x279   :  { %2831 = vmatprep.subr.bf16.mxu1 (!%p2512_p12), %v3319_v27  ;;  %845 = vmatprep.mubr.bf16.mxu0 (!%p2512_p12), %v3320_v62  ;;  %v811_v45 = vld [vmem:[#allocation4] sm:$0xff] (!%p2512_p12) }
 0x27a   :  { %2845 = vmatprep.mubr.msk.bf16.mxu1 (!%p2512_p12), %vm3321_vm8, %v3319_v27  ;;  %3104 = vset.pattern.permute.xlu0 (!%p2512_p12), %v3320_v62  ;;  %v812_v35 = vpack.c.bf16 (!%p2512_p12), %v811_v45, %v811_v45 }
 0x27b   :  { %816 = vmatpush1.bf16.msra.mxu0 (!%p2512_p12), %v3502_v9  ;;  %919 = vperm.xlu0 (!%p2512_p12), %3104, %v917_v31  }
 0x27c   :  { %817 = vmatprep.subr.bf16.mxu0 (!%p2512_p12), %v3509_v10  ;;  %2832 = vmatpush3.bf16.msra.mxu1 (!%p2512_p12), %v3568_v22 }
 0x27d   :  { %2833 = vmatprep.subr.bf16.mxu1 (!%p2512_p12), %v3319_v27 }
 0x27f   :  { %818 = vmatpush1.bf16.msra.mxu0 %v3518_v12 }
 0x280   :  { %819 = vmatprep.subr.bf16.mxu0 %v3524_v13  ;;  %2834 = vmatpush3.bf16.msra.mxu1 %v3589_v25 }
 0x281   :  { %2835 = vmatprep.subr.bf16.mxu1 %v3319_v27 }
 0x283   :  { %820 = vmatpush1.bf16.msra.mxu0 %v3534_v15 }
 0x284   :  { %821 = vmatprep.subr.bf16.mxu0 %v3541_v16  ;;  %2836 = vmatpush3.bf16.msra.mxu1 %v3617_v30 }
 0x285   :  { %2837 = vmatprep.subr.bf16.mxu1 %v3319_v27 }
 0x287   :  { %822 = vmatpush1.bf16.msra.mxu0 %v3555_v20 }
 0x288   :  { %823 = vmatprep.subr.bf16.mxu0 %v3561_v21  ;;  %2838 = vmatpush3.bf16.msra.mxu1 %v3635_v34 }
 0x289   :  { %2839 = vmatprep.subr.bf16.mxu1 %v3319_v27 }
 0x28b   :  { %824 = vmatpush1.bf16.msra.mxu0 %v3576_v23 }
 0x28c   :  { %825 = vmatprep.subr.bf16.mxu0 %v3583_v24  ;;  %2840 = vmatpush3.bf16.msra.mxu1 %v3644_v36 }
 0x28d   :  { %2841 = vmatprep.subr.bf16.mxu1 %v3319_v27 }
 0x28f   :  { %826 = vmatpush1.bf16.msra.mxu0 %v3604_v28 }
 0x290   :  { %827 = vmatprep.subr.bf16.mxu0 %v3610_v29  ;;  %2842 = vmatpush3.bf16.msra.mxu1 %v3650_v37 }
 0x291   :  { %2843 = vmatprep.subr.bf16.mxu1 %v3319_v27 }
 0x293   :  { %828 = vmatpush1.bf16.msra.mxu0 %v3625_v32 }
 0x294   :  { %2844 = vmatpush3.bf16.msra.mxu1 %v3656_v38 }
 0x296   :  { %846 = vmatmul.mubr.bf16.vlgmr.msra.gmra.mrb[0].mxu0 %v812_v35 }
 0x297   :  { %2846 = vmatmul.mubr.bf16.vlgmr.msra.gmra.mrb[0].mxu1 %v812_v35 }
 0x2fa   :  { %v920_v33 = vpop.permute.xlu0 %919 }
 0x2fb   :  { %vm921_vm9 = vcmp.eq.s32.totalorder %v920_v33, 1 }
 0x369   :  { %v847_v42 = vpop.f32.mrb[0].mxu0 }
 0x36a   :  { %v848_v41 = vadd.f32 %v847_v42, %v3704_v14  ;;  %v849_v46 = vpop.f32.mrb[1].mxu0  ;;  %v888_v48 = vpop.f32.mrb[0].mxu1 }
 0x36b   :  { %v850_v43 = vadd.f32 %v849_v46, %v3708_v18  ;;  %v851_v50 = vpop.f32.mrb[2].mxu0  ;;  %v2847_v51 = vpop.f32.mrb[1].mxu1  ;;  %v889_v3 = vadd.f32 %v888_v48, %v3716_v53 }
 0x36c   :  { %v894_v52 = vadd.f32 %v848_v41, %v808_v39  ;;  %v852_v47 = vpop.f32.mrb[3].mxu0  ;;  %v891_v56 = vpop.f32.mrb[2].mxu1 }
 0x36d   :  { %v2848_v49 = vpop.f32.mrb[3].mxu1  ;;  %v901_v58 = vadd.f32 %v850_v43, %v809_v55 }
 0x36e   :  { %v2513_v57 = vmul.f32 -1.442695, %v894_v52 }
 0x36f   :  { %v2514_v59 = vmul.f32 -1.442695, %v901_v58 }
 0x370   :  { %3105 = vpow2.f32 %v2513_v57 }
 0x371   :  { %3107 = vpow2.f32 %v2514_v59 }
 0x37a   :  { %v3106_v60 = vpop.eup %3105 }
 0x37b   :  { %v898_v61 = vadd.f32 1.0, %v3106_v60  ;;  %v3108_v63 = vpop.eup %3107 }
 0x37c   :  { %v905_v2 = vadd.f32 1.0, %v3108_v63 }
 0x37d   :  { %3109 = vrcp.f32 %v898_v61 }
 0x37e   :  { %3111 = vrcp.f32 %v905_v2 }
 0x387   :  { %v3110_v40 = vpop.eup %3109 }
 0x388   :  { %v908_v1 = vmul.f32 %v3110_v40, %v889_v3  ;;  %v3112_v5 = vpop.eup %3111 }
 0x389   :  { %v911_v11 = vsub.f32 1.0, %v3112_v5  ;;  %v913_v27 = vmul.f32 %v3112_v5, %v811_v45 }
 0x38a   :  { %v909_v4 = vadd.f32 %v908_v1, %v810_v54 }
 0x38c   :  { %3113 = vtanh.f32 %v909_v4 }
 0x396   :  { %v3114_v19 = vpop.eup %3113 }
 0x397   :  { %v912_v44 = vmul.f32 %v3114_v19, %v911_v11 }
 0x399   :  { %v914_v62 = vadd.f32 %v913_v27, %v912_v44 }
 0x39b   :  { %v922_v31 = vsel %vm921_vm9, %v914_v62, %v811_v45  ;;  %v924_v35 = vsel %vm921_vm9, %v914_v62, 0.0 }
 0x39c   :  { %923 = vst [vmem:[#allocation4] sm:$0xff] %v922_v31  ;;  %v925_v39 = vpack.c.bf16 %v924_v35, %v924_v35 }
 0x39e   :  { %2516 = vst [vmem:[#allocation3 + $0x8] sm:$0xf] %v925_v39 }
 0x39f PF:  { %p2518_p13 = scmp.le.s32.totalorder %s4023_s0, 3 }
 0x3a0   :  { %955 = vmatprep.subr.bf16.mxu0 (!%p2518_p13), %v3488_v7  ;;  %vm2521_vm10 = vcmp.gt.s32.totalorder (!%p2518_p13), %v3594_v26, 3  ;;  %v3322_v42 = vmov (!%p2518_p13), 0.0   ;;  %v3323_v45 = vmov (!%p2518_p13), 0   ;;  %vm3324_vm11 = vmmov (!%p2518_p13), 0   ;;  %v950_v43 = vld [vmem:[#allocation2 + $0x48] sm:$0xff] (!%p2518_p13)  ;;  %v951_v58 = vld [vmem:[#allocation2 + $0x50] sm:$0xff] (!%p2518_p13) }
 0x3a1   :  { %946 = sbr.rel (%p2518_p13) target bundleno = 1225 (0x4c9), region = 81  ;;  %956 = vmatpush1.bf16.msra.mxu0 (!%p2518_p13), %v3483_v6  ;;  %2849 = vmatprep.subr.bf16.mxu1 (!%p2518_p13), %v3322_v42  ;;  %v1059_v41 = vsel (!%p2518_p13), %vm2521_vm10, 1, %v3323_v45  ;;  %v952_v11 = vld [vmem:[#allocation2 + $0x58] sm:$0xff] (!%p2518_p13) }
 0x3a2   :  { %957 = vmatprep.subr.bf16.mxu0 (!%p2518_p13), %v3493_v8  ;;  %2850 = vmatpush3.bf16.msra.mxu1 (!%p2518_p13), %v3546_v17 }
 0x3a3   :  { %2851 = vmatprep.subr.bf16.mxu1 (!%p2518_p13), %v3322_v42  ;;  %987 = vmatprep.mubr.bf16.mxu0 (!%p2518_p13), %v3323_v45  ;;  %v953_v46 = vld [vmem:[#allocation4] sm:$0xff] (!%p2518_p13) }
 0x3a4   :  { %2865 = vmatprep.mubr.msk.bf16.mxu1 (!%p2518_p13), %vm3324_vm11, %v3322_v42  ;;  %3115 = vset.pattern.permute.xlu0 (!%p2518_p13), %v3323_v45  ;;  %v954_v48 = vpack.c.bf16 (!%p2518_p13), %v953_v46, %v953_v46 }
 0x3a5   :  { %958 = vmatpush1.bf16.msra.mxu0 (!%p2518_p13), %v3502_v9  ;;  %1061 = vperm.xlu0 (!%p2518_p13), %3115, %v1059_v41  }
 0x3a6   :  { %959 = vmatprep.subr.bf16.mxu0 (!%p2518_p13), %v3509_v10  ;;  %2852 = vmatpush3.bf16.msra.mxu1 (!%p2518_p13), %v3568_v22 }
 0x3a7   :  { %2853 = vmatprep.subr.bf16.mxu1 (!%p2518_p13), %v3322_v42 }
 0x3a9   :  { %960 = vmatpush1.bf16.msra.mxu0 %v3518_v12 }
 0x3aa   :  { %961 = vmatprep.subr.bf16.mxu0 %v3524_v13  ;;  %2854 = vmatpush3.bf16.msra.mxu1 %v3589_v25 }
 0x3ab   :  { %2855 = vmatprep.subr.bf16.mxu1 %v3322_v42 }
 0x3ad   :  { %962 = vmatpush1.bf16.msra.mxu0 %v3534_v15 }
 0x3ae   :  { %963 = vmatprep.subr.bf16.mxu0 %v3541_v16  ;;  %2856 = vmatpush3.bf16.msra.mxu1 %v3617_v30 }
 0x3af   :  { %2857 = vmatprep.subr.bf16.mxu1 %v3322_v42 }
 0x3b1   :  { %964 = vmatpush1.bf16.msra.mxu0 %v3555_v20 }
 0x3b2   :  { %965 = vmatprep.subr.bf16.mxu0 %v3561_v21  ;;  %2858 = vmatpush3.bf16.msra.mxu1 %v3635_v34 }
 0x3b3   :  { %2859 = vmatprep.subr.bf16.mxu1 %v3322_v42 }
 0x3b5   :  { %966 = vmatpush1.bf16.msra.mxu0 %v3576_v23 }
 0x3b6   :  { %967 = vmatprep.subr.bf16.mxu0 %v3583_v24  ;;  %2860 = vmatpush3.bf16.msra.mxu1 %v3644_v36 }
 0x3b7   :  { %2861 = vmatprep.subr.bf16.mxu1 %v3322_v42 }
 0x3b9   :  { %968 = vmatpush1.bf16.msra.mxu0 %v3604_v28 }
 0x3ba   :  { %969 = vmatprep.subr.bf16.mxu0 %v3610_v29  ;;  %2862 = vmatpush3.bf16.msra.mxu1 %v3650_v37 }
 0x3bb   :  { %2863 = vmatprep.subr.bf16.mxu1 %v3322_v42 }
 0x3bd   :  { %970 = vmatpush1.bf16.msra.mxu0 %v3625_v32 }
 0x3be   :  { %2864 = vmatpush3.bf16.msra.mxu1 %v3656_v38 }
 0x3c0   :  { %988 = vmatmul.mubr.bf16.vlgmr.msra.gmra.mrb[0].mxu0 %v954_v48 }
 0x3c1   :  { %2866 = vmatmul.mubr.bf16.vlgmr.msra.gmra.mrb[0].mxu1 %v954_v48 }
 0x424   :  { %v1062_v62 = vpop.permute.xlu0 %1061 }
 0x425   :  { %vm1063_vm12 = vcmp.eq.s32.totalorder %v1062_v62, 1 }
 0x493   :  { %v989_v50 = vpop.f32.mrb[0].mxu0 }
 0x494   :  { %v990_v51 = vadd.f32 %v989_v50, %v3704_v14  ;;  %v991_v52 = vpop.f32.mrb[1].mxu0  ;;  %v1030_v55 = vpop.f32.mrb[0].mxu1 }
 0x495   :  { %v992_v47 = vadd.f32 %v991_v52, %v3708_v18  ;;  %v993_v56 = vpop.f32.mrb[2].mxu0  ;;  %v2867_v49 = vpop.f32.mrb[1].mxu1  ;;  %v1031_v5 = vadd.f32 %v1030_v55, %v3716_v53 }
 0x496   :  { %v1036_v57 = vadd.f32 %v990_v51, %v950_v43  ;;  %v994_v59 = vpop.f32.mrb[3].mxu0  ;;  %v1033_v60 = vpop.f32.mrb[2].mxu1 }
 0x497   :  { %v2868_v61 = vpop.f32.mrb[3].mxu1  ;;  %v1043_v2 = vadd.f32 %v992_v47, %v951_v58 }
 0x498   :  { %v2519_v63 = vmul.f32 -1.442695, %v1036_v57 }
 0x499   :  { %v2520_v3 = vmul.f32 -1.442695, %v1043_v2 }
 0x49a   :  { %3116 = vpow2.f32 %v2519_v63 }
 0x49b   :  { %3118 = vpow2.f32 %v2520_v3 }
 0x4a4   :  { %v3117_v40 = vpop.eup %3116 }
 0x4a5   :  { %v1040_v54 = vadd.f32 1.0, %v3117_v40  ;;  %v3119_v1 = vpop.eup %3118 }
 0x4a6   :  { %v1047_v4 = vadd.f32 1.0, %v3119_v1 }
 0x4a7   :  { %3120 = vrcp.f32 %v1040_v54 }
 0x4a8   :  { %3122 = vrcp.f32 %v1047_v4 }
 0x4b1   :  { %v3121_v33 = vpop.eup %3120 }
 0x4b2   :  { %v1050_v19 = vmul.f32 %v3121_v33, %v1031_v5  ;;  %v3123_v27 = vpop.eup %3122 }
 0x4b3   :  { %v1053_v31 = vsub.f32 1.0, %v3123_v27  ;;  %v1055_v42 = vmul.f32 %v3123_v27, %v953_v46 }
 0x4b4   :  { %v1051_v44 = vadd.f32 %v1050_v19, %v952_v11 }
 0x4b6   :  { %3124 = vtanh.f32 %v1051_v44 }
 0x4c0   :  { %v3125_v35 = vpop.eup %3124 }
 0x4c1   :  { %v1054_v39 = vmul.f32 %v3125_v35, %v1053_v31 }
 0x4c3   :  { %v1056_v45 = vadd.f32 %v1055_v42, %v1054_v39 }
 0x4c5   :  { %v1064_v41 = vsel %vm1063_vm12, %v1056_v45, %v953_v46  ;;  %v1066_v48 = vsel %vm1063_vm12, %v1056_v45, 0.0 }
 0x4c6   :  { %1065 = vst [vmem:[#allocation4] sm:$0xff] %v1064_v41  ;;  %v1067_v43 = vpack.c.bf16 %v1066_v48, %v1066_v48 }
 0x4c8   :  { %2522 = vst [vmem:[#allocation3 + $0xc] sm:$0xf] %v1067_v43 }
 0x4c9 PF:  { %p2524_p0 = scmp.le.s32.totalorder %s4023_s0, 4 }
 0x4ca   :  { %1097 = vmatprep.subr.bf16.mxu0 (!%p2524_p0), %v3488_v7  ;;  %vm2527_vm13 = vcmp.gt.s32.totalorder (!%p2524_p0), %v3594_v26, 4  ;;  %v3325_v50 = vmov (!%p2524_p0), 0.0   ;;  %v3326_v46 = vmov (!%p2524_p0), 0   ;;  %vm3327_vm14 = vmmov (!%p2524_p0), 0   ;;  %v1092_v47 = vld [vmem:[#allocation2 + $0x60] sm:$0xff] (!%p2524_p0)  ;;  %v1093_v2 = vld [vmem:[#allocation2 + $0x68] sm:$0xff] (!%p2524_p0) }
 0x4cb   :  { %1088 = sbr.rel (%p2524_p0) target bundleno = 1523 (0x5f3), region = 85  ;;  %1098 = vmatpush1.bf16.msra.mxu0 (!%p2524_p0), %v3483_v6  ;;  %2869 = vmatprep.subr.bf16.mxu1 (!%p2524_p0), %v3325_v50  ;;  %v1201_v51 = vsel (!%p2524_p0), %vm2527_vm13, 1, %v3326_v46  ;;  %v1094_v31 = vld [vmem:[#allocation2 + $0x70] sm:$0xff] (!%p2524_p0) }
 0x4cc   :  { %1099 = vmatprep.subr.bf16.mxu0 (!%p2524_p0), %v3493_v8  ;;  %2870 = vmatpush3.bf16.msra.mxu1 (!%p2524_p0), %v3546_v17 }
 0x4cd   :  { %2871 = vmatprep.subr.bf16.mxu1 (!%p2524_p0), %v3325_v50  ;;  %1129 = vmatprep.mubr.bf16.mxu0 (!%p2524_p0), %v3326_v46  ;;  %v1095_v52 = vld [vmem:[#allocation4] sm:$0xff] (!%p2524_p0) }
 0x4ce   :  { %2885 = vmatprep.mubr.msk.bf16.mxu1 (!%p2524_p0), %vm3327_vm14, %v3325_v50  ;;  %3126 = vset.pattern.permute.xlu0 (!%p2524_p0), %v3326_v46  ;;  %v1096_v55 = vpack.c.bf16 (!%p2524_p0), %v1095_v52, %v1095_v52 }
 0x4cf   :  { %1100 = vmatpush1.bf16.msra.mxu0 (!%p2524_p0), %v3502_v9  ;;  %1203 = vperm.xlu0 (!%p2524_p0), %3126, %v1201_v51  }
 0x4d0   :  { %1101 = vmatprep.subr.bf16.mxu0 (!%p2524_p0), %v3509_v10  ;;  %2872 = vmatpush3.bf16.msra.mxu1 (!%p2524_p0), %v3568_v22 }
 0x4d1   :  { %2873 = vmatprep.subr.bf16.mxu1 (!%p2524_p0), %v3325_v50 }
 0x4d3   :  { %1102 = vmatpush1.bf16.msra.mxu0 %v3518_v12 }
 0x4d4   :  { %1103 = vmatprep.subr.bf16.mxu0 %v3524_v13  ;;  %2874 = vmatpush3.bf16.msra.mxu1 %v3589_v25 }
 0x4d5   :  { %2875 = vmatprep.subr.bf16.mxu1 %v3325_v50 }
 0x4d7   :  { %1104 = vmatpush1.bf16.msra.mxu0 %v3534_v15 }
 0x4d8   :  { %1105 = vmatprep.subr.bf16.mxu0 %v3541_v16  ;;  %2876 = vmatpush3.bf16.msra.mxu1 %v3617_v30 }
 0x4d9   :  { %2877 = vmatprep.subr.bf16.mxu1 %v3325_v50 }
 0x4db   :  { %1106 = vmatpush1.bf16.msra.mxu0 %v3555_v20 }
 0x4dc   :  { %1107 = vmatprep.subr.bf16.mxu0 %v3561_v21  ;;  %2878 = vmatpush3.bf16.msra.mxu1 %v3635_v34 }
 0x4dd   :  { %2879 = vmatprep.subr.bf16.mxu1 %v3325_v50 }
 0x4df   :  { %1108 = vmatpush1.bf16.msra.mxu0 %v3576_v23 }
 0x4e0   :  { %1109 = vmatprep.subr.bf16.mxu0 %v3583_v24  ;;  %2880 = vmatpush3.bf16.msra.mxu1 %v3644_v36 }
 0x4e1   :  { %2881 = vmatprep.subr.bf16.mxu1 %v3325_v50 }
 0x4e3   :  { %1110 = vmatpush1.bf16.msra.mxu0 %v3604_v28 }
 0x4e4   :  { %1111 = vmatprep.subr.bf16.mxu0 %v3610_v29  ;;  %2882 = vmatpush3.bf16.msra.mxu1 %v3650_v37 }
 0x4e5   :  { %2883 = vmatprep.subr.bf16.mxu1 %v3325_v50 }
 0x4e7   :  { %1112 = vmatpush1.bf16.msra.mxu0 %v3625_v32 }
 0x4e8   :  { %2884 = vmatpush3.bf16.msra.mxu1 %v3656_v38 }
 0x4ea   :  { %1130 = vmatmul.mubr.bf16.vlgmr.msra.gmra.mrb[0].mxu0 %v1096_v55 }
 0x4eb   :  { %2886 = vmatmul.mubr.bf16.vlgmr.msra.gmra.mrb[0].mxu1 %v1096_v55 }
 0x54e   :  { %v1204_v45 = vpop.permute.xlu0 %1203 }
 0x54f   :  { %vm1205_vm15 = vcmp.eq.s32.totalorder %v1204_v45, 1 }
 0x5bd   :  { %v1131_v56 = vpop.f32.mrb[0].mxu0 }
 0x5be   :  { %v1132_v49 = vadd.f32 %v1131_v56, %v3704_v14  ;;  %v1133_v57 = vpop.f32.mrb[1].mxu0  ;;  %v1172_v58 = vpop.f32.mrb[0].mxu1 }
 0x5bf   :  { %v1134_v59 = vadd.f32 %v1133_v57, %v3708_v18  ;;  %v1135_v60 = vpop.f32.mrb[2].mxu0  ;;  %v2887_v61 = vpop.f32.mrb[1].mxu1  ;;  %v1173_v27 = vadd.f32 %v1172_v58, %v3716_v53 }
 0x5c0   :  { %v1178_v63 = vadd.f32 %v1132_v49, %v1092_v47  ;;  %v1136_v3 = vpop.f32.mrb[3].mxu0  ;;  %v1175_v40 = vpop.f32.mrb[2].mxu1 }
 0x5c1   :  { %v2888_v54 = vpop.f32.mrb[3].mxu1  ;;  %v1185_v4 = vadd.f32 %v1134_v59, %v1093_v2 }
 0x5c2   :  { %v2525_v1 = vmul.f32 -1.442695, %v1178_v63 }
 0x5c3   :  { %v2526_v5 = vmul.f32 -1.442695, %v1185_v4 }
 0x5c4   :  { %3127 = vpow2.f32 %v2525_v1 }
 0x5c5   :  { %3129 = vpow2.f32 %v2526_v5 }
 0x5ce   :  { %v3128_v33 = vpop.eup %3127 }
 0x5cf   :  { %v1182_v11 = vadd.f32 1.0, %v3128_v33  ;;  %v3130_v19 = vpop.eup %3129 }
 0x5d0   :  { %v1189_v44 = vadd.f32 1.0, %v3130_v19 }
 0x5d1   :  { %3131 = vrcp.f32 %v1182_v11 }
 0x5d2   :  { %3133 = vrcp.f32 %v1189_v44 }
 0x5db   :  { %v3132_v62 = vpop.eup %3131 }
 0x5dc   :  { %v1192_v35 = vmul.f32 %v3132_v62, %v1173_v27  ;;  %v3134_v42 = vpop.eup %3133 }
 0x5dd   :  { %v1195_v41 = vsub.f32 1.0, %v3134_v42  ;;  %v1197_v50 = vmul.f32 %v3134_v42, %v1095_v52 }
 0x5de   :  { %v1193_v39 = vadd.f32 %v1192_v35, %v1094_v31 }
 0x5e0   :  { %3135 = vtanh.f32 %v1193_v39 }
 0x5ea   :  { %v3136_v48 = vpop.eup %3135 }
 0x5eb   :  { %v1196_v43 = vmul.f32 %v3136_v48, %v1195_v41 }
 0x5ed   :  { %v1198_v46 = vadd.f32 %v1197_v50, %v1196_v43 }
 0x5ef   :  { %v1206_v51 = vsel %vm1205_vm15, %v1198_v46, %v1095_v52  ;;  %v1208_v55 = vsel %vm1205_vm15, %v1198_v46, 0.0 }
 0x5f0   :  { %1207 = vst [vmem:[#allocation4] sm:$0xff] %v1206_v51  ;;  %v1209_v47 = vpack.c.bf16 %v1208_v55, %v1208_v55 }
 0x5f2   :  { %2528 = vst [vmem:[#allocation3 + $0x10] sm:$0xf] %v1209_v47 }
 0x5f3 PF:  { %p2530_p1 = scmp.le.s32.totalorder %s4023_s0, 5 }
 0x5f4   :  { %1239 = vmatprep.subr.bf16.mxu0 (!%p2530_p1), %v3488_v7  ;;  %vm2533_vm0 = vcmp.gt.s32.totalorder (!%p2530_p1), %v3594_v26, 5  ;;  %v3328_v56 = vmov (!%p2530_p1), 0.0   ;;  %v3329_v52 = vmov (!%p2530_p1), 0   ;;  %vm3330_vm1 = vmmov (!%p2530_p1), 0   ;;  %v1234_v59 = vld [vmem:[#allocation2 + $0x78] sm:$0xff] (!%p2530_p1)  ;;  %v1235_v4 = vld [vmem:[#allocation2 + $0x80] sm:$0xff] (!%p2530_p1) }
 0x5f5   :  { %1230 = sbr.rel (%p2530_p1) target bundleno = 1821 (0x71d), region = 89  ;;  %1240 = vmatpush1.bf16.msra.mxu0 (!%p2530_p1), %v3483_v6  ;;  %2889 = vmatprep.subr.bf16.mxu1 (!%p2530_p1), %v3328_v56  ;;  %v1343_v49 = vsel (!%p2530_p1), %vm2533_vm0, 1, %v3329_v52  ;;  %v1236_v41 = vld [vmem:[#allocation2 + $0x88] sm:$0xff] (!%p2530_p1) }
 0x5f6   :  { %1241 = vmatprep.subr.bf16.mxu0 (!%p2530_p1), %v3493_v8  ;;  %2890 = vmatpush3.bf16.msra.mxu1 (!%p2530_p1), %v3546_v17 }
 0x5f7   :  { %2891 = vmatprep.subr.bf16.mxu1 (!%p2530_p1), %v3328_v56  ;;  %1271 = vmatprep.mubr.bf16.mxu0 (!%p2530_p1), %v3329_v52  ;;  %v1237_v57 = vld [vmem:[#allocation4] sm:$0xff] (!%p2530_p1) }
 0x5f8   :  { %2905 = vmatprep.mubr.msk.bf16.mxu1 (!%p2530_p1), %vm3330_vm1, %v3328_v56  ;;  %3137 = vset.pattern.permute.xlu0 (!%p2530_p1), %v3329_v52  ;;  %v1238_v58 = vpack.c.bf16 (!%p2530_p1), %v1237_v57, %v1237_v57 }
 0x5f9   :  { %1242 = vmatpush1.bf16.msra.mxu0 (!%p2530_p1), %v3502_v9  ;;  %1345 = vperm.xlu0 (!%p2530_p1), %3137, %v1343_v49  }
 0x5fa   :  { %1243 = vmatprep.subr.bf16.mxu0 (!%p2530_p1), %v3509_v10  ;;  %2892 = vmatpush3.bf16.msra.mxu1 (!%p2530_p1), %v3568_v22 }
 0x5fb   :  { %2893 = vmatprep.subr.bf16.mxu1 (!%p2530_p1), %v3328_v56 }
 0x5fd   :  { %1244 = vmatpush1.bf16.msra.mxu0 %v3518_v12 }
 0x5fe   :  { %1245 = vmatprep.subr.bf16.mxu0 %v3524_v13  ;;  %2894 = vmatpush3.bf16.msra.mxu1 %v3589_v25 }
 0x5ff   :  { %2895 = vmatprep.subr.bf16.mxu1 %v3328_v56 }
 0x601   :  { %1246 = vmatpush1.bf16.msra.mxu0 %v3534_v15 }
 0x602   :  { %1247 = vmatprep.subr.bf16.mxu0 %v3541_v16  ;;  %2896 = vmatpush3.bf16.msra.mxu1 %v3617_v30 }
 0x603   :  { %2897 = vmatprep.subr.bf16.mxu1 %v3328_v56 }
 0x605   :  { %1248 = vmatpush1.bf16.msra.mxu0 %v3555_v20 }
 0x606   :  { %1249 = vmatprep.subr.bf16.mxu0 %v3561_v21  ;;  %2898 = vmatpush3.bf16.msra.mxu1 %v3635_v34 }
 0x607   :  { %2899 = vmatprep.subr.bf16.mxu1 %v3328_v56 }
 0x609   :  { %1250 = vmatpush1.bf16.msra.mxu0 %v3576_v23 }
 0x60a   :  { %1251 = vmatprep.subr.bf16.mxu0 %v3583_v24  ;;  %2900 = vmatpush3.bf16.msra.mxu1 %v3644_v36 }
 0x60b   :  { %2901 = vmatprep.subr.bf16.mxu1 %v3328_v56 }
 0x60d   :  { %1252 = vmatpush1.bf16.msra.mxu0 %v3604_v28 }
 0x60e   :  { %1253 = vmatprep.subr.bf16.mxu0 %v3610_v29  ;;  %2902 = vmatpush3.bf16.msra.mxu1 %v3650_v37 }
 0x60f   :  { %2903 = vmatprep.subr.bf16.mxu1 %v3328_v56 }
 0x611   :  { %1254 = vmatpush1.bf16.msra.mxu0 %v3625_v32 }
 0x612   :  { %2904 = vmatpush3.bf16.msra.mxu1 %v3656_v38 }
 0x614   :  { %1272 = vmatmul.mubr.bf16.vlgmr.msra.gmra.mrb[0].mxu0 %v1238_v58 }
 0x615   :  { %2906 = vmatmul.mubr.bf16.vlgmr.msra.gmra.mrb[0].mxu1 %v1238_v58 }
 0x678   :  { %v1346_v46 = vpop.permute.xlu0 %1345 }
 0x679   :  { %vm1347_vm2 = vcmp.eq.s32.totalorder %v1346_v46, 1 }
 0x6e7   :  { %v1273_v60 = vpop.f32.mrb[0].mxu0 }
 0x6e8   :  { %v1274_v61 = vadd.f32 %v1273_v60, %v3704_v14  ;;  %v1275_v63 = vpop.f32.mrb[1].mxu0  ;;  %v1314_v2 = vpop.f32.mrb[0].mxu1 }
 0x6e9   :  { %v1276_v3 = vadd.f32 %v1275_v63, %v3708_v18  ;;  %v1277_v40 = vpop.f32.mrb[2].mxu0  ;;  %v2907_v54 = vpop.f32.mrb[1].mxu1  ;;  %v1315_v42 = vadd.f32 %v1314_v2, %v3716_v53 }
 0x6ea   :  { %v1320_v1 = vadd.f32 %v1274_v61, %v1234_v59  ;;  %v1278_v5 = vpop.f32.mrb[3].mxu0  ;;  %v1317_v33 = vpop.f32.mrb[2].mxu1 }
 0x6eb   :  { %v2908_v11 = vpop.f32.mrb[3].mxu1  ;;  %v1327_v44 = vadd.f32 %v1276_v3, %v1235_v4 }
 0x6ec   :  { %v2531_v19 = vmul.f32 -1.442695, %v1320_v1 }
 0x6ed   :  { %v2532_v27 = vmul.f32 -1.442695, %v1327_v44 }
 0x6ee   :  { %3138 = vpow2.f32 %v2531_v19 }
 0x6ef   :  { %3140 = vpow2.f32 %v2532_v27 }
 0x6f8   :  { %v3139_v62 = vpop.eup %3138 }
 0x6f9   :  { %v1324_v31 = vadd.f32 1.0, %v3139_v62  ;;  %v3141_v35 = vpop.eup %3140 }
 0x6fa   :  { %v1331_v39 = vadd.f32 1.0, %v3141_v35 }
 0x6fb   :  { %3142 = vrcp.f32 %v1324_v31 }
 0x6fc   :  { %3144 = vrcp.f32 %v1331_v39 }
 0x705   :  { %v3143_v45 = vpop.eup %3142 }
 0x706   :  { %v1334_v48 = vmul.f32 %v3143_v45, %v1315_v42  ;;  %v3145_v50 = vpop.eup %3144 }
 0x707   :  { %v1337_v51 = vsub.f32 1.0, %v3145_v50  ;;  %v1339_v56 = vmul.f32 %v3145_v50, %v1237_v57 }
 0x708   :  { %v1335_v43 = vadd.f32 %v1334_v48, %v1236_v41 }
 0x70a   :  { %3146 = vtanh.f32 %v1335_v43 }
 0x714   :  { %v3147_v55 = vpop.eup %3146 }
 0x715   :  { %v1338_v47 = vmul.f32 %v3147_v55, %v1337_v51 }
 0x717   :  { %v1340_v52 = vadd.f32 %v1339_v56, %v1338_v47 }
 0x719   :  { %v1348_v49 = vsel %vm1347_vm2, %v1340_v52, %v1237_v57  ;;  %v1350_v58 = vsel %vm1347_vm2, %v1340_v52, 0.0 }
 0x71a   :  { %1349 = vst [vmem:[#allocation4] sm:$0xff] %v1348_v49  ;;  %v1351_v59 = vpack.c.bf16 %v1350_v58, %v1350_v58 }
 0x71c   :  { %1367 = vst [vmem:[#allocation3] sm:$0xf] %v1351_v59 }
 0x71d PF:  { %p2535_p2 = scmp.le.s32.totalorder %s4023_s0, 6 }
 0x71e   :  { %1381 = vmatprep.subr.bf16.mxu0 (!%p2535_p2), %v3488_v7  ;;  %vm2538_vm3 = vcmp.gt.s32.totalorder (!%p2535_p2), %v3594_v26, 6  ;;  %v3331_v60 = vmov (!%p2535_p2), 0.0   ;;  %v3332_v57 = vmov (!%p2535_p2), 0   ;;  %vm3333_vm4 = vmmov (!%p2535_p2), 0   ;;  %v1376_v3 = vld [vmem:[#allocation2 + $0x90] sm:$0xff] (!%p2535_p2)  ;;  %v1377_v44 = vld [vmem:[#allocation2 + $0x98] sm:$0xff] (!%p2535_p2) }
 0x71f   :  { %1372 = sbr.rel (%p2535_p2) target bundleno = 2119 (0x847), region = 93  ;;  %1382 = vmatpush1.bf16.msra.mxu0 (!%p2535_p2), %v3483_v6  ;;  %2909 = vmatprep.subr.bf16.mxu1 (!%p2535_p2), %v3331_v60  ;;  %v1485_v61 = vsel (!%p2535_p2), %vm2538_vm3, 1, %v3332_v57  ;;  %v1378_v51 = vld [vmem:[#allocation2 + $0xa0] sm:$0xff] (!%p2535_p2) }
 0x720   :  { %1383 = vmatprep.subr.bf16.mxu0 (!%p2535_p2), %v3493_v8  ;;  %2910 = vmatpush3.bf16.msra.mxu1 (!%p2535_p2), %v3546_v17 }
 0x721   :  { %2911 = vmatprep.subr.bf16.mxu1 (!%p2535_p2), %v3331_v60  ;;  %1413 = vmatprep.mubr.bf16.mxu0 (!%p2535_p2), %v3332_v57  ;;  %v1379_v63 = vld [vmem:[#allocation4] sm:$0xff] (!%p2535_p2) }
 0x722   :  { %2925 = vmatprep.mubr.msk.bf16.mxu1 (!%p2535_p2), %vm3333_vm4, %v3331_v60  ;;  %3148 = vset.pattern.permute.xlu0 (!%p2535_p2), %v3332_v57  ;;  %v1380_v2 = vpack.c.bf16 (!%p2535_p2), %v1379_v63, %v1379_v63 }
 0x723   :  { %1384 = vmatpush1.bf16.msra.mxu0 (!%p2535_p2), %v3502_v9  ;;  %1487 = vperm.xlu0 (!%p2535_p2), %3148, %v1485_v61  }
 0x724   :  { %1385 = vmatprep.subr.bf16.mxu0 (!%p2535_p2), %v3509_v10  ;;  %2912 = vmatpush3.bf16.msra.mxu1 (!%p2535_p2), %v3568_v22 }
 0x725   :  { %2913 = vmatprep.subr.bf16.mxu1 (!%p2535_p2), %v3331_v60 }
 0x727   :  { %1386 = vmatpush1.bf16.msra.mxu0 %v3518_v12 }
 0x728   :  { %1387 = vmatprep.subr.bf16.mxu0 %v3524_v13  ;;  %2914 = vmatpush3.bf16.msra.mxu1 %v3589_v25 }
 0x729   :  { %2915 = vmatprep.subr.bf16.mxu1 %v3331_v60 }
 0x72b   :  { %1388 = vmatpush1.bf16.msra.mxu0 %v3534_v15 }
 0x72c   :  { %1389 = vmatprep.subr.bf16.mxu0 %v3541_v16  ;;  %2916 = vmatpush3.bf16.msra.mxu1 %v3617_v30 }
 0x72d   :  { %2917 = vmatprep.subr.bf16.mxu1 %v3331_v60 }
 0x72f   :  { %1390 = vmatpush1.bf16.msra.mxu0 %v3555_v20 }
 0x730   :  { %1391 = vmatprep.subr.bf16.mxu0 %v3561_v21  ;;  %2918 = vmatpush3.bf16.msra.mxu1 %v3635_v34 }
 0x731   :  { %2919 = vmatprep.subr.bf16.mxu1 %v3331_v60 }
 0x733   :  { %1392 = vmatpush1.bf16.msra.mxu0 %v3576_v23 }
 0x734   :  { %1393 = vmatprep.subr.bf16.mxu0 %v3583_v24  ;;  %2920 = vmatpush3.bf16.msra.mxu1 %v3644_v36 }
 0x735   :  { %2921 = vmatprep.subr.bf16.mxu1 %v3331_v60 }
 0x737   :  { %1394 = vmatpush1.bf16.msra.mxu0 %v3604_v28 }
 0x738   :  { %1395 = vmatprep.subr.bf16.mxu0 %v3610_v29  ;;  %2922 = vmatpush3.bf16.msra.mxu1 %v3650_v37 }
 0x739   :  { %2923 = vmatprep.subr.bf16.mxu1 %v3331_v60 }
 0x73b   :  { %1396 = vmatpush1.bf16.msra.mxu0 %v3625_v32 }
 0x73c   :  { %2924 = vmatpush3.bf16.msra.mxu1 %v3656_v38 }
 0x73e   :  { %1414 = vmatmul.mubr.bf16.vlgmr.msra.gmra.mrb[0].mxu0 %v1380_v2 }
 0x73f   :  { %2926 = vmatmul.mubr.bf16.vlgmr.msra.gmra.mrb[0].mxu1 %v1380_v2 }
 0x7a2   :  { %v1488_v52 = vpop.permute.xlu0 %1487 }
 0x7a3   :  { %vm1489_vm5 = vcmp.eq.s32.totalorder %v1488_v52, 1 }
 0x811   :  { %v1415_v40 = vpop.f32.mrb[0].mxu0 }
 0x812   :  { %v1416_v54 = vadd.f32 %v1415_v40, %v3704_v14  ;;  %v1417_v1 = vpop.f32.mrb[1].mxu0  ;;  %v1456_v4 = vpop.f32.mrb[0].mxu1 }
 0x813   :  { %v1418_v5 = vadd.f32 %v1417_v1, %v3708_v18  ;;  %v1419_v33 = vpop.f32.mrb[2].mxu0  ;;  %v2927_v11 = vpop.f32.mrb[1].mxu1  ;;  %v1457_v50 = vadd.f32 %v1456_v4, %v3716_v53 }
 0x814   :  { %v1462_v19 = vadd.f32 %v1416_v54, %v1376_v3  ;;  %v1420_v27 = vpop.f32.mrb[3].mxu0  ;;  %v1459_v62 = vpop.f32.mrb[2].mxu1 }
 0x815   :  { %v2928_v31 = vpop.f32.mrb[3].mxu1  ;;  %v1469_v39 = vadd.f32 %v1418_v5, %v1377_v44 }
 0x816   :  { %v2536_v35 = vmul.f32 -1.442695, %v1462_v19 }
 0x817   :  { %v2537_v42 = vmul.f32 -1.442695, %v1469_v39 }
 0x818   :  { %3149 = vpow2.f32 %v2536_v35 }
 0x819   :  { %3151 = vpow2.f32 %v2537_v42 }
 0x822   :  { %v3150_v45 = vpop.eup %3149 }
 0x823   :  { %v1466_v41 = vadd.f32 1.0, %v3150_v45  ;;  %v3152_v48 = vpop.eup %3151 }
 0x824   :  { %v1473_v43 = vadd.f32 1.0, %v3152_v48 }
 0x825   :  { %3153 = vrcp.f32 %v1466_v41 }
 0x826   :  { %3155 = vrcp.f32 %v1473_v43 }
 0x82f   :  { %v3154_v46 = vpop.eup %3153 }
 0x830   :  { %v1476_v55 = vmul.f32 %v3154_v46, %v1457_v50  ;;  %v3156_v56 = vpop.eup %3155 }
 0x831   :  { %v1479_v49 = vsub.f32 1.0, %v3156_v56  ;;  %v1481_v60 = vmul.f32 %v3156_v56, %v1379_v63 }
 0x832   :  { %v1477_v47 = vadd.f32 %v1476_v55, %v1378_v51 }
 0x834   :  { %3157 = vtanh.f32 %v1477_v47 }
 0x83e   :  { %v3158_v58 = vpop.eup %3157 }
 0x83f   :  { %v1480_v59 = vmul.f32 %v3158_v58, %v1479_v49 }
 0x841   :  { %v1482_v57 = vadd.f32 %v1481_v60, %v1480_v59 }
 0x843   :  { %v1490_v61 = vsel %vm1489_vm5, %v1482_v57, %v1379_v63  ;;  %v1492_v2 = vsel %vm1489_vm5, %v1482_v57, 0.0 }
 0x844   :  { %1491 = vst [vmem:[#allocation4] sm:$0xff] %v1490_v61  ;;  %v1493_v3 = vpack.c.bf16 %v1492_v2, %v1492_v2 }
 0x846   :  { %2539 = vst [vmem:[#allocation3 + $0x4] sm:$0xf] %v1493_v3 }
 0x847 PF:  { %p2541_p3 = scmp.le.s32.totalorder %s4023_s0, 7 }
 0x848   :  { %1523 = vmatprep.subr.bf16.mxu0 (!%p2541_p3), %v3488_v7  ;;  %vm2544_vm6 = vcmp.gt.s32.totalorder (!%p2541_p3), %v3594_v26, 7  ;;  %v3334_v40 = vmov (!%p2541_p3), 0.0   ;;  %v3335_v63 = vmov (!%p2541_p3), 0   ;;  %vm3336_vm7 = vmmov (!%p2541_p3), 0  }
 0x849   :  { %1514 = sbr.rel (%p2541_p3) target bundleno = 2417 (0x971), region = 97  ;;  %1524 = vmatpush1.bf16.msra.mxu0 (!%p2541_p3), %v3483_v6  ;;  %2929 = vmatprep.subr.bf16.mxu1 (!%p2541_p3), %v3334_v40  ;;  %v1627_v54 = vsel (!%p2541_p3), %vm2544_vm6, 1, %v3335_v63 }
 0x84a   :  { %1525 = vmatprep.subr.bf16.mxu0 (!%p2541_p3), %v3493_v8  ;;  %2930 = vmatpush3.bf16.msra.mxu1 (!%p2541_p3), %v3546_v17  ;;  %v1518_v8 = vld [vmem:[#allocation2 + $0xa8] sm:$0xff] (!%p2541_p3) }
 0x84b   :  { %2931 = vmatprep.subr.bf16.mxu1 (!%p2541_p3), %v3334_v40  ;;  %1555 = vmatprep.mubr.bf16.mxu0 (!%p2541_p3), %v3335_v63  ;;  %v1521_v6 = vld [vmem:[#allocation4] sm:$0xff] (!%p2541_p3) }
 0x84c   :  { %2945 = vmatprep.mubr.msk.bf16.mxu1 (!%p2541_p3), %vm3336_vm7, %v3334_v40  ;;  %3159 = vset.pattern.permute.xlu0 (!%p2541_p3), %v3335_v63  ;;  %v1522_v7 = vpack.c.bf16 (!%p2541_p3), %v1521_v6, %v1521_v6 }
 0x84d   :  { %1526 = vmatpush1.bf16.msra.mxu0 (!%p2541_p3), %v3502_v9  ;;  %1629 = vperm.xlu0 (!%p2541_p3), %3159, %v1627_v54  }
 0x84e   :  { %1527 = vmatprep.subr.bf16.mxu0 (!%p2541_p3), %v3509_v10  ;;  %2932 = vmatpush3.bf16.msra.mxu1 (!%p2541_p3), %v3568_v22 }
 0x84f   :  { %2933 = vmatprep.subr.bf16.mxu1 (!%p2541_p3), %v3334_v40 }
 0x851   :  { %1528 = vmatpush1.bf16.msra.mxu0 %v3518_v12 }
 0x852   :  { %1529 = vmatprep.subr.bf16.mxu0 %v3524_v13  ;;  %2934 = vmatpush3.bf16.msra.mxu1 %v3589_v25 }
 0x853   :  { %2935 = vmatprep.subr.bf16.mxu1 %v3334_v40 }
 0x855   :  { %1530 = vmatpush1.bf16.msra.mxu0 %v3534_v15 }
 0x856   :  { %1531 = vmatprep.subr.bf16.mxu0 %v3541_v16  ;;  %2936 = vmatpush3.bf16.msra.mxu1 %v3617_v30 }
 0x857   :  { %2937 = vmatprep.subr.bf16.mxu1 %v3334_v40 }
 0x859   :  { %1532 = vmatpush1.bf16.msra.mxu0 %v3555_v20 }
 0x85a   :  { %1533 = vmatprep.subr.bf16.mxu0 %v3561_v21  ;;  %2938 = vmatpush3.bf16.msra.mxu1 %v3635_v34  ;;  %v1519_v21 = vld [vmem:[#allocation2 + $0xb0] sm:$0xff] }
 0x85b   :  { %2939 = vmatprep.subr.bf16.mxu1 %v3334_v40 }
 0x85d   :  { %1534 = vmatpush1.bf16.msra.mxu0 %v3576_v23 }
 0x85e   :  { %1535 = vmatprep.subr.bf16.mxu0 %v3583_v24  ;;  %2940 = vmatpush3.bf16.msra.mxu1 %v3644_v36 }
 0x85f   :  { %2941 = vmatprep.subr.bf16.mxu1 %v3334_v40 }
 0x861   :  { %1536 = vmatpush1.bf16.msra.mxu0 %v3604_v28 }
 0x862   :  { %1537 = vmatprep.subr.bf16.mxu0 %v3610_v29  ;;  %2942 = vmatpush3.bf16.msra.mxu1 %v3650_v37 }
 0x863   :  { %2943 = vmatprep.subr.bf16.mxu1 %v3334_v40 }
 0x865   :  { %1538 = vmatpush1.bf16.msra.mxu0 %v3625_v32 }
 0x866   :  { %2944 = vmatpush3.bf16.msra.mxu1 %v3656_v38  ;;  %v1520_v38 = vld [vmem:[#allocation2 + $0xb8] sm:$0xff] }
 0x868   :  { %1556 = vmatmul.mubr.bf16.vlgmr.msra.gmra.mrb[0].mxu0 %v1522_v7 }
 0x869   :  { %2946 = vmatmul.mubr.bf16.vlgmr.msra.gmra.mrb[0].mxu1 %v1522_v7 }
 0x8cc   :  { %v1630_v4 = vpop.permute.xlu0 %1629 }
 0x8cd   :  { %vm1631_vm8 = vcmp.eq.s32.totalorder %v1630_v4, 1 }
 0x93b   :  { %v1557_v9 = vpop.f32.mrb[0].mxu0 }
 0x93c   :  { %v1558_v10 = vadd.f32 %v1557_v9, %v3704_v14  ;;  %v1559_v12 = vpop.f32.mrb[1].mxu0  ;;  %v1598_v13 = vpop.f32.mrb[0].mxu1 }
 0x93d   :  { %v1560_v15 = vadd.f32 %v1559_v12, %v3708_v18  ;;  %v1561_v16 = vpop.f32.mrb[2].mxu0  ;;  %v2947_v17 = vpop.f32.mrb[1].mxu1  ;;  %v1599_v36 = vadd.f32 %v1598_v13, %v3716_v53 }
 0x93e   :  { %v1604_v20 = vadd.f32 %v1558_v10, %v1518_v8  ;;  %v1562_v22 = vpop.f32.mrb[3].mxu0  ;;  %v1601_v23 = vpop.f32.mrb[2].mxu1 }
 0x93f   :  { %v2948_v24 = vpop.f32.mrb[3].mxu1  ;;  %v1611_v26 = vadd.f32 %v1560_v15, %v1519_v21 }
 0x940   :  { %v2542_v25 = vmul.f32 -1.442695, %v1604_v20 }
 0x941   :  { %v2543_v28 = vmul.f32 -1.442695, %v1611_v26 }
 0x942   :  { %3160 = vpow2.f32 %v2542_v25 }
 0x943   :  { %3162 = vpow2.f32 %v2543_v28 }
 0x94c   :  { %v3161_v29 = vpop.eup %3160 }
 0x94d   :  { %v1608_v30 = vadd.f32 1.0, %v3161_v29  ;;  %v3163_v32 = vpop.eup %3162 }
 0x94e   :  { %v1615_v34 = vadd.f32 1.0, %v3163_v32 }
 0x94f   :  { %3164 = vrcp.f32 %v1608_v30 }
 0x950   :  { %3166 = vrcp.f32 %v1615_v34 }
 0x959   :  { %v3165_v37 = vpop.eup %3164 }
 0x95a   :  { %v1618_v14 = vmul.f32 %v3165_v37, %v1599_v36  ;;  %v3167_v1 = vpop.eup %3166 }
 0x95b   :  { %v1621_v5 = vsub.f32 1.0, %v3167_v1  ;;  %v1623_v19 = vmul.f32 %v3167_v1, %v1521_v6 }
 0x95c   :  { %v1619_v18 = vadd.f32 %v1618_v14, %v1520_v38 }
 0x95e   :  { %3168 = vtanh.f32 %v1619_v18 }
 0x968   :  { %v3169_v33 = vpop.eup %3168 }
 0x969   :  { %v1622_v11 = vmul.f32 %v3169_v33, %v1621_v5 }
 0x96b   :  { %v1624_v44 = vadd.f32 %v1623_v19, %v1622_v11 }
 0x96d   :  { %v1632_v27 = vsel %vm1631_vm8, %v1624_v44, %v1521_v6  ;;  %v1634_v62 = vsel %vm1631_vm8, %v1624_v44, 0.0 }
 0x96e   :  { %1633 = vst [vmem:[#allocation4] sm:$0xff] %v1632_v27  ;;  %v1635_v31 = vpack.c.bf16 %v1634_v62, %v1634_v62 }
 0x970   :  { %2545 = vst [vmem:[#allocation3 + $0x8] sm:$0xf] %v1635_v31 }
 0x971 PF:  { %s2546_s21 = sadd.s32 4294967291, %s4023_s0  ;;  %v3170_v35 = vld [vmem:[#allocation7 + $0x40] sm:$0xff]   ;;  %v3174_v41 = vld [vmem:[#allocation7 + $0x48] sm:$0xff]   ;;  %v3178_v46 = vld [vmem:[#allocation7 + $0x50] sm:$0xff]   ;;  %vm3337_vm9 = vmmov 0  }
 0x972   :  { %p1658_p4 = scmp.gt.s32.totalorder %s2546_s21, 0  ;;  %v3171_v39 = vld [vmem:[#allocation7] sm:$0xff]   ;;  %2708 = vmatprep.subr.bf16.mxu0 %v3170_v35  ;;  %v3175_v48 = vld [vmem:[#allocation7 + $0x8] sm:$0xff]   ;;  %v3179_v51 = vld [vmem:[#allocation7 + $0x10] sm:$0xff]  }
 0x973   :  { %v3172_v42 = vld [vmem:[#allocation7 + $0xc0] sm:$0xff]   ;;  %2709 = vmatpush3.bf16.msra.mxu0 %v3171_v39  ;;  %v3176_v43 = vld [vmem:[#allocation7 + $0xc8] sm:$0xff]   ;;  %v3180_v55 = vld [vmem:[#allocation7 + $0xd0] sm:$0xff]  }
 0x974   :  { %s4039_s21 = smov (!%p1658_p4, %s2546_s21), 0  ;;  %v3173_v45 = vld [vmem:[#allocation7 + $0x80] sm:$0xff]   ;;  %2730 = vmatprep.subr.bf16.mxu1 %v3172_v42  ;;  %2710 = vmatprep.subr.bf16.mxu0 %v3174_v41  ;;  %v3177_v50 = vld [vmem:[#allocation7 + $0x88] sm:$0xff]   ;;  %v3181_v47 = vld [vmem:[#allocation7 + $0x90] sm:$0xff]  }
 0x975   :  { %v1655_v53 = vld [vmem:[#allocation4] sm:$0xff]  ;;  %s3948_s11 = sadd.s32 1, %s4039_s21  ;;  %2731 = vmatpush3.bf16.msra.mxu1 %v3173_v45  ;;  %s3953_s25 = sadd.s32 3, %s4039_s21  ;;  %v3186_v59 = vld [vmem:[#allocation7 + $0x60] sm:$0xff]   ;;  %v3190_v2 = vld [vmem:[#allocation7 + $0x68] sm:$0xff]  }
 0x976   :  { %1656 = vst [vmem:[%s4037_s14] sm:$0xff] %v1655_v53  ;;  %s1678_s0 = ssub.s32 0, %s3948_s11  ;;  %2732 = vmatprep.subr.bf16.mxu1 %v3176_v43  ;;  %s1712_s26 = ssub.s32 0, %s3953_s25  ;;  %v3182_v56 = vld [vmem:[#allocation7 + $0x58] sm:$0xff]   ;;  %v3187_v60 = vld [vmem:[#allocation7 + $0x20] sm:$0xff]   ;;  %v3191_v3 = vld [vmem:[#allocation7 + $0x28] sm:$0xff]  }
 0x977   :  { %2711 = vmatpush3.bf16.msra.mxu0 %v3175_v48  ;;  %s2556_s14 = smin.u32 %s1678_s0, %s3948_s11  ;;  %s2564_s30 = smin.u32 %s1712_s26, %s3953_s25  ;;  %v3183_v52 = vld [vmem:[#allocation7 + $0x18] sm:$0xff]   ;;  %v3188_v57 = vld [vmem:[#allocation7 + $0xe0] sm:$0xff]   ;;  %v3192_v40 = vld [vmem:[#allocation7 + $0xe8] sm:$0xff]  }
 0x978   :  { %3226 = sdivrem.u32 %s2556_s14, 5  ;;  %2712 = vmatprep.subr.bf16.mxu0 %v3178_v46  ;;  %s3959_s4 = sadd.s32 2, %s4039_s21  ;;  %v3184_v49 = vld [vmem:[#allocation7 + $0xd8] sm:$0xff]   ;;  %v3189_v61 = vld [vmem:[#allocation7 + $0xa0] sm:$0xff]   ;;  %v3193_v63 = vld [vmem:[#allocation7 + $0xa8] sm:$0xff]  }
 0x979   :  { %2733 = vmatpush3.bf16.msra.mxu1 %v3177_v50  ;;  %3228 = sdivrem.u32 %s4039_s21, 5  ;;  %p1677_p5 = scmp.lt.s32.totalorder %s3948_s11, 0  ;;  %v3185_v58 = vld [vmem:[#allocation7 + $0x98] sm:$0xff]   ;;  %v3194_v54 = vld [vmem:[#allocation7 + $0x70] sm:$0xff]   ;;  %v3202_v17 = vld [vmem:[#allocation7 + $0x100] sm:$0xff]  }
 0x97a   :  { %3230 = sdivrem.u32 %s2564_s30, 5  ;;  %2734 = vmatprep.subr.bf16.mxu1 %v3180_v55  ;;  %s1695_s5 = ssub.s32 0, %s3959_s4  ;;  %v3195_v6 = vld [vmem:[#allocation7 + $0x30] sm:$0xff]   ;;  %v3198_v9 = vld [vmem:[#allocation7 + $0x78] sm:$0xff]   ;;  %v3203_v20 = vld [vmem:[#allocation7 + $0x108] sm:$0xff]  }
 0x97b   :  { %2713 = vmatpush3.bf16.msra.mxu0 %v3179_v51  ;;  %s2560_s6 = smin.u32 %s1695_s5, %s3959_s4  ;;  %s3965_s23 = sadd.s32 4, %s4039_s21  ;;  %v3196_v7 = vld [vmem:[#allocation7 + $0xf0] sm:$0xff]   ;;  %v3199_v10 = vld [vmem:[#allocation7 + $0x38] sm:$0xff]   ;;  %v3206_v25 = vld [vmem:[#allocation7 + $0x120] sm:$0xff]  }
 0x97c   :  { %2714 = vmatprep.subr.bf16.mxu0 %v3182_v56  ;;  %p1711_p6 = scmp.lt.s32.totalorder %s3953_s25, 0  ;;  %3232 = sdivrem.u32 %s2560_s6, 5  ;;  %v3197_v8 = vld [vmem:[#allocation7 + $0xb0] sm:$0xff]   ;;  %v3200_v12 = vld [vmem:[#allocation7 + $0xf8] sm:$0xff]   ;;  %v3207_v26 = vld [vmem:[#allocation7 + $0x128] sm:$0xff]  }
 0x97d   :  { %2735 = vmatpush3.bf16.msra.mxu1 %v3181_v47  ;;  %s1729_s24 = ssub.s32 0, %s3965_s23  ;;  %p1694_p7 = scmp.lt.s32.totalorder %s3959_s4, 0  ;;  %v3201_v15 = vld [vmem:[#allocation7 + $0xb8] sm:$0xff]   ;;  %v3204_v22 = vld [vmem:[#allocation7 + $0x110] sm:$0xff]   ;;  %v3210_v32 = vld [vmem:[#allocation9] sm:$0xff]  }
 0x97e   :  { %2736 = vmatprep.subr.bf16.mxu1 %v3184_v49  ;;  %s2568_s27 = smin.u32 %s1729_s24, %s3965_s23  ;;  %p1728_p11 = scmp.lt.s32.totalorder %s3965_s23, 0  ;;  %v3205_v23 = vld [vmem:[#allocation7 + $0x118] sm:$0xff]   ;;  %v3208_v28 = vld [vmem:[#allocation7 + $0x130] sm:$0xff]   ;;  %v3211_v34 = vld [vmem:[#allocation9 + $0x8] sm:$0xff]  }
 0x97f   :  { %2715 = vmatpush3.bf16.msra.mxu0 %v3183_v52  ;;  %3234 = sdivrem.u32 %s2568_s27, 5  ;;  %v3209_v29 = vld [vmem:[#allocation7 + $0x138] sm:$0xff]   ;;  %v3212_v36 = vld [vmem:[#allocation9 + $0x10] sm:$0xff]   ;;  %v3214_v38 = vld [vmem:[#allocation9 + $0x20] sm:$0xff]  }
 0x980   :  { %2716 = vmatprep.subr.bf16.mxu0 %v3186_v59  ;;  %v3213_v37 = vld [vmem:[#allocation9 + $0x18] sm:$0xff]   ;;  %v3215_v14 = vld [vmem:[#allocation9 + $0x28] sm:$0xff]   ;;  %v3216_v18 = vld [vmem:[#allocation9 + $0x30] sm:$0xff]  }
 0x981   :  { %2737 = vmatpush3.bf16.msra.mxu1 %v3185_v58  ;;  %s3227_s28 = spop.drf %3226  ;;  %v3217_v1 = vld [vmem:[#allocation9 + $0x38] sm:$0xff]   ;;  %v3218_v4 = vld [vmem:[#allocation11] sm:$0xff]   ;;  %v3219_v5 = vld [vmem:[#allocation11 + $0x8] sm:$0xff]  }
 0x982   :  { %s1682_s3 = ssub.s32 0, %s3227_s28  ;;  %s3971_s29 = spop.drf %3228  ;;  %2738 = vmatprep.subr.bf16.mxu1 %v3188_v57  ;;  %v3220_v33 = vld [vmem:[#allocation11 + $0x10] sm:$0xff]   ;;  %v3221_v11 = vld [vmem:[#allocation11 + $0x18] sm:$0xff]   ;;  %v3222_v19 = vld [vmem:[#allocation11 + $0x20] sm:$0xff]  }
 0x983   :  { %2717 = vmatpush3.bf16.msra.mxu0 %v3187_v60  ;;  %s4041_s3 = smov (!%p1677_p5, %s1682_s3), %s3227_s28  ;;  %s3231_s1 = spop.drf %3230  ;;  %v3223_v44 = vld [vmem:[#allocation11 + $0x28] sm:$0xff]   ;;  %v2572_v39 = vld [vmem:[%s4031_s8] ss:$0 sm:$0xff]  ;;  %v3224_v59 = vld [vmem:[#allocation11 + $0x30] sm:$0xff]  }
 0x984   :  { %p2558_p8 = scmp.lt.s32.totalorder %s4041_s3, 0  ;;  %2718 = vmatprep.subr.bf16.mxu0 %v3190_v2  ;;  %s1688_s15 = sadd.s32 5, %s4041_s3  ;;  %v3225_v60 = vld [vmem:[#allocation11 + $0x38] sm:$0xff]   ;;  %v2613_v57 = vld [vmem:[%s4033_s10] ss:$0 sm:$0xff] }
 0x985   :  { %2739 = vmatpush3.bf16.msra.mxu1 %v3189_v61  ;;  %s2555_s2 = sshll.u32 %s3971_s29, 2  ;;  %s3233_s18 = spop.drf %3232 }
 0x986   :  { %s4043_s15 = smov (!%p2558_p8, %s1688_s15), %s4041_s3  ;;  %2740 = vmatprep.subr.bf16.mxu1 %v3192_v40  ;;  %s1716_s19 = ssub.s32 0, %s3231_s1 }
 0x987   :  { %2719 = vmatpush3.bf16.msra.mxu0 %v3191_v3  ;;  %s2559_s17 = sshll.u32 %s4043_s15, 2  ;;  %s4045_s19 = smov (!%p1711_p6, %s1716_s19), %s3231_s1 }
 0x988   :  { %2720 = vmatprep.subr.bf16.mxu0 %v3194_v54  ;;  %s1691_s20 = scalar_lea.vmem [#allocation3], %s2559_s17  ;;  %s1674_s7 = scalar_lea.vmem [#allocation3], %s2555_s2 }
 0x989   :  { %2741 = vmatpush3.bf16.msra.mxu1 %v3193_v63  ;;  %v1692_v13 = vld [vmem:[%s1691_s20] sm:$0xf]  ;;  %s1699_s16 = ssub.s32 0, %s3233_s18  ;;  %p2566_p9 = scmp.lt.s32.totalorder %s4045_s19, 0 }
 0x98a   :  { %2742 = vmatprep.subr.bf16.mxu1 %v3196_v7  ;;  %2103 = vmatprep.mubr.bf16.mxu0 %v1692_v13  ;;  %v1675_v16 = vld [vmem:[%s1674_s7] sm:$0xf]  ;;  %s1722_s21 = sadd.s32 5, %s4045_s19  ;;  %s4047_s16 = smov (!%p1694_p7, %s1699_s16), %s3233_s18 }
 0x98b   :  { %2721 = vmatpush3.bf16.msra.mxu0 %v3195_v6  ;;  %s4049_s21 = smov (!%p2566_p9, %s1722_s21), %s4045_s19  ;;  %p2562_p10 = scmp.lt.s32.totalorder %s4047_s16, 0  ;;  %v2622_v7 = vld [vmem:[%s4035_s12] ss:$0 sm:$0xff] }
 0x98c   :  { %2722 = vmatprep.subr.bf16.mxu0 %v3198_v9  ;;  %s1705_s22 = sadd.s32 5, %s4047_s16  ;;  %s2567_s9 = sshll.u32 %s4049_s21, 2 }
 0x98d   :  { %2743 = vmatpush3.bf16.msra.mxu1 %v3197_v8  ;;  %s3235_s11 = spop.drf %3234  ;;  %s1725_s0 = scalar_lea.vmem [#allocation3], %s2567_s9 }
 0x98e   :  { %2744 = vmatprep.subr.bf16.mxu1 %v3200_v12  ;;  %v1726_v21 = vld [vmem:[%s1725_s0] sm:$0xf]  ;;  %s4051_s22 = smov (!%p2562_p10, %s1705_s22), %s4047_s16  ;;  %s1733_s25 = ssub.s32 0, %s3235_s11 }
 0x98f   :  { %2723 = vmatpush3.bf16.msra.mxu0 %v3199_v10  ;;  %2143 = vmatprep.mubr.bf16.mxu1 %v1726_v21  ;;  %s2563_s14 = sshll.u32 %s4051_s22, 2  ;;  %s4053_s25 = smov (!%p1728_p11, %s1733_s25), %s3235_s11 }
 0x990   :  { %2949 = vmatprep.subr.bf16.mxu0 %v3311_v0  ;;  %s1708_s26 = scalar_lea.vmem [#allocation3], %s2563_s14  ;;  %p2570_p12 = scmp.lt.s32.totalorder %s4053_s25, 0 }
 0x991   :  { %2745 = vmatpush3.bf16.msra.mxu1 %v3201_v15  ;;  %v1709_v24 = vld [vmem:[%s1708_s26] sm:$0xf]  ;;  %s1739_s30 = sadd.s32 5, %s4053_s25 }
 0x992   :  { %2104 = vmatmul.mubr.bf16.vlgmr.msra.gmra.mrb[0].mxu0 %v1675_v16  ;;  %2969 = vmatprep.subr.bf16.mxu1 %v3311_v0  ;;  %s4055_s30 = smov (!%p2570_p12, %s1739_s30), %s4053_s25 }
 0x993   :  { %2950 = vmatpush3.bf16.msra.mxu0 %v3202_v17  ;;  %2965 = vmatprep.mubr.msk.bf16.mxu0 %vm3337_vm9, %v3311_v0  ;;  %s2571_s4 = sshll.u32 %s4055_s30, 2 }
 0x994   :  { %2951 = vmatprep.subr.bf16.mxu0 %v3311_v0  ;;  %2144 = vmatmul.mubr.bf16.vlgmr.msra.gmra.mrb[0].mxu1 %v1709_v24  ;;  %s1742_s5 = scalar_lea.vmem [#allocation3], %s2571_s4 }
 0x995   :  { %2985 = vmatprep.mubr.msk.bf16.mxu1 %vm3337_vm9, %v3311_v0  ;;  %v1743_v30 = vld [vmem:[%s1742_s5] sm:$0xf]  ;;  %2970 = vmatpush3.bf16.msra.mxu1 %v3210_v32 }
 0x996   :  { %2971 = vmatprep.subr.bf16.mxu1 %v3311_v0 }
 0x997   :  { %2952 = vmatpush3.bf16.msra.mxu0 %v3203_v20 }
 0x998   :  { %2953 = vmatprep.subr.bf16.mxu0 %v3311_v0 }
 0x999   :  { %2972 = vmatpush3.bf16.msra.mxu1 %v3211_v34 }
 0x99a   :  { %2973 = vmatprep.subr.bf16.mxu1 %v3311_v0 }
 0x99b   :  { %2954 = vmatpush3.bf16.msra.mxu0 %v3204_v22 }
 0x99c   :  { %2955 = vmatprep.subr.bf16.mxu0 %v3311_v0 }
 0x99d   :  { %2974 = vmatpush3.bf16.msra.mxu1 %v3212_v36 }
 0x99e   :  { %2975 = vmatprep.subr.bf16.mxu1 %v3311_v0 }
 0x99f   :  { %2956 = vmatpush3.bf16.msra.mxu0 %v3205_v23 }
 0x9a0   :  { %2957 = vmatprep.subr.bf16.mxu0 %v3311_v0 }
 0x9a1   :  { %2976 = vmatpush3.bf16.msra.mxu1 %v3213_v37 }
 0x9a2   :  { %2977 = vmatprep.subr.bf16.mxu1 %v3311_v0 }
 0x9a3   :  { %2958 = vmatpush3.bf16.msra.mxu0 %v3206_v25 }
 0x9a4   :  { %2959 = vmatprep.subr.bf16.mxu0 %v3311_v0 }
 0x9a5   :  { %2978 = vmatpush3.bf16.msra.mxu1 %v3214_v38 }
 0x9a6   :  { %2979 = vmatprep.subr.bf16.mxu1 %v3311_v0 }
 0x9a7   :  { %2960 = vmatpush3.bf16.msra.mxu0 %v3207_v26 }
 0x9a8   :  { %2961 = vmatprep.subr.bf16.mxu0 %v3311_v0 }
 0x9a9   :  { %2980 = vmatpush3.bf16.msra.mxu1 %v3215_v14 }
 0x9aa   :  { %2981 = vmatprep.subr.bf16.mxu1 %v3311_v0 }
 0x9ab   :  { %2962 = vmatpush3.bf16.msra.mxu0 %v3208_v28 }
 0x9ac   :  { %2963 = vmatprep.subr.bf16.mxu0 %v3311_v0 }
 0x9ad   :  { %2982 = vmatpush3.bf16.msra.mxu1 %v3216_v18 }
 0x9ae   :  { %2983 = vmatprep.subr.bf16.mxu1 %v3311_v0 }
 0x9af   :  { %2964 = vmatpush3.bf16.msra.mxu0 %v3209_v29 }
 0x9b0   :  { %2989 = vmatprep.subr.bf16.mxu0 %v3311_v0 }
 0x9b1   :  { %2984 = vmatpush3.bf16.msra.mxu1 %v3217_v1 }
 0x9b2   :  { %2966 = vmatmul.mubr.bf16.vlgmr.msra.gmra.mrb[4].mxu0 %v1743_v30 }
 0x9b3   :  { %3005 = vmatprep.mubr.msk.bf16.mxu0 %vm3337_vm9, %v3311_v0  ;;  %2990 = vmatpush3.bf16.msra.mxu0 %v3218_v4 }
 0x9b4   :  { %2991 = vmatprep.subr.bf16.mxu0 %v3311_v0 }
 0x9b7   :  { %2992 = vmatpush3.bf16.msra.mxu0 %v3219_v5 }
 0x9b8   :  { %2993 = vmatprep.subr.bf16.mxu0 %v3311_v0 }
 0x9bb   :  { %2994 = vmatpush3.bf16.msra.mxu0 %v3220_v33 }
 0x9bc   :  { %2995 = vmatprep.subr.bf16.mxu0 %v3311_v0 }
 0x9bf   :  { %2996 = vmatpush3.bf16.msra.mxu0 %v3221_v11 }
 0x9c0   :  { %2997 = vmatprep.subr.bf16.mxu0 %v3311_v0 }
 0x9c3   :  { %2998 = vmatpush3.bf16.msra.mxu0 %v3222_v19 }
 0x9c4   :  { %2999 = vmatprep.subr.bf16.mxu0 %v3311_v0 }
 0x9c7   :  { %3000 = vmatpush3.bf16.msra.mxu0 %v3223_v44 }
 0x9c8   :  { %3001 = vmatprep.subr.bf16.mxu0 %v3311_v0 }
 0x9cb   :  { %3002 = vmatpush3.bf16.msra.mxu0 %v3224_v59 }
 0x9cc   :  { %3003 = vmatprep.subr.bf16.mxu0 %v3311_v0 }
 0x9cf   :  { %3004 = vmatpush3.bf16.msra.mxu0 %v3225_v60 }
 0xa65   :  { %v2724_v27 = vpop.f32.mrb[0].mxu0 }
 0xa66   :  { %v2725_v62 = vpop.f32.mrb[1].mxu0 }
 0xa67   :  { %v2726_v31 = vadd.f32 %v2725_v62, %v2724_v27  ;;  %v2727_v53 = vpop.f32.mrb[2].mxu0  ;;  %v2746_v45 = vpop.f32.mrb[0].mxu1 }
 0xa68   :  { %v2728_v35 = vpop.f32.mrb[3].mxu0  ;;  %v2747_v41 = vpop.f32.mrb[1].mxu1 }
 0xa69   :  { %v2106_v42 = vadd.f32 %v2726_v31, %v2572_v39  ;;  %v2748_v48 = vadd.f32 %v2747_v41, %v2746_v45  ;;  %v2749_v43 = vpop.f32.mrb[2].mxu1 }
 0xa6a   :  { %v2750_v50 = vpop.f32.mrb[3].mxu1 }
 0xa6b   :  { %v2146_v46 = vadd.f32 %v2748_v48, %v2106_v42 }
 0xa85   :  { %v2185_v51 = vpop.f32.mrb[4].mxu0 }
 0xa86   :  { %v2186_v55 = vadd.f32 %v2185_v51, %v2146_v46  ;;  %v2967_v47 = vpop.f32.mrb[5].mxu0 }
 0xa87   :  { %v2188_v56 = vpop.f32.mrb[6].mxu0 }
 0xa88   :  { %v2191_v52 = vmax.f32 %v2186_v55, 0.0  ;;  %v2968_v49 = vpop.f32.mrb[7].mxu0 }
 0xa8a   :  { %v2192_v58 = vpack.c.bf16 %v2191_v52, %v2191_v52 }
 0xa8c   :  { %2986 = vmatmul.mubr.bf16.vlgmr.msra.gmra.mrb[4].mxu1 %v2192_v58 }
 0xb5f   :  { %v2298_v61 = vpop.f32.mrb[4].mxu1 }
 0xb60   :  { %v2299_v2 = vadd.f32 %v2613_v57, %v2298_v61  ;;  %v2987_v3 = vpop.f32.mrb[5].mxu1 }
 0xb61   :  { %v2301_v40 = vpop.f32.mrb[6].mxu1 }
 0xb62   :  { %v2304_v63 = vmax.f32 %v2299_v2, 0.0  ;;  %v2988_v54 = vpop.f32.mrb[7].mxu1 }
 0xb64   :  { %v2305_v6 = vpack.c.bf16 %v2304_v63, %v2304_v63 }
 0xb66   :  { %3006 = vmatmul.mubr.bf16.vlgmr.msra.gmra.mrb[8].mxu0 %v2305_v6 }
 0xc39   :  { %v2411_v8 = vpop.f32.mrb[8].mxu0 }
 0xc3a   :  { %v2412_v9 = vadd.f32 %v2622_v7, %v2411_v8  ;;  %v3007_v0 = vpop.f32.mrb[9].mxu0 }
 0xc3b   :  { %v2414_v10 = vpop.f32.mrb[10].mxu0 }
 0xc3c   :  { %2417 = vst [vmem:[%s4036_s13] sm:$0xff] %v2412_v9  ;;  %v3008_v12 = vpop.f32.mrb[11].mxu0 }
 0xc3d   :  { %2426 = vsyncpa [#allocation8], 1 }
 0xc3e   :  { %2427 = vsyncpa [#allocation10], 1 }

</bundles_post_ra>
